<compile_context>
chip_gen: v7x
topology: tpu7x:2x2x1
jax: 0.10.0
libtpu: 0.0.40
codegen_flags: <defaults>
</compile_context>

<pallas_src>
import functools

import jax
import jax.numpy as jnp
from jax import lax
from jax.experimental import pallas as pl
from jax.experimental.pallas import tpu as pltpu


def _latent_corr_kernel(x_ref, m_ref, out_ref, *,
                        n_valid, n_pad, tr, tb, b_total, b_pad):
    """One (row-tile, batch-step) grid point.

    x_ref:   (tb, n_pad, F)  current batch-group of (node-padded) inputs
    m_ref:   (F, F)          M = (Wq / sqrt(d_k)) @ Wk^T
    out_ref: (tr, n_pad)     resident accumulator for this query-row tile
    """
    hp = lax.Precision.HIGHEST  # PyTorch computes these matmuls in full f32
    bstep = pl.program_id(1)

    # Output block is resident across the (reduction) batch axis: init once.
    @pl.when(bstep == 0)
    def _():
        out_ref[...] = jnp.zeros_like(out_ref)

    xk = x_ref[...]                        # (tb, n_pad, F)  keys side
    m_mat = m_ref[...]                     # (F, F)
    f = m_mat.shape[0]

    if tr == n_pad:
        xq = xk                            # single row tile -> no slice
    else:
        row0 = pl.multiple_of(pl.program_id(0) * tr, tr)
        xq = x_ref[:, pl.ds(row0, tr), :]  # (tb, tr, F) query rows

    # score_ij = (x_i Wq / sqrt(dk)) . (x_j Wk) = x_i (Wq_s Wk^T) x_j^T
    # Both contractions are full-K (K = F) lane-dense MXU passes.
    xm = jnp.dot(xq.reshape(tb * tr, f), m_mat,
                 preferred_element_type=jnp.float32,
                 precision=hp).reshape(tb, tr, f)
    data = jnp.einsum("bif,bjf->bij", xm, xk,
                      preferred_element_type=jnp.float32,
                      precision=hp)        # (tb, tr, n_pad)

    # LeakyReLU(0.2): single vmax per element.
    data = jnp.maximum(data, 0.2 * data)

    # Exclude padded key columns from the softmax (broadcast-row additive mask).
    if n_pad != n_valid:
        col = lax.broadcasted_iota(jnp.int32, (1, 1, n_pad), 2)
        data = data + jnp.where(col < n_valid, 0.0, -1e30).astype(jnp.float32)

    # Row softmax; division replaced by per-row reciprocal + broadcast mul.
    m_row = jnp.max(data, axis=-1, keepdims=True)
    e = jnp.exp(data - m_row)
    denom = jnp.sum(e, axis=-1, keepdims=True)
    # approx=True would push this to the EUP at reduced precision; exact keeps
    # f32 parity with the reference (it is only tb*tr values either way).
    att = e * pl.reciprocal(denom, approx=False)

    # TODO(synk): Dropout(p=0.4) is identity here (inference mode).

    # Zero-weight the zero-padded tail batches (statically skipped if B % tb == 0).
    if b_pad != b_total:
        b_idx = bstep * tb + lax.broadcasted_iota(jnp.int32, (tb, 1, 1), 0)
        att = jnp.where(b_idx < b_total, att, 0.0)

    # Accumulate the per-step batch sum directly into the resident output.
    out_ref[...] += jnp.sum(att, axis=0)


def latent_correlation_layer(x, weight_key, weight_query, *,
                             vmem_budget_bytes=20 * 1024 * 1024,
                             vmem_limit_bytes=32 * 1024 * 1024):
    """x: (B, N, F) float32; weight_key/weight_query: (F, d_k) float32 -> (N, N)."""
    B, N, F = x.shape
    d_k = weight_key.shape[-1]
    x = x.astype(jnp.float32)

    # Fold both projections and the 1/sqrt(d_k) score scale into one (F, F)
    # matrix:  score = x @ M @ x^T,  M = (Wq / sqrt(d_k)) @ Wk^T.
    scale = jnp.float32(1.0) / jnp.sqrt(jnp.float32(d_k))
    m_mat = jnp.matmul(weight_query.astype(jnp.float32) * scale,
                       weight_key.astype(jnp.float32).T,
                       precision=lax.Precision.HIGHEST)       # (F, F)

    # Pad the node dim up to a lane-dense multiple of 128.
    n_pad = ((N + 127) // 128) * 128
    if n_pad != N:
        x = jnp.pad(x, ((0, 0), (0, n_pad - N), (0, 0)))

    # Query-row tile: leading "parallel" grid axis (both TCs on v7x) and keeps
    # the per-step (tb, tr, n_pad) score tensor inside the VMEM budget.
    if n_pad <= 256:
        tr = n_pad
    elif n_pad % 256 == 0:
        tr = 256
    else:
        tr = 128

    # Batches per step from the VMEM budget, counting the real live set:
    # double-buffered x block, xm, ~3 live (tb,tr,n_pad) softmax temporaries,
    # plus the (small) M block and the resident output block.
    per_batch = (2 * n_pad * F + tr * F + 3 * tr * n_pad) * 4
    fixed = (2 * F * F + 2 * tr * n_pad) * 4
    tb = int(max(1, min(B, (vmem_budget_bytes - fixed) // per_batch)))
    nbsteps = -(-B // tb)                 # cdiv: no TB=1 fallback for awkward B
    b_pad = nbsteps * tb
    if b_pad != B:
        x = jnp.pad(x, ((0, b_pad - B), (0, 0), (0, 0)))

    kernel = functools.partial(
        _latent_corr_kernel, n_valid=N, n_pad=n_pad, tr=tr, tb=tb,
        b_total=B, b_pad=b_pad)

    acc = pl.pallas_call(
        kernel,
        out_shape=jax.ShapeDtypeStruct((n_pad, n_pad), jnp.float32),
        grid_spec=pltpu.PrefetchScalarGridSpec(
            num_scalar_prefetch=0,
            grid=(n_pad // tr, nbsteps),
            in_specs=[
                pl.BlockSpec((tb, n_pad, F), lambda r, s: (s, 0, 0)),  # x batch group
                pl.BlockSpec((F, F), lambda r, s: (0, 0)),             # M (invariant)
            ],
            out_specs=pl.BlockSpec((tr, n_pad), lambda r, s: (r, 0)),  # resident acc
        ),
        compiler_params=pltpu.CompilerParams(
            dimension_semantics=("parallel", "arbitrary"),
            vmem_limit_bytes=vmem_limit_bytes,
        ),
    )(x, m_mat)

    # Batch mean + symmetrization outside the kernel (cheap XLA ops), then
    # slice away padded rows/cols (slice commutes with symmetrization).
    a = acc[:N, :N] * jnp.float32(1.0 / B)
    return 0.5 * (a + a.T)


def _xavier_uniform(key, shape, gain):
    # matches torch.nn.init.xavier_uniform_ for a 2-D tensor:
    # fan_in = shape[1], fan_out = shape[0]
    fan_in, fan_out = shape[1], shape[0]
    limit = gain * jnp.sqrt(6.0 / (fan_in + fan_out))
    return jax.random.uniform(key, shape, jnp.float32, minval=-limit, maxval=limit)


def reference_jax(x, wk, wq):
    hp = lax.Precision.HIGHEST
    key = jnp.matmul(x, wk, precision=hp)
    query = jnp.matmul(x, wq, precision=hp)
    d_k = jnp.float32(query.shape[-1])
    data = jnp.einsum("bik,bjk->bij", query, key, precision=hp) / jnp.sqrt(d_k)
    data = jnp.where(data > 0, data, 0.2 * data)
    att = jax.nn.softmax(data, axis=2)
    att = jnp.mean(att, axis=0)
    return 0.5 * (att + att.T)


if __name__ == "__main__":
    B, N, F = 2, 16, 32   # small shapes; module default num_features=128 also works

    root = jax.random.PRNGKey(0)
    k_x, k_wk, k_wq = jax.random.split(root, 3)

    x = jax.random.normal(k_x, (B, N, F), jnp.float32)
    weight_key = _xavier_uniform(k_wk, (F, 4), gain=1.414)
    weight_query = _xavier_uniform(k_wq, (F, 4), gain=1.414)

    out = latent_correlation_layer(x, weight_key, weight_query)
    out = jax.block_until_ready(out)

    ref = reference_jax(x, weight_key, weight_query)
    assert out.shape == (N, N)
    assert jnp.allclose(out, ref, atol=1e-4, rtol=1e-4), "mismatch vs reference"

    print("KERNEL_OK")
</pallas_src>

<mosaic_0001>
module attributes {stable_mosaic.version = 11 : i64} {
  func.func @_latent_corr_kernel(%arg0: i32, %arg1: i32, %arg2: memref<2x128x32xf32, #tpu.memory_space<vmem>>, %arg3: memref<32x32xf32, #tpu.memory_space<vmem>>, %arg4: memref<128x128xf32, #tpu.memory_space<vmem>>) attributes {dimension_semantics = [#tpu.dimension_semantics<parallel>, #tpu.dimension_semantics<arbitrary>], iteration_bounds = array<i64: 1, 1>, scalar_prefetch = 0 : i64, scratch_operands = 0 : i64, tpu.core_type = #tpu.core_type<tc>, window_params = [{transform_indices = @transform_0, window_bounds = array<i64: 2, 128, 32>}, {pipeline_mode = #tpu.pipeline_mode<synchronous>, transform_indices = @transform_1, window_bounds = array<i64: 32, 32>}, {transform_indices = @transform_2, window_bounds = array<i64: 128, 128>}]} {
    %c0_i32 = arith.constant 0 : i32
    %0 = arith.cmpi eq, %arg1, %c0_i32 : i32
    %1 = arith.extui %0 : i1 to i32
    %c0_i32_0 = arith.constant 0 : i32
    %2 = arith.cmpi ne, %1, %c0_i32_0 : i32
    scf.if %2 {
      %cst_16 = arith.constant 0.000000e+00 : f32
      %34 = vector.broadcast %cst_16 : f32 to vector<128x128xf32>
      %c0_17 = arith.constant 0 : index
      %c0_18 = arith.constant 0 : index
      %35 = vector.load %arg4[%c0_17, %c0_18] : memref<128x128xf32, #tpu.memory_space<vmem>>, vector<128x128xf32>
      tpu.vector_store %arg4[%c0_17, %c0_18], %34 {strides = array<i32>} : memref<128x128xf32, #tpu.memory_space<vmem>>, vector<128x128xf32>,
    } else {
    }
    %c0 = arith.constant 0 : index
    %c0_1 = arith.constant 0 : index
    %c0_2 = arith.constant 0 : index
    %3 = vector.load %arg2[%c0, %c0_1, %c0_2] : memref<2x128x32xf32, #tpu.memory_space<vmem>>, vector<2x128x32xf32>
    %c0_3 = arith.constant 0 : index
    %c0_4 = arith.constant 0 : index
    %4 = vector.load %arg3[%c0_3, %c0_4] : memref<32x32xf32, #tpu.memory_space<vmem>>, vector<32x32xf32>
    %5 = vector.shape_cast %3 : vector<2x128x32xf32> to vector<256x32xf32>
    %cst = arith.constant dense<0.000000e+00> : vector<256x32xf32>
    %6 = tpu.matmul %5, %4, %cst {dimension_numbers = #tpu.dot_dimension_numbers<[1], [0], [0], [1], [0, 0, 1, 1], [], []>, precision = #tpu.contract_precision<fp32>} : vector<256x32xf32>, vector<32x32xf32>, vector<256x32xf32> -> vector<256x32xf32>
    %7 = vector.shape_cast %6 : vector<256x32xf32> to vector<2x128x32xf32>
    "tpu.trace_start"() <{level = 10 : i32, message = "bif,bjf->bij"}> : () -> ()
    %cst_5 = arith.constant dense<0.000000e+00> : vector<2x128x128xf32>
    %8 = tpu.matmul %7, %3, %cst_5 {dimension_numbers = #tpu.dot_dimension_numbers<[2], [2], [1], [1], [0, 0, 0, 1, 1, 1], [0], [0]>, precision = #tpu.contract_precision<fp32>} : vector<2x128x32xf32>, vector<2x128x32xf32>, vector<2x128x128xf32> -> vector<2x128x128xf32>
    "tpu.trace_stop"() : () -> ()
    %cst_6 = arith.constant 2.000000e-01 : f32
    %9 = vector.broadcast %cst_6 : f32 to vector<2x128x128xf32>
    %10 = arith.mulf %9, %8 : vector<2x128x128xf32>
    %11 = arith.maximumf %8, %10 : vector<2x128x128xf32>
    %12 = tpu.iota {dimensions = array<i32: 2>} : vector<1x1x128xi32>
    %c16_i32 = arith.constant 16 : i32
    %13 = vector.broadcast %c16_i32 : i32 to vector<1x1x128xi32>
    %14 = arith.cmpi slt, %12, %13 : vector<1x1x128xi32>
    %cst_7 = arith.constant 0.000000e+00 : f32
    %cst_8 = arith.constant -1.000000e+30 : f32
    %15 = vector.broadcast %cst_7 : f32 to vector<1x1x128xf32>
    %16 = vector.broadcast %cst_8 : f32 to vector<1x1x128xf32>
    %17 = arith.select %14, %15, %16 : vector<1x1x128xi1>, vector<1x1x128xf32>
    %18 = vector.broadcast %17 : vector<1x1x128xf32> to vector<2x128x128xf32>
    %19 = arith.addf %11, %18 : vector<2x128x128xf32>
    %cst_9 = arith.constant dense<0xFF800000> : vector<2x128xf32>
    %20 = vector.multi_reduction <maximumf>, %19, %cst_9 [2] : vector<2x128x128xf32> to vector<2x128xf32>
    %21 = vector.shape_cast %20 : vector<2x128xf32> to vector<2x128x1xf32>
    %22 = vector.broadcast %21 : vector<2x128x1xf32> to vector<2x128x128xf32>
    %23 = arith.subf %19, %22 : vector<2x128x128xf32>
    %24 = math.exp %23 : vector<2x128x128xf32>
    %cst_10 = arith.constant dense<0.000000e+00> : vector<2x128xf32>
    %25 = vector.multi_reduction <add>, %24, %cst_10 [2] : vector<2x128x128xf32> to vector<2x128xf32>
    %26 = vector.shape_cast %25 : vector<2x128xf32> to vector<2x128x1xf32>
    %27 = tpu.reciprocal %26 : vector<2x128x1xf32> -> vector<2x128x1xf32>
    %28 = vector.broadcast %27 : vector<2x128x1xf32> to vector<2x128x128xf32>
    %29 = arith.mulf %24, %28 : vector<2x128x128xf32>
    %c0_11 = arith.constant 0 : index
    %c0_12 = arith.constant 0 : index
    %30 = vector.load %arg4[%c0_11, %c0_12] : memref<128x128xf32, #tpu.memory_space<vmem>>, vector<128x128xf32>
    %cst_13 = arith.constant dense<0.000000e+00> : vector<128x128xf32>
    %31 = vector.multi_reduction <add>, %29, %cst_13 [0] : vector<2x128x128xf32> to vector<128x128xf32>
    %32 = arith.addf %30, %31 : vector<128x128xf32>
    %c0_14 = arith.constant 0 : index
    %c0_15 = arith.constant 0 : index
    %33 = vector.load %arg4[%c0_14, %c0_15] : memref<128x128xf32, #tpu.memory_space<vmem>>, vector<128x128xf32>
    tpu.vector_store %arg4[%c0_14, %c0_15], %32 {strides = array<i32>} : memref<128x128xf32, #tpu.memory_space<vmem>>, vector<128x128xf32>,
    return
  }
  func.func @transform_0(%arg0: i32, %arg1: i32) -> (i32, i32, i32) {
    %c0_i32 = arith.constant 0 : i32
    %c0_i32_0 = arith.constant 0 : i32
    %c0_i32_1 = arith.constant 0 : i32
    return %arg1, %c0_i32, %c0_i32_0 : i32, i32, i32
  }
  func.func @transform_1(%arg0: i32, %arg1: i32) -> (i32, i32) {
    %c0_i32 = arith.constant 0 : i32
    %c0_i32_0 = arith.constant 0 : i32
    %c0_i32_1 = arith.constant 0 : i32
    return %c0_i32, %c0_i32_0 : i32, i32
  }
  func.func @transform_2(%arg0: i32, %arg1: i32) -> (i32, i32) {
    %c0_i32 = arith.constant 0 : i32
    %c0_i32_0 = arith.constant 0 : i32
    return %arg0, %c0_i32 : i32, i32
  }
}

</mosaic_0001>

<bundles_post_ra>
// kernel: tpu_custom_call.1
= control target key start
LH: loop header
LB: loop body
LE: loop exit
PB: predicated region body
PF: predicated region fallthrough
CT: control target
= control target key end

     0   :  { %vm68_vm0 = vcmask 261120   ;;  %s9540_s0 = inlined_call_operand.vmem [shape: f32[2,128,32], index: 0, kind: input, shape index: {}]   ;;  %s9541_s1 = inlined_call_operand.vmem [shape: f32[32,32], index: 1, kind: input, shape index: {}]   ;;  %s9542_s2 = inlined_call_operand.hbm [shape: f32[128,128], index: 2, kind: output, shape index: {}]  }
   0x1   :  { %v64_v0 = vld [vmem:[%s9541_s1] sm:$0xff]  ;;  %v65_v1 = vld [vmem:[%s9541_s1 + $0x8] sm:$0xff]  ;;  %v7664_v2 = vld [vmem:[%s9541_s1 + $0x10] sm:$0xff] }
   0x2   :  { %v166_v3 = vand.u32 4294901760, %v64_v0  ;;  %v169_v4 = vand.u32 4294901760, %v65_v1  ;;  %v7669_v5 = vld [vmem:[%s9541_s1 + $0x18] sm:$0xff]  ;;  %v9544_v6 = vand.u32 4294901760, %v7664_v2  ;;  %v32_v7 = vld [vmem:[%s9540_s0] sm:$0xff]  ;;  %v33_v8 = vld [vmem:[%s9540_s0 + $0x8] sm:$0xff] }
   0x3   :  { %v9543_v9 = vand.u32 4294901760, %v7669_v5  ;;  %v70_v10 = vsel %vm68_vm0, %v32_v7, 0  ;;  %v73_v11 = vsel %vm68_vm0, %v33_v8, 0  ;;  %v34_v12 = vld [vmem:[%s9540_s0 + $0x10] sm:$0xff]  ;;  %v35_v13 = vld [vmem:[%s9540_s0 + $0x18] sm:$0xff]  ;;  %v36_v18 = vld [vmem:[%s9540_s0 + $0x20] sm:$0xff] }
   0x4   :  { %v7687_v14 = vpack.c.bf16 %v169_v4, %v166_v3  ;;  %v7689_v15 = vand.u32 4294901760, %v70_v10  ;;  %v7691_v16 = vand.u32 4294901760, %v73_v11  ;;  %v7693_v17 = vsub.f32 %v64_v0, %v166_v3  ;;  %v37_v19 = vld [vmem:[%s9540_s0 + $0x28] sm:$0xff]  ;;  %v38_v40 = vld [vmem:[%s9540_s0 + $0x30] sm:$0xff]  ;;  %v39_v49 = vld [vmem:[%s9540_s0 + $0x38] sm:$0xff] }
   0x5   :  { %v7705_v20 = vpack.c.bf16 %v9543_v9, %v9544_v6  ;;  %v7707_v21 = vsub.f32 %v65_v1, %v169_v4  ;;  %v76_v22 = vsel %vm68_vm0, %v34_v12, 0  ;;  %v79_v23 = vsel %vm68_vm0, %v35_v13, 0  ;;  %v40_v54 = vld [vmem:[%s9540_s0 + $0x40] sm:$0xff]  ;;  %v41_v59 = vld [vmem:[%s9540_s0 + $0x48] sm:$0xff]  ;;  %v42_v60 = vld [vmem:[%s9540_s0 + $0x50] sm:$0xff] }
   0x6   :  { %6728 = vmatprep.subr.bf16.mxu1 %v7687_v14  ;;  %6752 = vmatprep.subr.bf16.mxu0 %v7687_v14  ;;  %v7714_v24 = vsub.f32 %v70_v10, %v7689_v15  ;;  %v7717_v25 = vsub.f32 %v73_v11, %v7691_v16  ;;  %v557_v26 = vand.u32 4294901760, %v7693_v17  ;;  %v7720_v27 = vand.u32 4294901760, %v76_v22 }
   0x7   :  { %6730 = vmatpush3.bf16.msra.mxu1 %v7687_v14  ;;  %6754 = vmatpush3.bf16.msra.mxu0 %v7687_v14  ;;  %v564_v28 = vand.u32 4294901760, %v7707_v21  ;;  %v7725_v29 = vand.u32 4294901760, %v79_v23  ;;  %v82_v30 = vsel %vm68_vm0, %v36_v18, 0  ;;  %v85_v31 = vsel %vm68_vm0, %v37_v19, 0 }
   0x8   :  { %6732 = vmatprep.subr.bf16.mxu1 %v7705_v20  ;;  %6756 = vmatprep.subr.bf16.mxu0 %v7705_v20  ;;  %v7732_v32 = vand.u32 4294901760, %v7714_v24  ;;  %v7735_v33 = vand.u32 4294901760, %v7717_v25  ;;  %v558_v34 = vsub.f32 %v7693_v17, %v557_v26  ;;  %v7739_v35 = vsub.f32 %v76_v22, %v7720_v27 }
   0x9   :  { %v565_v36 = vsub.f32 %v7707_v21, %v564_v28  ;;  %v6759_v37 = vpack.c.bf16 %v564_v28, %v557_v26  ;;  %v7743_v38 = vsub.f32 %v79_v23, %v7725_v29  ;;  %v7745_v39 = vand.u32 4294901760, %v82_v30 }
   0xa   :  { %9801 = vst [vmem:[#allocation5_spill] sm:$0xff] %v7732_v32  ;;  %9802 = vst [vmem:[#allocation6_spill] sm:$0xff] %v7735_v33  ;;  %v237_v41 = vsub.f32 %v7714_v24, %v7732_v32  ;;  %v247_v42 = vsub.f32 %v7717_v25, %v7735_v33  ;;  %5895 = vmatprep.mubr.f32.mxu0 %v7732_v32  ;;  %v559_v43 = vand.u32 4294901760, %v558_v34  ;;  %v7756_v44 = vand.u32 4294901760, %v7739_v35 }
   0xb   :  { %6734 = vmatpush3.bf16.msra.mxu1 %v7705_v20  ;;  %6758 = vmatpush3.bf16.msra.mxu0 %v7705_v20  ;;  %v566_v45 = vand.u32 4294901760, %v565_v36  ;;  %v7761_v46 = vand.u32 4294901760, %v7743_v38  ;;  %v7764_v47 = vsub.f32 %v82_v30, %v7745_v39  ;;  %v7766_v48 = vand.u32 4294901760, %v85_v31 }
   0xc   :  { %9803 = vst [vmem:[#allocation7_spill] sm:$0xff] %v7756_v44  ;;  %v238_v50 = vand.u32 4294901760, %v237_v41  ;;  %v248_v51 = vand.u32 4294901760, %v247_v42  ;;  %6760 = vmatprep.subr.bf16.mxu0 %v6759_v37  ;;  %v257_v52 = vsub.f32 %v7739_v35, %v7756_v44  ;;  %v88_v53 = vsel %vm68_vm0, %v38_v40, 0 }
   0xd   :  { %9804 = vst [vmem:[#allocation8_spill] sm:$0xff] %v7761_v46  ;;  %9805 = vst [vmem:[#allocation9_spill] sm:$0xff] %v7764_v47  ;;  %v6735_v55 = vpack.c.bf16 %v566_v45, %v559_v43  ;;  %v267_v56 = vsub.f32 %v7743_v38, %v7761_v46  ;;  %v7780_v57 = vand.u32 4294901760, %v7764_v47  ;;  %v7783_v58 = vsub.f32 %v85_v31, %v7766_v48 }
   0xf   :  { %9806 = vst [vmem:[#allocation10_spill] sm:$0xff] %v7780_v57  ;;  %9807 = vst [vmem:[#allocation11_spill] sm:$0xff] %v7783_v58 }
  0x10   :  { %7 = vsyncpa [#allocation3], 0  ;;  %5727 = vmatprep.mubr.f32.mxu1 %v238_v50  ;;  %v7791_v61 = vpack.c.bf16 %v248_v51, %v238_v50  ;;  %5896 = vmatmul.mubr.f32.vlgmr.msra.gmra.mrb[0].mxu0 %v7735_v33  ;;  %v7794_v62 = vand.u32 4294901760, %v257_v52  ;;  %v7796_v63 = vand.u32 4294901760, %v88_v53  ;;  %v91_v0 = vsel %vm68_vm0, %v39_v49, 0  ;;  %v43_v8 = vld [vmem:[%s9540_s0 + $0x58] sm:$0xff] }
  0x11   :  { %5728 = vmatmul.mubr.f32.vlgmr.msra.gmra.mrb[0].mxu1 %v248_v51  ;;  %6736 = vmatprep.subr.bf16.mxu1 %v6735_v55  ;;  %v7799_v1 = vand.u32 4294901760, %v267_v56  ;;  %v277_v3 = vsub.f32 %v7764_v47, %v7780_v57  ;;  %v7804_v4 = vand.u32 4294901760, %v7783_v58  ;;  %v7806_v7 = vand.u32 4294901760, %v91_v0  ;;  %v44_v26 = vld [vmem:[%s9540_s0 + $0x60] sm:$0xff]  ;;  %v45_v42 = vld [vmem:[%s9540_s0 + $0x68] sm:$0xff] }
  0x12   :  { %9808 = vst [vmem:[#allocation12_spill] sm:$0xff] %v7791_v61  ;;  %9809 = vst [vmem:[#allocation13_spill] sm:$0xff] %v7794_v62  ;;  %6738 = vmatpush3.bf16.msra.mxu1 %v6735_v55  ;;  %6762 = vmatpush3.bf16.msra.mxu0 %v6759_v37  ;;  %v7812_v10 = vsub.f32 %v88_v53, %v7796_v63  ;;  %v94_v11 = vsel %vm68_vm0, %v40_v54, 0  ;;  %v97_v12 = vsel %vm68_vm0, %v41_v59, 0  ;;  %v100_v13 = vsel %vm68_vm0, %v42_v60, 0  ;;  %v46_v55 = vld [vmem:[%s9540_s0 + $0x70] sm:$0xff] }
  0x13   :  { %9810 = vst [vmem:[#allocation14_spill] sm:$0xff] %v7799_v1  ;;  %9811 = vst [vmem:[#allocation15_spill] sm:$0xff] %v7804_v4  ;;  %5730 = vmatprep.mubr.f32.mxu1 %v7794_v62  ;;  %5898 = vmatprep.mubr.f32.mxu0 %v7756_v44  ;;  %v7819_v18 = vand.u32 4294901760, %v277_v3  ;;  %v287_v19 = vsub.f32 %v7783_v58, %v7804_v4  ;;  %v7824_v22 = vsub.f32 %v91_v0, %v7806_v7  ;;  %v48_v6 = vld [vmem:[%s9540_s0 + $0x80] sm:$0xff]  ;;  %v63_v58 = vld [vmem:[%s9540_s0 + $0xf8] sm:$0xff] }
  0x14   :  { %9812 = vst [vmem:[#allocation16_spill] sm:$0xff] %v7812_v10  ;;  %v7826_v23 = vand.u32 4294901760, %v94_v11  ;;  %5899 = vmatmul.mubr.f32.gmra.mrb[2].mxu0 %v7761_v46  ;;  %v7833_v28 = vand.u32 4294901760, %v7812_v10  ;;  %v7835_v30 = vand.u32 4294901760, %v97_v12  ;;  %v7837_v31 = vand.u32 4294901760, %v100_v13 }
  0x15   :  { %9813 = vst [vmem:[#allocation17_spill] sm:$0xff] %v7819_v18  ;;  %9814 = vst [vmem:[#allocation18_spill] sm:$0xff] %v7824_v22  ;;  %v103_v34 = vsel %vm68_vm0, %v43_v8, 0  ;;  %5731 = vmatmul.mubr.f32.gmra.mrb[2].mxu1 %v7799_v1  ;;  %5901 = vmatprep.mubr.f32.mxu0 %v7780_v57  ;;  %v7842_v36 = vand.u32 4294901760, %v287_v19  ;;  %v7845_v37 = vand.u32 4294901760, %v7824_v22  ;;  %v106_v50 = vsel %vm68_vm0, %v44_v26, 0 }
  0x16   :  { %9815 = vst [vmem:[#allocation19_spill] sm:$0xff] %v7833_v28  ;;  %v7848_v40 = vsub.f32 %v94_v11, %v7826_v23  ;;  %v7850_v41 = vand.u32 4294901760, %v103_v34  ;;  %5733 = vmatprep.mubr.f32.mxu1 %v7819_v18  ;;  %v297_v43 = vsub.f32 %v7812_v10, %v7833_v28  ;;  %v7859_v45 = vsub.f32 %v97_v12, %v7835_v30 }
  0x17   :  { %9816 = vst [vmem:[#allocation20_spill] sm:$0xff] %v7842_v36  ;;  %9817 = vst [vmem:[#allocation21_spill] sm:$0xff] %v7845_v37  ;;  %v7862_v49 = vsub.f32 %v100_v13, %v7837_v31  ;;  %v307_v51 = vsub.f32 %v7824_v22, %v7845_v37  ;;  %v7873_v54 = vand.u32 4294901760, %v106_v50  ;;  %v109_v0 = vsel %vm68_vm0, %v45_v42, 0  ;;  %v47_v13 = vld [vmem:[%s9540_s0 + $0x78] sm:$0xff] }
  0x18   :  { %9818 = vst [vmem:[#allocation22_spill] sm:$0xff] %v7848_v40  ;;  %9819 = vst [vmem:[#allocation23_spill] sm:$0xff] %v7859_v45  ;;  %v7868_v52 = vand.u32 4294901760, %v7848_v40  ;;  %v7871_v53 = vsub.f32 %v103_v34, %v7850_v41  ;;  %5902 = vmatmul.mubr.f32.gmra.mrb[4].mxu0 %v7804_v4  ;;  %v7879_v56 = vand.u32 4294901760, %v297_v43  ;;  %v7882_v59 = vand.u32 4294901760, %v7859_v45 }
  0x19   :  { %9820 = vst [vmem:[#allocation24_spill] sm:$0xff] %v7862_v49  ;;  %v7885_v60 = vand.u32 4294901760, %v7862_v49  ;;  %5734 = vmatmul.mubr.f32.gmra.mrb[4].mxu1 %v7842_v36  ;;  %5904 = vmatprep.mubr.f32.mxu0 %v7833_v28  ;;  %v7890_v3 = vand.u32 4294901760, %v307_v51  ;;  %v7898_v12 = vsub.f32 %v106_v50, %v7873_v54  ;;  %v7908_v34 = vand.u32 4294901760, %v109_v0  ;;  %v49_v28 = vld [vmem:[%s9540_s0 + $0x88] sm:$0xff] }
  0x1a   :  { %9821 = vst [vmem:[#allocation25_spill] sm:$0xff] %v7868_v52  ;;  %9822 = vst [vmem:[#allocation26_spill] sm:$0xff] %v7871_v53  ;;  %v317_v8 = vsub.f32 %v7848_v40, %v7868_v52  ;;  %v7895_v11 = vand.u32 4294901760, %v7871_v53  ;;  %5736 = vmatprep.mubr.f32.mxu1 %v7879_v56  ;;  %v327_v19 = vsub.f32 %v7859_v45, %v7882_v59  ;;  %v112_v42 = vsel %vm68_vm0, %v46_v55, 0 }
  0x1b   :  { %9823 = vst [vmem:[#allocation27_spill] sm:$0xff] %v7879_v56  ;;  %9824 = vst [vmem:[#allocation28_spill] sm:$0xff] %v7882_v59  ;;  %v337_v26 = vsub.f32 %v7862_v49, %v7885_v60  ;;  %v7916_v51 = vand.u32 4294901760, %v7898_v12  ;;  %v7918_v9 = vand.u32 4294901760, %v112_v42  ;;  %v115_v4 = vsel %vm68_vm0, %v47_v13, 0 }
  0x1c   :  { %9825 = vst [vmem:[#allocation29_spill] sm:$0xff] %v7885_v60  ;;  %9826 = vst [vmem:[#allocation30_spill] sm:$0xff] %v7890_v3  ;;  %v7911_v43 = vand.u32 4294901760, %v317_v8  ;;  %v347_v50 = vsub.f32 %v7871_v53, %v7895_v11  ;;  %5905 = vmatmul.mubr.f32.gmra.mrb[6].mxu0 %v7845_v37  ;;  %v7927_v55 = vand.u32 4294901760, %v327_v19  ;;  %v7930_v8 = vsub.f32 %v109_v0, %v7908_v34 }
  0x1d   :  { %9827 = vst [vmem:[#allocation31_spill] sm:$0xff] %v7895_v11  ;;  %9828 = vst [vmem:[#allocation32_spill] sm:$0xff] %v7898_v12  ;;  %5737 = vmatmul.mubr.f32.gmra.mrb[6].mxu1 %v7890_v3  ;;  %5907 = vmatprep.mubr.f32.mxu0 %v7868_v52  ;;  %v7935_v57 = vand.u32 4294901760, %v337_v26  ;;  %v357_v46 = vsub.f32 %v7898_v12, %v7916_v51  ;;  %v7940_v44 = vsub.f32 %v112_v42, %v7918_v9  ;;  %v50_v42 = vld [vmem:[%s9540_s0 + $0x90] sm:$0xff] }
  0x1e   :  { %9829 = vst [vmem:[#allocation33_spill] sm:$0xff] %v7911_v43  ;;  %9830 = vst [vmem:[#allocation34_spill] sm:$0xff] %v7916_v51  ;;  %v7942_v37 = vand.u32 4294901760, %v115_v4  ;;  %5739 = vmatprep.mubr.f32.mxu1 %v7911_v43  ;;  %v7946_v0 = vand.u32 4294901760, %v7930_v8  ;;  %v118_v13 = vsel %vm68_vm0, %v48_v6, 0  ;;  %v121_v19 = vsel %vm68_vm0, %v49_v28, 0 }
  0x1f   :  { %9831 = vst [vmem:[#allocation35_spill] sm:$0xff] %v7927_v55  ;;  %9832 = vst [vmem:[#allocation36_spill] sm:$0xff] %v7930_v8  ;;  %v9836_v26 = vand.u32 4294901760, %v7664_v2  ;;  %v7958_v33 = vand.u32 4294901760, %v347_v50  ;;  %v7961_v32 = vand.u32 4294901760, %v7940_v44  ;;  %v7966_v6 = vand.u32 4294901760, %v118_v13 }
  0x20   :  { %9833 = vst [vmem:[#allocation37_spill] sm:$0xff] %v7935_v57  ;;  %9834 = vst [vmem:[#allocation38_spill] sm:$0xff] %v7940_v44  ;;  %v7964_v43 = vsub.f32 %v115_v4, %v7942_v37  ;;  %5908 = vmatmul.mubr.f32.gmra.mrb[8].mxu0 %v7882_v59  ;;  %v7971_v28 = vand.u32 4294901760, %v121_v19  ;;  %v9840_v50 = vand.u32 4294901760, %v7669_v5  ;;  %v124_v36 = vsel %vm68_vm0, %v50_v42, 0 }
  0x21   :  { %9835 = vst [vmem:[#allocation39_spill] sm:$0xff] %v7946_v0  ;;  %v7953_v52 = vsub.f32 %v7664_v2, %v9836_v26  ;;  %9837 = vst [vmem:[#allocation40_spill] sm:$0xff] %v7958_v33  ;;  %v367_v2 = vsub.f32 %v7930_v8, %v7946_v0  ;;  %5740 = vmatmul.mubr.f32.gmra.mrb[8].mxu1 %v7927_v55  ;;  %5910 = vmatprep.mubr.f32.mxu0 %v7885_v60  ;;  %v7991_v18 = vand.u32 4294901760, %v357_v46  ;;  %v51_v55 = vld [vmem:[%s9540_s0 + $0x98] sm:$0xff] }
  0x22   :  { %9838 = vst [vmem:[#allocation41_spill] sm:$0xff] %v7961_v32  ;;  %9839 = vst [vmem:[#allocation42_spill] sm:$0xff] %v7964_v43  ;;  %v7977_v3 = vsub.f32 %v7669_v5, %v9840_v50  ;;  %v377_v4 = vsub.f32 %v7940_v44, %v7961_v32  ;;  %v7984_v59 = vand.u32 4294901760, %v7964_v43  ;;  %v7987_v56 = vsub.f32 %v118_v13, %v7966_v6 }
  0x23   :  { %v571_v26 = vand.u32 4294901760, %v7953_v52  ;;  %5742 = vmatprep.mubr.f32.mxu1 %v7935_v57  ;;  %9843 = vst [vmem:[#allocation45_spill] sm:$0xff] %v7991_v18  ;;  %v7994_v5 = vsub.f32 %v121_v19, %v7971_v28  ;;  %v8001_v1 = vand.u32 4294901760, %v367_v2  ;;  %v8008_v46 = vand.u32 4294901760, %v124_v36  ;;  %v52_v19 = vld [vmem:[%s9540_s0 + $0xa0] sm:$0xff] }
  0x24   :  { %9841 = vst [vmem:[#allocation43_spill] sm:$0xff] %v7984_v59  ;;  %9842 = vst [vmem:[#allocation44_spill] sm:$0xff] %v7987_v56  ;;  %v578_v60 = vand.u32 4294901760, %v7977_v3  ;;  %v387_v13 = vsub.f32 %v7964_v43, %v7984_v59  ;;  %v8006_v42 = vand.u32 4294901760, %v7987_v56  ;;  %5911 = vmatmul.mubr.f32.gmra.mrb[10].mxu0 %v7895_v11  ;;  %v53_v43 = vld [vmem:[%s9540_s0 + $0xa8] sm:$0xff]  ;;  %v8023_v44 = vand.u32 4294901760, %v377_v4 }
  0x25   :  { %9844 = vst [vmem:[#allocation46_spill] sm:$0xff] %v7994_v5  ;;  %v572_v50 = vsub.f32 %v7953_v52, %v571_v26  ;;  %9845 = vst [vmem:[#allocation47_spill] sm:$0xff] %v8001_v1  ;;  %v8015_v57 = vand.u32 4294901760, %v7994_v5  ;;  %5743 = vmatmul.mubr.f32.gmra.mrb[10].mxu1 %v7958_v33  ;;  %5913 = vmatprep.mubr.f32.mxu0 %v7916_v51  ;;  %v8028_v8 = vsub.f32 %v124_v36, %v8008_v46  ;;  %v54_v4 = vld [vmem:[%s9540_s0 + $0xb0] sm:$0xff]  ;;  %v55_v36 = vld [vmem:[%s9540_s0 + $0xb8] sm:$0xff] }
  0x26   :  { %9846 = vst [vmem:[#allocation48_spill] sm:$0xff] %v8006_v42  ;;  %v579_v2 = vsub.f32 %v7977_v3, %v578_v60  ;;  %v6763_v61 = vpack.c.bf16 %v578_v60, %v571_v26  ;;  %9848 = vst [vmem:[#allocation50_spill] sm:$0xff] %v8023_v44  ;;  %v397_v11 = vsub.f32 %v7987_v56, %v8006_v42  ;;  %5745 = vmatprep.mubr.f32.mxu1 %v7991_v18 }
  0x27   :  { %9847 = vst [vmem:[#allocation49_spill] sm:$0xff] %v8015_v57  ;;  %v573_v62 = vand.u32 4294901760, %v572_v50  ;;  %9849 = vst [vmem:[#allocation51_spill] sm:$0xff] %v8028_v8  ;;  %v127_v50 = vsel %vm68_vm0, %v51_v55, 0  ;;  %v8032_v60 = vand.u32 4294901760, %v387_v13  ;;  %v130_v51 = vsel %vm68_vm0, %v52_v19, 0 }
  0x28   :  { %v580_v26 = vand.u32 4294901760, %v579_v2  ;;  %6764 = vmatprep.subr.bf16.mxu0 %v6763_v61  ;;  %v8034_v12 = vand.u32 4294901760, %v127_v50  ;;  %v407_v55 = vsub.f32 %v7994_v5, %v8015_v57  ;;  %v8046_v13 = vand.u32 4294901760, %v8028_v8  ;;  %5914 = vmatmul.mubr.f32.gmra.mrb[12].mxu0 %v7946_v0  ;;  %v57_v5 = vld [vmem:[%s9540_s0 + $0xc8] sm:$0xff] }
  0x29   :  { %9850 = vst [vmem:[#allocation52_spill] sm:$0xff] %v8032_v60  ;;  %6766 = vmatpush3.bf16.msra.mxu0 %v6763_v61  ;;  %v8048_v2 = vand.u32 4294901760, %v130_v51  ;;  %v133_v18 = vsel %vm68_vm0, %v53_v43, 0  ;;  %v8052_v19 = vand.u32 4294901760, %v397_v11  ;;  %v56_v61 = vld [vmem:[%s9540_s0 + $0xc0] sm:$0xff]  ;;  %5746 = vmatmul.mubr.f32.gmra.mrb[12].mxu1 %v8001_v1  ;;  %v136_v43 = vsel %vm68_vm0, %v54_v4, 0 }
  0x2a   :  { %9851 = vst [vmem:[#allocation53_spill] sm:$0xff] %v8046_v13  ;;  %v6739_v33 = vpack.c.bf16 %v580_v26, %v573_v62  ;;  %v8055_v56 = vsub.f32 %v127_v50, %v8034_v12  ;;  %v8057_v53 = vand.u32 4294901760, %v133_v18  ;;  %6768 = vmatprep.subr.bf16.mxu0 %v7687_v14  ;;  %5916 = vmatprep.mubr.f32.mxu0 %v7961_v32  ;;  %v139_v50 = vsel %vm68_vm0, %v55_v36, 0 }
  0x2b   :  { %9852 = vst [vmem:[#allocation54_spill] sm:$0xff] %v8052_v19  ;;  %v417_v62 = vsub.f32 %v8028_v8, %v8046_v13  ;;  %v8071_v11 = vsub.f32 %v130_v51, %v8048_v2  ;;  %5748 = vmatprep.mubr.f32.mxu1 %v8023_v44  ;;  %v8082_v32 = vand.u32 4294901760, %v136_v43  ;;  %v8084_v1 = vand.u32 4294901760, %v139_v50  ;;  %v58_v51 = vld [vmem:[%s9540_s0 + $0xd0] sm:$0xff] }
  0x2c   :  { %9853 = vst [vmem:[#allocation55_spill] sm:$0xff] %v8055_v56  ;;  %6740 = vmatprep.subr.bf16.mxu1 %v6739_v33  ;;  %v8077_v26 = vand.u32 4294901760, %v8055_v56  ;;  %v8080_v0 = vsub.f32 %v133_v18, %v8057_v53  ;;  %v142_v36 = vsel %vm68_vm0, %v56_v61, 0  ;;  %v145_v44 = vsel %vm68_vm0, %v57_v5, 0  ;;  %5917 = vmatmul.mubr.f32.gmra.mrb[14].mxu0 %v7984_v59 }
  0x2d   :  { %9854 = vst [vmem:[#allocation56_spill] sm:$0xff] %v8071_v11  ;;  %6742 = vmatpush3.bf16.msra.mxu1 %v6739_v33  ;;  %v8090_v4 = vand.u32 4294901760, %v8071_v11  ;;  %v8095_v18 = vand.u32 4294901760, %v407_v55  ;;  %v8101_v49 = vsub.f32 %v136_v43, %v8082_v32  ;;  %v8104_v45 = vsub.f32 %v139_v50, %v8084_v1  ;;  %5919 = vmatprep.mubr.f32.mxu0 %v8006_v42  ;;  %v59_v43 = vld [vmem:[%s9540_s0 + $0xd8] sm:$0xff] }
  0x2e   :  { %9855 = vst [vmem:[#allocation57_spill] sm:$0xff] %v8077_v26  ;;  %9856 = vst [vmem:[#allocation58_spill] sm:$0xff] %v8080_v0  ;;  %v8098_v8 = vand.u32 4294901760, %v8080_v0  ;;  %5749 = vmatmul.mubr.f32.gmra.mrb[14].mxu1 %v8032_v60  ;;  %v427_v33 = vsub.f32 %v8055_v56, %v8077_v26  ;;  %v8110_v5 = vand.u32 4294901760, %v142_v36  ;;  %v8112_v55 = vand.u32 4294901760, %v145_v44 }
  0x2f   :  { %9857 = vst [vmem:[#allocation59_spill] sm:$0xff] %v8090_v4  ;;  %9858 = vst [vmem:[#allocation60_spill] sm:$0xff] %v8095_v18  ;;  %v148_v61 = vsel %vm68_vm0, %v58_v51, 0  ;;  %5751 = vmatprep.mubr.f32.mxu1 %v8052_v19  ;;  %v8119_v50 = vand.u32 4294901760, %v417_v62  ;;  %v437_v59 = vsub.f32 %v8071_v11, %v8090_v4  ;;  %v8124_v42 = vand.u32 4294901760, %v8101_v49  ;;  %v60_v19 = vld [vmem:[%s9540_s0 + $0xe0] sm:$0xff] }
  0x30   :  { %9859 = vst [vmem:[#allocation61_spill] sm:$0xff] %v8098_v8  ;;  %9860 = vst [vmem:[#allocation62_spill] sm:$0xff] %v8101_v49  ;;  %v447_v60 = vsub.f32 %v8080_v0, %v8098_v8  ;;  %v8129_v56 = vsub.f32 %v142_v36, %v8110_v5  ;;  %v8131_v51 = vand.u32 4294901760, %v148_v61  ;;  %v61_v62 = vld [vmem:[%s9540_s0 + $0xe8] sm:$0xff]  ;;  %5920 = vmatmul.mubr.f32.gmra.mrb[16].mxu0 %v8015_v57  ;;  %v8141_v11 = vand.u32 4294901760, %v8104_v45 }
  0x31   :  { %9861 = vst [vmem:[#allocation63_spill] sm:$0xff] %v8104_v45  ;;  %9862 = vst [vmem:[#allocation64_spill] sm:$0xff] %v8119_v50  ;;  %v8144_v0 = vsub.f32 %v145_v44, %v8112_v55  ;;  %v151_v36 = vsel %vm68_vm0, %v59_v43, 0  ;;  %5922 = vmatprep.mubr.f32.mxu0 %v8046_v13  ;;  %v8149_v40 = vand.u32 4294901760, %v427_v33  ;;  %v457_v22 = vsub.f32 %v8101_v49, %v8124_v42  ;;  %v62_v44 = vld [vmem:[%s9540_s0 + $0xf0] sm:$0xff]  ;;  %s7637_s0 = smov [#allocation2]  }
  0x32   :  { %9863 = vst [vmem:[#allocation65_spill] sm:$0xff] %v8124_v42  ;;  %9864 = vst [vmem:[#allocation66_spill] sm:$0xff] %v8129_v56  ;;  %5752 = vmatmul.mubr.f32.gmra.mrb[16].mxu1 %v8095_v18  ;;  %v8154_v10 = vand.u32 4294901760, %v8129_v56  ;;  %v8156_v57 = vand.u32 4294901760, %v151_v36  ;;  %v8162_v43 = vand.u32 4294901760, %v437_v59  ;;  %v8165_v13 = vsub.f32 %v148_v61, %v8131_v51  ;;  %s5108_s1 = sshll.u32 %s7637_s0, 4  ;;  %s5109_s1 = int_to_ptr.vmem [resolvable:$true] %s5108_s1 }
  0x33   :  { %9865 = vst [vmem:[#allocation67_spill] sm:$0xff] %v8141_v11  ;;  %9866 = vst [vmem:[#allocation68_spill] sm:$0xff] %v8144_v0  ;;  %5754 = vmatprep.mubr.f32.mxu1 %v8119_v50  ;;  %v154_v33 = vsel %vm68_vm0, %v60_v19, 0  ;;  %v157_v18 = vsel %vm68_vm0, %v61_v62, 0  ;;  %v8169_v49 = vand.u32 4294901760, %v447_v60  ;;  %v467_v50 = vsub.f32 %v8104_v45, %v8141_v11  ;;  %s7612_s23 = scalar_lea.vmem %s5109_s1, 2048  ;;  %p7617_p1 = scmp.lt.s32.totalorder %s5109_s1, %s5109_s1 }
  0x34   :  { %9867 = vst [vmem:[#allocation69_spill] sm:$0xff] %v8149_v40  ;;  %9868 = vst [vmem:[#allocation70_spill] sm:$0xff] %v8154_v10  ;;  %5923 = vmatmul.mubr.f32.gmra.mrb[18].mxu0 %v8077_v26  ;;  %v8178_v59 = vand.u32 4294901760, %v8144_v0  ;;  %v8180_v61 = vand.u32 4294901760, %v154_v33  ;;  %v160_v19 = vsel %vm68_vm0, %v62_v44, 0  ;;  %v8185_v60 = vand.u32 4294901760, %v457_v22  ;;  %p7613_p0 = scmp.ne.s32.totalorder %s5109_s1, %s7612_s23  ;;  %p7618_p2 = scmp.lt.s32.totalorder %s7612_s23, %s7612_s23 }
  0x35   :  { %9869 = vst [vmem:[#allocation71_spill] sm:$0xff] %v8162_v43  ;;  %9870 = vst [vmem:[#allocation72_spill] sm:$0xff] %v8165_v13  ;;  %5925 = vmatprep.mubr.f32.mxu0 %v8090_v4  ;;  %v477_v62 = vsub.f32 %v8129_v56, %v8154_v10  ;;  %v8190_v26 = vsub.f32 %v151_v36, %v8156_v57  ;;  %v8192_v45 = vand.u32 4294901760, %v157_v18  ;;  %v8196_v47 = vand.u32 4294901760, %v8165_v13 }
  0x36   :  { %9871 = vst [vmem:[#allocation73_spill] sm:$0xff] %v8178_v59  ;;  %5755 = vmatmul.mubr.f32.gmra.mrb[18].mxu1 %v8149_v40  ;;  %9872 = vst [vmem:[#allocation74_spill] sm:$0xff] %v8185_v60  ;;  %v8199_v44 = vsub.f32 %v154_v33, %v8180_v61  ;;  %v8201_v40 = vand.u32 4294901760, %v160_v19  ;;  %v163_v22 = vsel %vm68_vm0, %v63_v58, 0  ;;  %v6743_v4 = vpack.c.bf16 %v7707_v21, %v7693_v17  ;;  %p7619_p3 = por %p7618_p2, %p7617_p1 }
  0x37   :  { %9873 = vst [vmem:[#allocation75_spill] sm:$0xff] %v8190_v26  ;;  %5757 = vmatprep.mubr.f32.mxu1 %v8162_v43  ;;  %9874 = vst [vmem:[#allocation76_spill] sm:$0xff] %v8196_v47  ;;  %v8207_v36 = vand.u32 4294901760, %v467_v50  ;;  %v487_v43 = vsub.f32 %v8144_v0, %v8178_v59  ;;  %v8214_v33 = vand.u32 4294901760, %v8190_v26  ;;  %v8217_v56 = vsub.f32 %v157_v18, %v8192_v45 }
  0x38   :  { %9875 = vst [vmem:[#allocation77_spill] sm:$0xff] %v8199_v44  ;;  %5926 = vmatmul.mubr.f32.gmra.mrb[20].mxu0 %v8098_v8  ;;  %v8219_v58 = vand.u32 4294901760, %v163_v22  ;;  %v8222_v17 = vand.u32 4294901760, %v477_v62  ;;  %v497_v21 = vsub.f32 %v8165_v13, %v8196_v47  ;;  %v8227_v50 = vand.u32 4294901760, %v8199_v44  ;;  %6744 = vmatprep.subr.bf16.mxu1 %v6743_v4  ;;  %p7620_p4 = pnand %p7619_p3, %p7613_p0 }
  0x39   :  { %9876 = vst [vmem:[#allocation78_spill] sm:$0xff] %v8207_v36  ;;  %5928 = vmatprep.mubr.f32.mxu0 %v8124_v42  ;;  %9877 = vst [vmem:[#allocation79_spill] sm:$0xff] %v8214_v33  ;;  %v8230_v42 = vsub.f32 %v160_v19, %v8201_v40  ;;  %v8235_v18 = vand.u32 4294901760, %v487_v43  ;;  %v507_v62 = vsub.f32 %v8190_v26, %v8214_v33  ;;  %v8240_v8 = vand.u32 4294901760, %v8217_v56 }
  0x3a   :  { %5758 = vmatmul.mubr.f32.gmra.mrb[20].mxu1 %v8169_v49  ;;  %9878 = vst [vmem:[#allocation80_spill] sm:$0xff] %v8217_v56  ;;  %9879 = vst [vmem:[#allocation81_spill] sm:$0xff] %v8222_v17  ;;  %v8246_v19 = vand.u32 4294901760, %v497_v21 }
  0x3b   :  { %5760 = vmatprep.mubr.f32.mxu1 %v8185_v60  ;;  %9880 = vst [vmem:[#allocation82_spill] sm:$0xff] %v8227_v50  ;;  %9881 = vst [vmem:[#allocation83_spill] sm:$0xff] %v8230_v42  ;;  %v8243_v60 = vsub.f32 %v163_v22, %v8219_v58  ;;  %v8256_v43 = vand.u32 4294901760, %v507_v62  ;;  %v527_v22 = vsub.f32 %v8217_v56, %v8240_v8 }
  0x3c   :  { %5929 = vmatmul.mubr.f32.gmra.mrb[22].mxu0 %v8141_v11  ;;  %9882 = vst [vmem:[#allocation84_spill] sm:$0xff] %v8240_v8  ;;  %v517_v11 = vsub.f32 %v8199_v44, %v8227_v50 }
  0x3d   :  { %5931 = vmatprep.mubr.f32.mxu0 %v8154_v10  ;;  %9883 = vst [vmem:[#allocation85_spill] sm:$0xff] %v8243_v60  ;;  %v8251_v10 = vand.u32 4294901760, %v8230_v42  ;;  %v8261_v21 = vand.u32 4294901760, %v8243_v60  ;;  %v8271_v62 = vand.u32 4294901760, %v527_v22  ;;  %v9898_v22 = vld [vmem:[#allocation23_spill] sm:$0xff] }
  0x3e   :  { %5761 = vmatmul.mubr.f32.gmra.mrb[22].mxu1 %v8207_v36 }
  0x3f   :  { %5763 = vmatprep.mubr.f32.mxu1 %v8222_v17  ;;  %9884 = vst [vmem:[#allocation86_spill] sm:$0xff] %v8251_v10  ;;  %9885 = vst [vmem:[#allocation87_spill] sm:$0xff] %v8261_v21  ;;  %v8264_v17 = vand.u32 4294901760, %v517_v11  ;;  %v537_v36 = vsub.f32 %v8230_v42, %v8251_v10 }
  0x40   :  { %5932 = vmatmul.mubr.f32.gmra.mrb[24].mxu0 %v8178_v59 }
  0x41   :  { %5934 = vmatprep.mubr.f32.mxu0 %v8196_v47  ;;  %v547_v47 = vsub.f32 %v8243_v60, %v8261_v21  ;;  %v8276_v59 = vand.u32 4294901760, %v537_v36  ;;  %v6747_v36 = vpack.c.bf16 %v7977_v3, %v7953_v52  ;;  %v8303_v52 = vpack.c.bf16 %v7971_v28, %v7966_v6  ;;  %v9893_v3 = vld [vmem:[#allocation11_spill] sm:$0xff] }
  0x42   :  { %5764 = vmatmul.mubr.f32.gmra.mrb[24].mxu1 %v8235_v18 }
  0x43   :  { %5766 = vmatprep.mubr.f32.mxu1 %v8246_v19  ;;  %v8281_v11 = vand.u32 4294901760, %v547_v47  ;;  %v8297_v47 = vpack.c.bf16 %v7691_v16, %v7689_v15  ;;  %9887 = vst [vmem:[#allocation89_spill] sm:$0xff] %v8303_v52 }
  0x44   :  { %5935 = vmatmul.mubr.f32.gmra.mrb[26].mxu0 %v8214_v33  ;;  %v9908_v33 = vld [vmem:[#allocation46_spill] sm:$0xff] }
  0x45   :  { %5937 = vmatprep.mubr.f32.mxu0 %v8227_v50  ;;  %9886 = vst [vmem:[#allocation88_spill] sm:$0xff] %v8297_v47  ;;  %v9905_v50 = vld [vmem:[#allocation42_spill] sm:$0xff] }
  0x46   :  { %5767 = vmatmul.mubr.f32.gmra.mrb[26].mxu1 %v8256_v43 }
  0x47   :  { %5769 = vmatprep.mubr.f32.mxu1 %v8264_v17 }
  0x48   :  { %5938 = vmatmul.mubr.f32.gmra.mrb[28].mxu0 %v8240_v8  ;;  %v9904_v8 = vld [vmem:[#allocation38_spill] sm:$0xff] }
  0x49   :  { %5940 = vmatprep.mubr.f32.mxu0 %v8251_v10  ;;  %v9903_v10 = vld [vmem:[#allocation36_spill] sm:$0xff] }
  0x4a   :  { %5770 = vmatmul.mubr.f32.gmra.mrb[28].mxu1 %v8271_v62 }
  0x4b   :  { %5772 = vmatprep.mubr.f32.mxu1 %v8276_v59 }
  0x4c   :  { %5941 = vmatmul.mubr.f32.gmra.mrb[30].mxu0 %v8261_v21  ;;  %v9900_v21 = vld [vmem:[#allocation26_spill] sm:$0xff] }
  0x4d   :  { %5951 = vmatprep.mubr.f32.mxu0 %v7689_v15 }
  0x4e   :  { %5773 = vmatmul.mubr.f32.gmra.mrb[30].mxu1 %v8281_v11 }
  0x4f   :  { %5783 = vmatprep.mubr.f32.mxu1 %v7689_v15 }
  0x50   :  { %5952 = vmatmul.mubr.f32.vlgmr.msra.gmra.mrb[0].mxu0 %v7691_v16 }
  0x51   :  { %6770 = vmatpush3.bf16.msra.mxu0 %v7687_v14  ;;  %5954 = vmatprep.mubr.f32.mxu0 %v7720_v27  ;;  %v8369_v14 = vpack.c.bf16 %v7725_v29, %v7720_v27 }
  0x52   :  { %5784 = vmatmul.mubr.f32.vlgmr.msra.gmra.mrb[0].mxu1 %v7691_v16  ;;  %6772 = vmatprep.subr.bf16.mxu0 %v7705_v20 }
  0x53   :  { %6746 = vmatpush3.bf16.msra.mxu1 %v6743_v4  ;;  %5786 = vmatprep.mubr.f32.mxu1 %v7720_v27  ;;  %9888 = vst [vmem:[#allocation90_spill] sm:$0xff] %v8369_v14  ;;  %v8409_v4 = vpack.c.bf16 %v7806_v7, %v7796_v63 }
  0x54   :  { %6748 = vmatprep.subr.bf16.mxu1 %v6747_v36  ;;  %5955 = vmatmul.mubr.f32.gmra.mrb[2].mxu0 %v7725_v29 }
  0x55   :  { %5957 = vmatprep.mubr.f32.mxu0 %v7745_v39  ;;  %6774 = vmatpush3.bf16.msra.mxu0 %v7705_v20  ;;  %v8374_v20 = vpack.c.bf16 %v8034_v12, %v8008_v46  ;;  %9897 = vst [vmem:[#allocation11_spill] sm:$0xff] %v8409_v4 }
  0x56   :  { %5787 = vmatmul.mubr.f32.gmra.mrb[2].mxu1 %v7725_v29  ;;  %6968 = vmatprep.subr.bf16.mxu0 %v8303_v52 }
  0x57   :  { %5789 = vmatprep.mubr.f32.mxu1 %v7745_v39  ;;  %6750 = vmatpush3.bf16.msra.mxu1 %v6747_v36  ;;  %9889 = vst [vmem:[#allocation91_spill] sm:$0xff] %v8374_v20  ;;  %v9899_v36 = vld [vmem:[#allocation24_spill] sm:$0xff] }
  0x58   :  { %6776 = vmatprep.subr.bf16.mxu1 %v8297_v47  ;;  %5958 = vmatmul.mubr.f32.gmra.mrb[4].mxu0 %v7766_v48 }
  0x59   :  { %5960 = vmatprep.mubr.f32.mxu0 %v7796_v63 }
  0x5a   :  { %5790 = vmatmul.mubr.f32.gmra.mrb[4].mxu1 %v7766_v48 }
  0x5b   :  { %5792 = vmatprep.mubr.f32.mxu1 %v7796_v63 }
  0x5c   :  { %5961 = vmatmul.mubr.f32.gmra.mrb[6].mxu0 %v7806_v7 }
  0x5d   :  { %5963 = vmatprep.mubr.f32.mxu0 %v7826_v23 }
  0x5e   :  { %5793 = vmatmul.mubr.f32.gmra.mrb[6].mxu1 %v7806_v7 }
  0x5f   :  { %5795 = vmatprep.mubr.f32.mxu1 %v7826_v23 }
  0x60   :  { %5964 = vmatmul.mubr.f32.gmra.mrb[8].mxu0 %v7835_v30 }
  0x61   :  { %5966 = vmatprep.mubr.f32.mxu0 %v7837_v31 }
  0x62   :  { %5796 = vmatmul.mubr.f32.gmra.mrb[8].mxu1 %v7835_v30 }
  0x63   :  { %5798 = vmatprep.mubr.f32.mxu1 %v7837_v31 }
  0x64   :  { %5967 = vmatmul.mubr.f32.gmra.mrb[10].mxu0 %v7850_v41 }
  0x65   :  { %5969 = vmatprep.mubr.f32.mxu0 %v7873_v54 }
  0x66   :  { %5799 = vmatmul.mubr.f32.gmra.mrb[10].mxu1 %v7850_v41 }
  0x67   :  { %5801 = vmatprep.mubr.f32.mxu1 %v7873_v54 }
  0x68   :  { %5970 = vmatmul.mubr.f32.gmra.mrb[12].mxu0 %v7908_v34 }
  0x69   :  { %5972 = vmatprep.mubr.f32.mxu0 %v7918_v9 }
  0x6a   :  { %5802 = vmatmul.mubr.f32.gmra.mrb[12].mxu1 %v7908_v34 }
  0x6b   :  { %5804 = vmatprep.mubr.f32.mxu1 %v7918_v9 }
  0x6c   :  { %5973 = vmatmul.mubr.f32.gmra.mrb[14].mxu0 %v7942_v37 }
  0x6d   :  { %5975 = vmatprep.mubr.f32.mxu0 %v7966_v6 }
  0x6e   :  { %5805 = vmatmul.mubr.f32.gmra.mrb[14].mxu1 %v7942_v37 }
  0x6f   :  { %5807 = vmatprep.mubr.f32.mxu1 %v7966_v6 }
  0x70   :  { %5976 = vmatmul.mubr.f32.gmra.mrb[16].mxu0 %v7971_v28 }
  0x71   :  { %5978 = vmatprep.mubr.f32.mxu0 %v8008_v46 }
  0x72   :  { %5808 = vmatmul.mubr.f32.gmra.mrb[16].mxu1 %v7971_v28 }
  0x73   :  { %5810 = vmatprep.mubr.f32.mxu1 %v8008_v46 }
  0x74   :  { %5979 = vmatmul.mubr.f32.gmra.mrb[18].mxu0 %v8034_v12 }
  0x75   :  { %5981 = vmatprep.mubr.f32.mxu0 %v8048_v2 }
  0x76   :  { %5811 = vmatmul.mubr.f32.gmra.mrb[18].mxu1 %v8034_v12 }
  0x77   :  { %5813 = vmatprep.mubr.f32.mxu1 %v8048_v2 }
  0x78   :  { %5982 = vmatmul.mubr.f32.gmra.mrb[20].mxu0 %v8057_v53 }
  0x79   :  { %5984 = vmatprep.mubr.f32.mxu0 %v8082_v32 }
  0x7a   :  { %5814 = vmatmul.mubr.f32.gmra.mrb[20].mxu1 %v8057_v53 }
  0x7b   :  { %5816 = vmatprep.mubr.f32.mxu1 %v8082_v32 }
  0x7c   :  { %5985 = vmatmul.mubr.f32.gmra.mrb[22].mxu0 %v8084_v1 }
  0x7d   :  { %5987 = vmatprep.mubr.f32.mxu0 %v8110_v5 }
  0x7e   :  { %5817 = vmatmul.mubr.f32.gmra.mrb[22].mxu1 %v8084_v1 }
  0x7f   :  { %5819 = vmatprep.mubr.f32.mxu1 %v8110_v5 }
  0x80   :  { %5988 = vmatmul.mubr.f32.gmra.mrb[24].mxu0 %v8112_v55 }
  0x81   :  { %5990 = vmatprep.mubr.f32.mxu0 %v8131_v51 }
  0x82   :  { %5820 = vmatmul.mubr.f32.gmra.mrb[24].mxu1 %v8112_v55 }
  0x83   :  { %5822 = vmatprep.mubr.f32.mxu1 %v8131_v51 }
  0x84   :  { %5991 = vmatmul.mubr.f32.gmra.mrb[26].mxu0 %v8156_v57 }
  0x85   :  { %5993 = vmatprep.mubr.f32.mxu0 %v8180_v61 }
  0x86   :  { %5823 = vmatmul.mubr.f32.gmra.mrb[26].mxu1 %v8156_v57 }
  0x87   :  { %5825 = vmatprep.mubr.f32.mxu1 %v8180_v61 }
  0x88   :  { %5994 = vmatmul.mubr.f32.gmra.mrb[28].mxu0 %v8192_v45 }
  0x89   :  { %5996 = vmatprep.mubr.f32.mxu0 %v8201_v40 }
  0x8a   :  { %5826 = vmatmul.mubr.f32.gmra.mrb[28].mxu1 %v8192_v45 }
  0x8b   :  { %5828 = vmatprep.mubr.f32.mxu1 %v8201_v40 }
  0x8c   :  { %5997 = vmatmul.mubr.f32.gmra.mrb[30].mxu0 %v8219_v58 }
  0x8d   :  { %6007 = vmatprep.mubr.f32.mxu0 %v7689_v15  ;;  %v9890_v15 = vld [vmem:[#allocation9_spill] sm:$0xff] }
  0x8e   :  { %5829 = vmatmul.mubr.f32.gmra.mrb[30].mxu1 %v8219_v58 }
  0x8f   :  { %5839 = vmatprep.mubr.f32.mxu1 %v7714_v24 }
  0x90   :  { %6008 = vmatmul.mubr.f32.vlgmr.msra.gmra.mrb[0].mxu0 %v7691_v16  ;;  %v8389_v16 = vpack.c.bf16 %v7766_v48, %v7745_v39 }
  0x91   :  { %6010 = vmatprep.mubr.f32.mxu0 %v7720_v27  ;;  %6970 = vmatpush3.bf16.xpose.msra.mxu0 %v8303_v52  ;;  %v8394_v27 = vpack.c.bf16 %v8057_v53, %v8048_v2 }
  0x92   :  { %5840 = vmatmul.mubr.f32.vlgmr.msra.gmra.mrb[0].mxu1 %v7717_v25  ;;  %6972 = vmatprep.subr.bf16.mxu0 %v8374_v20  ;;  %9891 = vst [vmem:[#allocation9_spill] sm:$0xff] %v8389_v16 }
  0x93   :  { %5842 = vmatprep.mubr.f32.mxu1 %v7739_v35  ;;  %6778 = vmatpush3.bf16.xpose.msra.mxu1 %v8297_v47  ;;  %9892 = vst [vmem:[#allocation92_spill] sm:$0xff] %v8394_v27 }
  0x94   :  { %6780 = vmatprep.subr.bf16.mxu1 %v8369_v14  ;;  %6011 = vmatmul.mubr.f32.gmra.mrb[2].mxu0 %v7725_v29  ;;  %v9894_v29 = vld [vmem:[#allocation16_spill] sm:$0xff] }
  0x95   :  { %6013 = vmatprep.mubr.f32.mxu0 %v7745_v39  ;;  %v9895_v39 = vld [vmem:[#allocation18_spill] sm:$0xff] }
  0x96   :  { %5843 = vmatmul.mubr.f32.gmra.mrb[2].mxu1 %v7743_v38 }
  0x97   :  { %5845 = vmatprep.mubr.f32.mxu1 %v9890_v15 }
  0x98   :  { %6014 = vmatmul.mubr.f32.gmra.mrb[4].mxu0 %v7766_v48  ;;  %v9896_v48 = vld [vmem:[#allocation22_spill] sm:$0xff] }
  0x99   :  { %6016 = vmatprep.mubr.f32.mxu0 %v7796_v63  ;;  %6974 = vmatpush3.bf16.xpose.msra.mxu0 %v8374_v20  ;;  %v9901_v63 = vld [vmem:[#allocation32_spill] sm:$0xff] }
  0x9a   :  { %5846 = vmatmul.mubr.f32.gmra.mrb[4].mxu1 %v9893_v3  ;;  %6976 = vmatprep.subr.bf16.mxu0 %v8394_v27 }
  0x9b   :  { %5848 = vmatprep.mubr.f32.mxu1 %v9894_v29  ;;  %6782 = vmatpush3.bf16.xpose.msra.mxu1 %v8369_v14 }
  0x9c   :  { %6784 = vmatprep.subr.bf16.mxu1 %v8389_v16  ;;  %6017 = vmatmul.mubr.f32.gmra.mrb[6].mxu0 %v7806_v7  ;;  %v8424_v7 = vpack.c.bf16 %v7835_v30, %v7826_v23 }
  0x9d   :  { %6019 = vmatprep.mubr.f32.mxu0 %v7826_v23  ;;  %v9906_v23 = vld [vmem:[#allocation44_spill] sm:$0xff] }
  0x9e   :  { %5849 = vmatmul.mubr.f32.gmra.mrb[6].mxu1 %v9895_v39  ;;  %9902 = vst [vmem:[#allocation16_spill] sm:$0xff] %v8424_v7 }
  0x9f   :  { %5851 = vmatprep.mubr.f32.mxu1 %v9896_v48 }
  0xa0   :  { %6020 = vmatmul.mubr.f32.gmra.mrb[8].mxu0 %v7835_v30  ;;  %v8438_v30 = vpack.c.bf16 %v7850_v41, %v7837_v31 }
  0xa1   :  { %6022 = vmatprep.mubr.f32.mxu0 %v7837_v31  ;;  %6978 = vmatpush3.bf16.xpose.msra.mxu0 %v8394_v27  ;;  %v9909_v27 = vld [vmem:[#allocation51_spill] sm:$0xff]  ;;  %v9911_v31 = vld [vmem:[#allocation56_spill] sm:$0xff] }
  0xa2   :  { %5852 = vmatmul.mubr.f32.gmra.mrb[8].mxu1 %v9898_v22  ;;  %9907 = vst [vmem:[#allocation18_spill] sm:$0xff] %v8438_v30 }
  0xa3   :  { %5854 = vmatprep.mubr.f32.mxu1 %v9899_v36  ;;  %6786 = vmatpush3.bf16.xpose.msra.mxu1 %v8389_v16 }
  0xa4   :  { %6788 = vmatprep.subr.bf16.mxu1 %v8409_v4  ;;  %6023 = vmatmul.mubr.f32.gmra.mrb[10].mxu0 %v7850_v41  ;;  %v8452_v41 = vpack.c.bf16 %v7908_v34, %v7873_v54 }
  0xa5   :  { %6025 = vmatprep.mubr.f32.mxu0 %v7873_v54  ;;  %v9916_v54 = vld [vmem:[#allocation66_spill] sm:$0xff] }
  0xa6   :  { %5855 = vmatmul.mubr.f32.gmra.mrb[10].mxu1 %v9900_v21  ;;  %9912 = vst [vmem:[#allocation22_spill] sm:$0xff] %v8452_v41 }
  0xa7   :  { %5857 = vmatprep.mubr.f32.mxu1 %v9901_v63 }
  0xa8   :  { %6026 = vmatmul.mubr.f32.gmra.mrb[12].mxu0 %v7908_v34  ;;  %v8485_v34 = vpack.c.bf16 %v8084_v1, %v8082_v32 }
  0xa9   :  { %6028 = vmatprep.mubr.f32.mxu0 %v7918_v9 }
  0xaa   :  { %5858 = vmatmul.mubr.f32.gmra.mrb[12].mxu1 %v9903_v10  ;;  %9918 = vst [vmem:[#allocation44_spill] sm:$0xff] %v8485_v34  ;;  %6980 = vmatprep.subr.bf16.mxu0 %v8485_v34 }
  0xab   :  { %5860 = vmatprep.mubr.f32.mxu1 %v9904_v8  ;;  %6790 = vmatpush3.bf16.xpose.msra.mxu1 %v8409_v4 }
  0xac   :  { %6792 = vmatprep.subr.bf16.mxu1 %v8424_v7  ;;  %6029 = vmatmul.mubr.f32.gmra.mrb[14].mxu0 %v7942_v37 }
  0xad   :  { %6031 = vmatprep.mubr.f32.mxu0 %v7966_v6  ;;  %v9910_v6 = vld [vmem:[#allocation55_spill] sm:$0xff]  ;;  %6982 = vmatpush3.bf16.xpose.msra.mxu0 %v8485_v34 }
  0xae   :  { %5861 = vmatmul.mubr.f32.gmra.mrb[14].mxu1 %v9905_v50 }
  0xaf   :  { %5863 = vmatprep.mubr.f32.mxu1 %v9906_v23 }
  0xb0   :  { %6032 = vmatmul.mubr.f32.gmra.mrb[16].mxu0 %v7971_v28  ;;  %v9913_v28 = vld [vmem:[#allocation58_spill] sm:$0xff] }
  0xb1   :  { %6034 = vmatprep.mubr.f32.mxu0 %v8008_v46  ;;  %v9914_v46 = vld [vmem:[#allocation62_spill] sm:$0xff] }
  0xb2   :  { %5864 = vmatmul.mubr.f32.gmra.mrb[16].mxu1 %v9908_v33 }
  0xb3   :  { %5866 = vmatprep.mubr.f32.mxu1 %v9909_v27  ;;  %6794 = vmatpush3.bf16.xpose.msra.mxu1 %v8424_v7 }
  0xb4   :  { %6796 = vmatprep.subr.bf16.mxu1 %v8438_v30  ;;  %6035 = vmatmul.mubr.f32.gmra.mrb[18].mxu0 %v8034_v12  ;;  %v9915_v12 = vld [vmem:[#allocation63_spill] sm:$0xff] }
  0xb5   :  { %6037 = vmatprep.mubr.f32.mxu0 %v8048_v2  ;;  %v9919_v2 = vld [vmem:[#allocation12_spill] sm:$0xff] }
  0xb6   :  { %5867 = vmatmul.mubr.f32.gmra.mrb[18].mxu1 %v9910_v6 }
  0xb7   :  { %5869 = vmatprep.mubr.f32.mxu1 %v9911_v31 }
  0xb8   :  { %6038 = vmatmul.mubr.f32.gmra.mrb[20].mxu0 %v8057_v53  ;;  %v8481_v53 = vpack.c.bf16 %v7942_v37, %v7918_v9  ;;  %v8500_v9 = vpack.c.bf16 %v8156_v57, %v8131_v51  ;;  %v9925_v37 = vld [vmem:[#allocation60_spill] sm:$0xff] }
  0xb9   :  { %6040 = vmatprep.mubr.f32.mxu0 %v8082_v32  ;;  %v8506_v32 = vpack.c.bf16 %v8192_v45, %v8180_v61 }
  0xba   :  { %5870 = vmatmul.mubr.f32.gmra.mrb[20].mxu1 %v9913_v28  ;;  %9917 = vst [vmem:[#allocation23_spill] sm:$0xff] %v8481_v53  ;;  %9921 = vst [vmem:[#allocation12_spill] sm:$0xff] %v8500_v9 }
  0xbb   :  { %5872 = vmatprep.mubr.f32.mxu1 %v9914_v46  ;;  %6798 = vmatpush3.bf16.xpose.msra.mxu1 %v8438_v30  ;;  %9922 = vst [vmem:[#allocation93_spill] sm:$0xff] %v8506_v32 }
  0xbc   :  { %6800 = vmatprep.subr.bf16.mxu1 %v8452_v41  ;;  %6041 = vmatmul.mubr.f32.gmra.mrb[22].mxu0 %v8084_v1  ;;  %v8512_v1 = vpack.c.bf16 %v8219_v58, %v8201_v40 }
  0xbd   :  { %6043 = vmatprep.mubr.f32.mxu0 %v8110_v5 }
  0xbe   :  { %5873 = vmatmul.mubr.f32.gmra.mrb[22].mxu1 %v9915_v12  ;;  %9923 = vst [vmem:[#allocation94_spill] sm:$0xff] %v8512_v1 }
  0xbf   :  { %5875 = vmatprep.mubr.f32.mxu1 %v9916_v54 }
  0xc0   :  { %6044 = vmatmul.mubr.f32.gmra.mrb[24].mxu0 %v8112_v55 }
  0xc1   :  { %6046 = vmatprep.mubr.f32.mxu0 %v8131_v51 }
  0xc2   :  { %5876 = vmatmul.mubr.f32.gmra.mrb[24].mxu1 %v8144_v0 }
  0xc3   :  { %5878 = vmatprep.mubr.f32.mxu1 %v8165_v13  ;;  %6802 = vmatpush3.bf16.xpose.msra.mxu1 %v8452_v41  ;;  %v8494_v41 = vpack.c.bf16 %v8112_v55, %v8110_v5 }
  0xc4   :  { %6047 = vmatmul.mubr.f32.gmra.mrb[26].mxu0 %v8156_v57  ;;  %6804 = vmatprep.subr.bf16.mxu1 %v8481_v53  ;;  %v9924_v57 = vld [vmem:[#allocation54_spill] sm:$0xff] }
  0xc5   :  { %6049 = vmatprep.mubr.f32.mxu0 %v8180_v61  ;;  %9920 = vst [vmem:[#allocation46_spill] sm:$0xff] %v8494_v41  ;;  %6984 = vmatprep.subr.bf16.mxu0 %v8494_v41  ;;  %v8518_v5 = vpack.c.bf16 %v9925_v37, %v9924_v57 }
  0xc6   :  { %5879 = vmatmul.mubr.f32.gmra.mrb[26].mxu1 %v8190_v26  ;;  %6986 = vmatpush3.bf16.xpose.msra.mxu0 %v8494_v41 }
  0xc7   :  { %5881 = vmatprep.mubr.f32.mxu1 %v8199_v44  ;;  %6988 = vmatprep.subr.bf16.mxu0 %v8500_v9  ;;  %v9930_v44 = vld [vmem:[#allocation13_spill] sm:$0xff] }
  0xc8   :  { %6050 = vmatmul.mubr.f32.gmra.mrb[28].mxu0 %v8192_v45 }
  0xc9   :  { %6052 = vmatprep.mubr.f32.mxu0 %v8201_v40 }
  0xca   :  { %5882 = vmatmul.mubr.f32.gmra.mrb[28].mxu1 %v8217_v56 }
  0xcb   :  { %5884 = vmatprep.mubr.f32.mxu1 %v8230_v42  ;;  %6806 = vmatpush3.bf16.xpose.msra.mxu1 %v8481_v53 }
  0xcc   :  { %6053 = vmatmul.mubr.f32.gmra.mrb[30].mxu0 %v8219_v58  ;;  %6808 = vmatprep.subr.bf16.mxu1 %v9919_v2 }
  0xce   :  { %5885 = vmatmul.mubr.f32.gmra.mrb[30].mxu1 %v8243_v60  ;;  %6990 = vmatpush3.bf16.xpose.msra.mxu0 %v8500_v9 }
  0xcf   :  { %6992 = vmatprep.subr.bf16.mxu0 %v8506_v32 }
  0xd6   :  { %6994 = vmatpush3.bf16.xpose.msra.mxu0 %v8506_v32 }
  0xd7   :  { %6996 = vmatprep.subr.bf16.mxu0 %v8512_v1 }
  0xde   :  { %6998 = vmatpush3.bf16.xpose.msra.mxu0 %v8512_v1 }
  0xdf   :  { %7000 = vmatprep.subr.bf16.mxu0 %v8518_v5 }
 0x163   :  { %v6009_v45 = vpop.f32.mrb[0].mxu0 }
 0x164   :  { %v1793_v51 = vpop.f32.mrb[1].mxu0 }
 0x165   :  { %v5841_v55 = vpop.f32.mrb[0].mxu1 }
 0x166   :  { %v7159_v61 = vadd.f32 %v6009_v45, %v5841_v55  ;;  %v907_v9 = vpop.f32.mrb[1].mxu1 }
 0x167   :  { %v7160_v32 = vadd.f32 %v1793_v51, %v907_v9  ;;  %v6012_v40 = vpop.f32.mrb[2].mxu0 }
 0x168   :  { %v1987_v41 = vsel %vm68_vm0, %v7159_v61, 0  ;;  %v1805_v53 = vpop.f32.mrb[3].mxu0 }
 0x169   :  { %v8522_v58 = vand.u32 4294901760, %v1987_v41  ;;  %v1984_v34 = vsel %vm68_vm0, %v7160_v32, 0  ;;  %v5844_v1 = vpop.f32.mrb[2].mxu1 }
 0x16a   :  { %v8525_v20 = vand.u32 4294901760, %v1984_v34  ;;  %v7161_v57 = vadd.f32 %v6012_v40, %v5844_v1  ;;  %v921_v37 = vpop.f32.mrb[3].mxu1 }
 0x16b   :  { %v8528_v30 = vsub.f32 %v1987_v41, %v8522_v58  ;;  %v7162_v52 = vadd.f32 %v1805_v53, %v921_v37  ;;  %v6015_v55 = vpop.f32.mrb[4].mxu0 }
 0x16c   :  { %9926 = vst [vmem:[#allocation54_spill] sm:$0xff] %v8525_v20  ;;  %v8531_v45 = vsub.f32 %v1984_v34, %v8525_v20  ;;  %v1993_v9 = vsel %vm68_vm0, %v7161_v57, 0  ;;  %v1817_v4 = vpop.f32.mrb[5].mxu0 }
 0x16d   :  { %9927 = vst [vmem:[#allocation60_spill] sm:$0xff] %v8528_v30  ;;  %v9673_v51 = vand.u32 4294901760, %v8528_v30  ;;  %v8535_v61 = vand.u32 4294901760, %v1993_v9  ;;  %v1990_v32 = vsel %vm68_vm0, %v7162_v52, 0  ;;  %v5847_v7 = vpop.f32.mrb[4].mxu1 }
 0x16e   :  { %v8538_v1 = vand.u32 4294901760, %v1990_v32  ;;  %v7163_v40 = vadd.f32 %v6015_v55, %v5847_v7  ;;  %v935_v41 = vpop.f32.mrb[5].mxu1  ;;  %v9680_v53 = vand.u32 4294901760, %v8531_v45 }
 0x16f   :  { %v2125_v34 = vsub.f32 %v8528_v30, %v9673_v51  ;;  %v8545_v57 = vsub.f32 %v1993_v9, %v8535_v61  ;;  %v7164_v37 = vadd.f32 %v1817_v4, %v935_v41  ;;  %v6018_v42 = vpop.f32.mrb[6].mxu0  ;;  %v9931_v4 = vld [vmem:[#allocation14_spill] sm:$0xff] }
 0x170   :  { %v8548_v60 = vsub.f32 %v1990_v32, %v8538_v1  ;;  %v1999_v52 = vsel %vm68_vm0, %v7163_v40, 0  ;;  %v2115_v7 = vsub.f32 %v8531_v45, %v9680_v53  ;;  %v1829_v51 = vpop.f32.mrb[7].mxu0  ;;  %v8560_v41 = vpack.c.bf16 %v9931_v4, %v9930_v44 }
 0x171   :  { %9928 = vst [vmem:[#allocation95_spill] sm:$0xff] %v8545_v57  ;;  %v8554_v55 = vand.u32 4294901760, %v1999_v52  ;;  %v1996_v16 = vsel %vm68_vm0, %v7164_v37, 0  ;;  %v5850_v56 = vpop.f32.mrb[6].mxu1  ;;  %v9685_v9 = vand.u32 4294901760, %v8545_v57  ;;  %v2126_v53 = vand.u32 4294901760, %v2125_v34 }
 0x172   :  { %9929 = vst [vmem:[#allocation96_spill] sm:$0xff] %v8548_v60  ;;  %v8562_v32 = vand.u32 4294901760, %v1996_v16  ;;  %v7165_v40 = vadd.f32 %v6018_v42, %v5850_v56  ;;  %v949_v14 = vpop.f32.mrb[7].mxu1  ;;  %v2116_v30 = vand.u32 4294901760, %v2115_v7  ;;  %v9686_v26 = vand.u32 4294901760, %v8548_v60 }
 0x173   :  { %v8566_v13 = vsub.f32 %v1999_v52, %v8554_v55  ;;  %v7166_v37 = vadd.f32 %v1829_v51, %v949_v14  ;;  %v2145_v47 = vsub.f32 %v8545_v57, %v9685_v9  ;;  %v6021_v56 = vpop.f32.mrb[8].mxu0 }
 0x174   :  { %v8572_v0 = vsub.f32 %v1996_v16, %v8562_v32  ;;  %v2005_v44 = vsel %vm68_vm0, %v7165_v40, 0  ;;  %6087 = vmatprep.mubr.f32.mxu1 %v2116_v30  ;;  %v2135_v42 = vsub.f32 %v8548_v60, %v9686_v26  ;;  %v1841_v51 = vpop.f32.mrb[9].mxu0 }
 0x175   :  { %9932 = vst [vmem:[#allocation13_spill] sm:$0xff] %v8566_v13  ;;  %v8578_v34 = vand.u32 4294901760, %v2005_v44  ;;  %v2002_v52 = vsel %vm68_vm0, %v7166_v37, 0  ;;  %v5853_v14 = vpop.f32.mrb[8].mxu1  ;;  %6088 = vmatmul.mubr.f32.vlgmr.msra.gmra.mrb[32].mxu1 %v2126_v53  ;;  %v9691_v7 = vand.u32 4294901760, %v8566_v13  ;;  %v2146_v60 = vand.u32 4294901760, %v2145_v47 }
 0x176   :  { %9933 = vst [vmem:[#allocation14_spill] sm:$0xff] %v8572_v0  ;;  %v8582_v4 = vand.u32 4294901760, %v2002_v52  ;;  %v7167_v16 = vadd.f32 %v6021_v56, %v5853_v14  ;;  %6810 = vmatpush3.bf16.xpose.msra.mxu1 %v9919_v2  ;;  %v963_v30 = vpop.f32.mrb[9].mxu1  ;;  %v2136_v40 = vand.u32 4294901760, %v2135_v42  ;;  %v9694_v9 = vand.u32 4294901760, %v8572_v0 }
 0x177   :  { %v8587_v26 = vsub.f32 %v2005_v44, %v8578_v34  ;;  %v7168_v57 = vadd.f32 %v1841_v51, %v963_v30  ;;  %6812 = vmatprep.subr.bf16.mxu1 %v8560_v41  ;;  %v2165_v53 = vsub.f32 %v8566_v13, %v9691_v7  ;;  %v6024_v56 = vpop.f32.mrb[10].mxu0  ;;  %v9936_v7 = vld [vmem:[#allocation17_spill] sm:$0xff] }
 0x178   :  { %v8594_v37 = vsub.f32 %v2002_v52, %v8582_v4  ;;  %v2011_v2 = vsel %vm68_vm0, %v7167_v16, 0  ;;  %6090 = vmatprep.mubr.f32.mxu1 %v2136_v40  ;;  %v2155_v44 = vsub.f32 %v8572_v0, %v9694_v9  ;;  %v1853_v51 = vpop.f32.mrb[11].mxu0  ;;  %v9937_v52 = vld [vmem:[#allocation20_spill] sm:$0xff] }
 0x179   :  { %9934 = vst [vmem:[#allocation97_spill] sm:$0xff] %v8587_v26  ;;  %v8600_v42 = vand.u32 4294901760, %v2011_v2  ;;  %v2008_v47 = vsel %vm68_vm0, %v7168_v57, 0  ;;  %v5856_v14 = vpop.f32.mrb[10].mxu1  ;;  %6091 = vmatmul.mubr.f32.gmra.mrb[34].mxu1 %v2146_v60  ;;  %v9697_v30 = vand.u32 4294901760, %v8587_v26  ;;  %v8606_v13 = vpack.c.bf16 %v9937_v52, %v9936_v7 }
 0x17a   :  { %9935 = vst [vmem:[#allocation98_spill] sm:$0xff] %v8594_v37  ;;  %v8608_v16 = vand.u32 4294901760, %v2008_v47  ;;  %v7169_v40 = vadd.f32 %v6024_v56, %v5856_v14  ;;  %v977_v54 = vpop.f32.mrb[11].mxu1  ;;  %v2156_v12 = vand.u32 4294901760, %v2155_v44  ;;  %v9698_v9 = vand.u32 4294901760, %v8594_v37 }
 0x17b   :  { %v8612_v0 = vsub.f32 %v2011_v2, %v8600_v42  ;;  %v7170_v57 = vadd.f32 %v1853_v51, %v977_v54  ;;  %v2166_v46 = vand.u32 4294901760, %v2165_v53  ;;  %v2185_v60 = vsub.f32 %v8587_v26, %v9697_v30  ;;  %v6027_v56 = vpop.f32.mrb[12].mxu0 }
 0x17c   :  { %v8618_v50 = vsub.f32 %v2008_v47, %v8608_v16  ;;  %v2017_v7 = vsel %vm68_vm0, %v7169_v40, 0  ;;  %6093 = vmatprep.mubr.f32.mxu1 %v2156_v12  ;;  %v2175_v44 = vsub.f32 %v8594_v37, %v9698_v9  ;;  %v1865_v2 = vpop.f32.mrb[13].mxu0 }
 0x17d   :  { %9938 = vst [vmem:[#allocation17_spill] sm:$0xff] %v8612_v0  ;;  %v8624_v14 = vand.u32 4294901760, %v2017_v7  ;;  %v2014_v54 = vsel %vm68_vm0, %v7170_v57, 0  ;;  %v5859_v53 = vpop.f32.mrb[12].mxu1  ;;  %6094 = vmatmul.mubr.f32.gmra.mrb[36].mxu1 %v2166_v46  ;;  %v9703_v51 = vand.u32 4294901760, %v8612_v0  ;;  %v2186_v37 = vand.u32 4294901760, %v2185_v60 }
 0x17e   :  { %9939 = vst [vmem:[#allocation20_spill] sm:$0xff] %v8618_v50  ;;  %v8628_v52 = vand.u32 4294901760, %v2014_v54  ;;  %v7171_v47 = vadd.f32 %v6027_v56, %v5859_v53  ;;  %6814 = vmatpush3.bf16.xpose.msra.mxu1 %v8560_v41  ;;  %v991_v12 = vpop.f32.mrb[13].mxu1  ;;  %v2176_v40 = vand.u32 4294901760, %v2175_v44  ;;  %v9706_v30 = vand.u32 4294901760, %v8618_v50 }
 0x17f   :  { %v8633_v9 = vsub.f32 %v2017_v7, %v8624_v14  ;;  %v7172_v26 = vadd.f32 %v1865_v2, %v991_v12  ;;  %6816 = vmatprep.subr.bf16.mxu1 %v8606_v13  ;;  %v2205_v46 = vsub.f32 %v8612_v0, %v9703_v51  ;;  %v6030_v56 = vpop.f32.mrb[14].mxu0  ;;  %v9942_v51 = vld [vmem:[#allocation27_spill] sm:$0xff] }
 0x180   :  { %v8640_v57 = vsub.f32 %v2014_v54, %v8628_v52  ;;  %v2023_v41 = vsel %vm68_vm0, %v7171_v47, 0  ;;  %6096 = vmatprep.mubr.f32.mxu1 %v2176_v40  ;;  %v2195_v7 = vsub.f32 %v8618_v50, %v9706_v30  ;;  %v1877_v2 = vpop.f32.mrb[15].mxu0  ;;  %v9943_v54 = vld [vmem:[#allocation30_spill] sm:$0xff] }
 0x181   :  { %9940 = vst [vmem:[#allocation99_spill] sm:$0xff] %v8633_v9  ;;  %v8646_v44 = vand.u32 4294901760, %v2023_v41  ;;  %v2020_v60 = vsel %vm68_vm0, %v7172_v26, 0  ;;  %v5862_v53 = vpop.f32.mrb[14].mxu1  ;;  %6097 = vmatmul.mubr.f32.gmra.mrb[38].mxu1 %v2186_v37  ;;  %v9709_v12 = vand.u32 4294901760, %v8633_v9  ;;  %v8652_v0 = vpack.c.bf16 %v9943_v54, %v9942_v51 }
 0x182   :  { %9941 = vst [vmem:[#allocation100_spill] sm:$0xff] %v8640_v57  ;;  %v8654_v47 = vand.u32 4294901760, %v2020_v60  ;;  %v7173_v40 = vadd.f32 %v6030_v56, %v5862_v53  ;;  %v1005_v8 = vpop.f32.mrb[15].mxu1  ;;  %v2196_v28 = vand.u32 4294901760, %v2195_v7  ;;  %v9710_v30 = vand.u32 4294901760, %v8640_v57 }
 0x183   :  { %v8658_v50 = vsub.f32 %v2023_v41, %v8646_v44  ;;  %v7174_v26 = vadd.f32 %v1877_v2, %v1005_v8  ;;  %v2206_v31 = vand.u32 4294901760, %v2205_v46  ;;  %v2225_v37 = vsub.f32 %v8633_v9, %v9709_v12  ;;  %v6033_v56 = vpop.f32.mrb[16].mxu0 }
 0x184   :  { %v8664_v10 = vsub.f32 %v2020_v60, %v8654_v47  ;;  %v2029_v51 = vsel %vm68_vm0, %v7173_v40, 0  ;;  %6099 = vmatprep.mubr.f32.mxu1 %v2196_v28  ;;  %v2215_v7 = vsub.f32 %v8640_v57, %v9710_v30  ;;  %v1889_v41 = vpop.f32.mrb[17].mxu0 }
 0x185   :  { %9944 = vst [vmem:[#allocation27_spill] sm:$0xff] %v8658_v50  ;;  %v8670_v53 = vand.u32 4294901760, %v2029_v51  ;;  %v2026_v8 = vsel %vm68_vm0, %v7174_v26, 0  ;;  %v5865_v46 = vpop.f32.mrb[16].mxu1  ;;  %6100 = vmatmul.mubr.f32.gmra.mrb[40].mxu1 %v2206_v31  ;;  %v9715_v2 = vand.u32 4294901760, %v8658_v50  ;;  %v2226_v57 = vand.u32 4294901760, %v2225_v37 }
 0x186   :  { %9945 = vst [vmem:[#allocation30_spill] sm:$0xff] %v8664_v10  ;;  %v8674_v54 = vand.u32 4294901760, %v2026_v8  ;;  %v7175_v60 = vadd.f32 %v6033_v56, %v5865_v46  ;;  %6818 = vmatpush3.bf16.xpose.msra.mxu1 %v8606_v13  ;;  %v1019_v28 = vpop.f32.mrb[17].mxu1  ;;  %v2216_v40 = vand.u32 4294901760, %v2215_v7  ;;  %v9718_v12 = vand.u32 4294901760, %v8664_v10 }
 0x187   :  { %v8679_v30 = vsub.f32 %v2029_v51, %v8670_v53  ;;  %v7176_v9 = vadd.f32 %v1889_v41, %v1019_v28  ;;  %6820 = vmatprep.subr.bf16.mxu1 %v8652_v0  ;;  %v2245_v31 = vsub.f32 %v8658_v50, %v9715_v2  ;;  %v6036_v56 = vpop.f32.mrb[18].mxu0  ;;  %v9949_v2 = vld [vmem:[#allocation33_spill] sm:$0xff] }
 0x188   :  { %v8686_v26 = vsub.f32 %v2026_v8, %v8674_v54  ;;  %v3321_v13 = vsel %vm68_vm0, %v7175_v60, 0  ;;  %6102 = vmatprep.mubr.f32.mxu1 %v2216_v40  ;;  %v2235_v51 = vsub.f32 %v8664_v10, %v9718_v12  ;;  %v1901_v41 = vpop.f32.mrb[19].mxu0  ;;  %v9950_v8 = vld [vmem:[#allocation35_spill] sm:$0xff] }
 0x189   :  { %9946 = vst [vmem:[#allocation101_spill] sm:$0xff] %v8679_v30  ;;  %v8692_v7 = vand.u32 4294901760, %v3321_v13  ;;  %v3318_v37 = vsel %vm68_vm0, %v7176_v9, 0  ;;  %v5868_v46 = vpop.f32.mrb[18].mxu1  ;;  %6103 = vmatmul.mubr.f32.gmra.mrb[42].mxu1 %v2226_v57  ;;  %v9721_v28 = vand.u32 4294901760, %v8679_v30  ;;  %v8698_v50 = vpack.c.bf16 %v9950_v8, %v9949_v2 }
 0x18a   :  { %9947 = vst [vmem:[#allocation102_spill] sm:$0xff] %v8686_v26  ;;  %v8700_v60 = vand.u32 4294901760, %v3318_v37  ;;  %v7177_v40 = vadd.f32 %v6036_v56, %v5868_v46  ;;  %v1033_v63 = vpop.f32.mrb[19].mxu1  ;;  %v2236_v6 = vand.u32 4294901760, %v2235_v51  ;;  %v9722_v12 = vand.u32 4294901760, %v8686_v26 }
 0x18b   :  { %9948 = vst [vmem:[#allocation103_spill] sm:$0xff] %v8692_v7  ;;  %v8704_v10 = vsub.f32 %v3321_v13, %v8692_v7  ;;  %v7178_v9 = vadd.f32 %v1901_v41, %v1033_v63  ;;  %v2246_v27 = vand.u32 4294901760, %v2245_v31  ;;  %v2265_v57 = vsub.f32 %v8679_v30, %v9721_v28  ;;  %v6039_v56 = vpop.f32.mrb[20].mxu0 }
 0x18c   :  { %v8710_v21 = vsub.f32 %v3318_v37, %v8700_v60  ;;  %v3327_v2 = vsel %vm68_vm0, %v7177_v40, 0  ;;  %6105 = vmatprep.mubr.f32.mxu1 %v2236_v6  ;;  %v2255_v51 = vsub.f32 %v8686_v26, %v9722_v12  ;;  %v1913_v41 = vpop.f32.mrb[21].mxu0 }
 0x18d   :  { %9951 = vst [vmem:[#allocation33_spill] sm:$0xff] %v8704_v10  ;;  %v9727_v13 = vand.u32 4294901760, %v8704_v10  ;;  %v8717_v46 = vand.u32 4294901760, %v3327_v2  ;;  %v3324_v63 = vsel %vm68_vm0, %v7178_v9, 0  ;;  %v5871_v31 = vpop.f32.mrb[20].mxu1  ;;  %6106 = vmatmul.mubr.f32.gmra.mrb[44].mxu1 %v2246_v27  ;;  %v2266_v26 = vand.u32 4294901760, %v2265_v57 }
 0x18e   :  { %9952 = vst [vmem:[#allocation35_spill] sm:$0xff] %v8710_v21  ;;  %v8720_v8 = vand.u32 4294901760, %v3324_v63  ;;  %v7179_v37 = vadd.f32 %v6039_v56, %v5871_v31  ;;  %6822 = vmatpush3.bf16.xpose.msra.mxu1 %v8652_v0  ;;  %v1047_v6 = vpop.f32.mrb[21].mxu1  ;;  %v2256_v40 = vand.u32 4294901760, %v2255_v51  ;;  %v9734_v28 = vand.u32 4294901760, %v8710_v21  ;;  %v9957_v31 = vld [vmem:[#allocation37_spill] sm:$0xff] }
 0x18f   :  { %9953 = vst [vmem:[#allocation104_spill] sm:$0xff] %v8717_v46  ;;  %v3459_v12 = vsub.f32 %v8704_v10, %v9727_v13  ;;  %v8728_v30 = vsub.f32 %v3327_v2, %v8717_v46  ;;  %v7180_v9 = vadd.f32 %v1913_v41, %v1047_v6  ;;  %6824 = vmatprep.subr.bf16.mxu1 %v8698_v50  ;;  %v6042_v56 = vpop.f32.mrb[22].mxu0  ;;  %v9958_v13 = vld [vmem:[#allocation40_spill] sm:$0xff] }
 0x190   :  { %9954 = vst [vmem:[#allocation105_spill] sm:$0xff] %v8720_v8  ;;  %v8732_v27 = vsub.f32 %v3324_v63, %v8720_v8  ;;  %v3333_v0 = vsel %vm68_vm0, %v7179_v37, 0  ;;  %6108 = vmatprep.mubr.f32.mxu1 %v2256_v40  ;;  %v3449_v51 = vsub.f32 %v8710_v21, %v9734_v28  ;;  %v8740_v10 = vpack.c.bf16 %v9958_v13, %v9957_v31  ;;  %v1925_v63 = vpop.f32.mrb[23].mxu0  ;;  %v9960_v37 = vld [vmem:[#allocation64_spill] sm:$0xff]  ;;  %v9961_v40 = vld [vmem:[#allocation69_spill] sm:$0xff] }
 0x191   :  { %9955 = vst [vmem:[#allocation106_spill] sm:$0xff] %v8728_v30  ;;  %v8742_v2 = vand.u32 4294901760, %v3333_v0  ;;  %v3330_v57 = vsel %vm68_vm0, %v7180_v9, 0  ;;  %v5874_v41 = vpop.f32.mrb[22].mxu1  ;;  %6109 = vmatmul.mubr.f32.gmra.mrb[46].mxu1 %v2266_v26  ;;  %v9739_v6 = vand.u32 4294901760, %v8728_v30  ;;  %v8748_v46 = vpack.c.bf16 %v9961_v40, %v9960_v37 }
 0x192   :  { %9956 = vst [vmem:[#allocation107_spill] sm:$0xff] %v8732_v27  ;;  %v8750_v8 = vand.u32 4294901760, %v3330_v57  ;;  %v7181_v28 = vadd.f32 %v6042_v56, %v5874_v41  ;;  %v1061_v21 = vpop.f32.mrb[23].mxu1  ;;  %6143 = vmatprep.mubr.f32.mxu1 %v8525_v20  ;;  %v3450_v13 = vand.u32 4294901760, %v3449_v51  ;;  %v9740_v31 = vand.u32 4294901760, %v8732_v27 }
 0x193   :  { %9959 = vst [vmem:[#allocation37_spill] sm:$0xff] %v8742_v2  ;;  %v3460_v7 = vand.u32 4294901760, %v3459_v12  ;;  %v8755_v9 = vsub.f32 %v3333_v0, %v8742_v2  ;;  %v7182_v26 = vadd.f32 %v1925_v63, %v1061_v21  ;;  %v3479_v36 = vsub.f32 %v8728_v30, %v9739_v6  ;;  %v6045_v41 = vpop.f32.mrb[24].mxu0 }
 0x194   :  { %9962 = vst [vmem:[#allocation40_spill] sm:$0xff] %v8750_v8  ;;  %v8761_v37 = vsub.f32 %v3330_v57, %v8750_v8  ;;  %v3339_v56 = vsel %vm68_vm0, %v7181_v28, 0  ;;  %6423 = vmatprep.mubr.f32.mxu0 %v3450_v13  ;;  %v3469_v51 = vsub.f32 %v8732_v27, %v9740_v31  ;;  %v1937_v63 = vpop.f32.mrb[25].mxu0 }
 0x195   :  { %9963 = vst [vmem:[#allocation64_spill] sm:$0xff] %v8755_v9  ;;  %v8767_v12 = vand.u32 4294901760, %v3339_v56  ;;  %v3336_v0 = vsel %vm68_vm0, %v7182_v26, 0  ;;  %v5877_v21 = vpop.f32.mrb[24].mxu1  ;;  %6424 = vmatmul.mubr.f32.vlgmr.msra.gmra.mrb[32].mxu0 %v3460_v7  ;;  %v9745_v40 = vand.u32 4294901760, %v8755_v9  ;;  %v3480_v30 = vand.u32 4294901760, %v3479_v36 }
 0x196   :  { %9964 = vst [vmem:[#allocation69_spill] sm:$0xff] %v8761_v37  ;;  %v8771_v6 = vand.u32 4294901760, %v3336_v0  ;;  %v7183_v57 = vadd.f32 %v6045_v41, %v5877_v21  ;;  %6826 = vmatpush3.bf16.xpose.msra.mxu1 %v8698_v50  ;;  %7002 = vmatpush3.bf16.xpose.msra.mxu0 %v8518_v5  ;;  %v1075_v28 = vpop.f32.mrb[25].mxu1  ;;  %v3470_v13 = vand.u32 4294901760, %v3469_v51  ;;  %v9750_v31 = vand.u32 4294901760, %v8761_v37  ;;  %v9969_v36 = vld [vmem:[#allocation45_spill] sm:$0xff] }
 0x197   :  { %9965 = vst [vmem:[#allocation108_spill] sm:$0xff] %v8767_v12  ;;  %v8777_v20 = vsub.f32 %v3339_v56, %v8767_v12  ;;  %v7184_v26 = vadd.f32 %v1937_v63, %v1075_v28  ;;  %6828 = vmatprep.subr.bf16.mxu1 %v8740_v10  ;;  %7004 = vmatprep.subr.bf16.mxu0 %v8748_v46  ;;  %v6048_v41 = vpop.f32.mrb[26].mxu0  ;;  %v9970_v51 = vld [vmem:[#allocation47_spill] sm:$0xff] }
 0x198   :  { %9966 = vst [vmem:[#allocation109_spill] sm:$0xff] %v8771_v6  ;;  %v3499_v7 = vsub.f32 %v8755_v9, %v9745_v40  ;;  %v8785_v50 = vsub.f32 %v3336_v0, %v8771_v6  ;;  %v3345_v5 = vsel %vm68_vm0, %v7183_v57, 0  ;;  %6426 = vmatprep.mubr.f32.mxu0 %v3470_v13  ;;  %v3489_v56 = vsub.f32 %v8761_v37, %v9750_v31  ;;  %v1949_v0 = vpop.f32.mrb[27].mxu0  ;;  %v9972_v57 = vld [vmem:[#allocation71_spill] sm:$0xff] }
 0x199   :  { %9967 = vst [vmem:[#allocation110_spill] sm:$0xff] %v8777_v20  ;;  %v8793_v21 = vpack.c.bf16 %v9970_v51, %v9969_v36  ;;  %v8795_v63 = vand.u32 4294901760, %v3345_v5  ;;  %v3342_v28 = vsel %vm68_vm0, %v7184_v26, 0  ;;  %v5880_v40 = vpop.f32.mrb[26].mxu1  ;;  %6427 = vmatmul.mubr.f32.gmra.mrb[34].mxu0 %v3480_v30  ;;  %v9759_v9 = vand.u32 4294901760, %v8777_v20 }
 0x19a   :  { %9968 = vst [vmem:[#allocation111_spill] sm:$0xff] %v8785_v50  ;;  %v8801_v13 = vpack.c.bf16 %v8169_v49, %v9972_v57  ;;  %v8803_v27 = vand.u32 4294901760, %v3342_v28  ;;  %v7185_v31 = vadd.f32 %v6048_v41, %v5880_v40  ;;  %v1089_v37 = vpop.f32.mrb[27].mxu1  ;;  %v3490_v12 = vand.u32 4294901760, %v3489_v56 }
 0x19b   :  { %9971 = vst [vmem:[#allocation45_spill] sm:$0xff] %v8795_v63  ;;  %v9760_v36 = vand.u32 4294901760, %v8785_v50  ;;  %v8807_v51 = vsub.f32 %v3345_v5, %v8795_v63  ;;  %v7186_v26 = vadd.f32 %v1949_v0, %v1089_v37  ;;  %v3500_v6 = vand.u32 4294901760, %v3499_v7  ;;  %v6051_v40 = vpop.f32.mrb[28].mxu0 }
 0x19c   :  { %9973 = vst [vmem:[#allocation47_spill] sm:$0xff] %v8803_v27  ;;  %v3519_v30 = vsub.f32 %v8777_v20, %v9759_v9  ;;  %v8813_v2 = vsub.f32 %v3342_v28, %v8803_v27  ;;  %v3351_v49 = vsel %vm68_vm0, %v7185_v31, 0  ;;  %6429 = vmatprep.mubr.f32.mxu0 %v3490_v12  ;;  %v1961_v5 = vpop.f32.mrb[29].mxu0 }
 0x19d   :  { %9974 = vst [vmem:[#allocation71_spill] sm:$0xff] %v8807_v51  ;;  %v3509_v41 = vsub.f32 %v8785_v50, %v9760_v36  ;;  %v8819_v56 = vand.u32 4294901760, %v3351_v49  ;;  %v3348_v37 = vsel %vm68_vm0, %v7186_v26, 0  ;;  %v5883_v7 = vpop.f32.mrb[28].mxu1  ;;  %6430 = vmatmul.mubr.f32.gmra.mrb[36].mxu0 %v3500_v6  ;;  %v9765_v0 = vand.u32 4294901760, %v8807_v51 }
 0x19e   :  { %9975 = vst [vmem:[#allocation112_spill] sm:$0xff] %v8813_v2  ;;  %v8823_v57 = vand.u32 4294901760, %v3348_v37  ;;  %v7187_v28 = vadd.f32 %v6051_v40, %v5883_v7  ;;  %6830 = vmatpush3.bf16.xpose.msra.mxu1 %v8740_v10  ;;  %7006 = vmatpush3.bf16.xpose.msra.mxu0 %v8748_v46  ;;  %v1103_v31 = vpop.f32.mrb[29].mxu1  ;;  %v9774_v9 = vand.u32 4294901760, %v8813_v2  ;;  %v3520_v20 = vand.u32 4294901760, %v3519_v30  ;;  %v9978_v30 = vld [vmem:[#allocation50_spill] sm:$0xff] }
 0x19f   :  { %9976 = vst [vmem:[#allocation113_spill] sm:$0xff] %v8819_v56  ;;  %v3510_v12 = vand.u32 4294901760, %v3509_v41  ;;  %v8829_v36 = vsub.f32 %v3351_v49, %v8819_v56  ;;  %v7188_v26 = vadd.f32 %v1961_v5, %v1103_v31  ;;  %6832 = vmatprep.subr.bf16.mxu1 %v8793_v21  ;;  %7008 = vmatprep.subr.bf16.mxu0 %v8801_v13  ;;  %v6054_v40 = vpop.f32.mrb[30].mxu0  ;;  %v9979_v41 = vld [vmem:[#allocation52_spill] sm:$0xff] }
 0x1a0   :  { %9977 = vst [vmem:[#allocation114_spill] sm:$0xff] %v8823_v57  ;;  %v3539_v6 = vsub.f32 %v8807_v51, %v9765_v0  ;;  %v8837_v10 = vsub.f32 %v3348_v37, %v8823_v57  ;;  %v3357_v46 = vsel %vm68_vm0, %v7187_v28, 0  ;;  %v3529_v49 = vsub.f32 %v8813_v2, %v9774_v9  ;;  %v1973_v0 = vpop.f32.mrb[31].mxu0  ;;  %v9981_v51 = vld [vmem:[#allocation74_spill] sm:$0xff] }
 0x1a1   :  { %6432 = vmatprep.mubr.f32.mxu0 %v3510_v12  ;;  %v6835_v7 = vpack.c.bf16 %v9979_v41, %v9978_v30  ;;  %v8845_v5 = vand.u32 4294901760, %v3357_v46  ;;  %v3354_v31 = vsel %vm68_vm0, %v7188_v26, 0  ;;  %v5886_v50 = vpop.f32.mrb[30].mxu1  ;;  %v9783_v37 = vand.u32 4294901760, %v8829_v36  ;;  %v9982_v28 = vld [vmem:[#allocation78_spill] sm:$0xff] }
 0x1a2   :  { %6433 = vmatmul.mubr.f32.gmra.mrb[38].mxu0 %v3520_v20  ;;  %v7011_v12 = vpack.c.bf16 %v9982_v28, %v9981_v51  ;;  %v8851_v56 = vand.u32 4294901760, %v3354_v31  ;;  %v7189_v57 = vadd.f32 %v6054_v40, %v5886_v50  ;;  %v1117_v63 = vpop.f32.mrb[31].mxu1  ;;  %v3530_v9 = vand.u32 4294901760, %v3529_v49 }
 0x1a3   :  { %9980 = vst [vmem:[#allocation50_spill] sm:$0xff] %v8845_v5  ;;  %v9784_v2 = vand.u32 4294901760, %v8837_v10  ;;  %v8855_v30 = vsub.f32 %v3357_v46, %v8845_v5  ;;  %v7190_v41 = vadd.f32 %v1973_v0, %v1117_v63  ;;  %v3540_v26 = vand.u32 4294901760, %v3539_v6 }
 0x1a4   :  { %9983 = vst [vmem:[#allocation52_spill] sm:$0xff] %v8851_v56  ;;  %v3559_v20 = vsub.f32 %v8829_v36, %v9783_v37  ;;  %v8861_v27 = vsub.f32 %v3354_v31, %v8851_v56  ;;  %v3363_v51 = vsel %vm68_vm0, %v7189_v57, 0  ;;  %6435 = vmatprep.mubr.f32.mxu0 %v3530_v9  ;;  %v10040_v37 = vld [vmem:[#allocation33_spill] sm:$0xff] }
 0x1a5   :  { %v3549_v50 = vsub.f32 %v8837_v10, %v9784_v2  ;;  %v8867_v40 = vand.u32 4294901760, %v3363_v51  ;;  %v3360_v46 = vsel %vm68_vm0, %v7190_v41, 0  ;;  %v9781_v63 = vand.u32 4294901760, %v8855_v30  ;;  %v10041_v2 = vld [vmem:[#allocation107_spill] sm:$0xff] }
 0x1a6   :  { %6436 = vmatmul.mubr.f32.gmra.mrb[40].mxu0 %v3540_v26  ;;  %v8871_v0 = vand.u32 4294901760, %v3360_v46  ;;  %6834 = vmatpush3.bf16.xpose.msra.mxu1 %v8793_v21  ;;  %v9782_v9 = vand.u32 4294901760, %v8861_v27  ;;  %v3560_v49 = vand.u32 4294901760, %v3559_v20 }
 0x1a7   :  { %9984 = vst [vmem:[#allocation74_spill] sm:$0xff] %v8867_v40  ;;  %7010 = vmatpush3.bf16.xpose.msra.mxu0 %v8801_v13  ;;  %v3550_v6 = vand.u32 4294901760, %v3549_v50  ;;  %v8877_v57 = vsub.f32 %v3363_v51, %v8867_v40  ;;  %6836 = vmatprep.subr.bf16.mxu1 %v6835_v7  ;;  %v3579_v31 = vsub.f32 %v8855_v30, %v9781_v63  ;;  %v10035_v63 = vld [vmem:[#allocation102_spill] sm:$0xff] }
 0x1a8   :  { %9985 = vst [vmem:[#allocation78_spill] sm:$0xff] %v8871_v0  ;;  %7012 = vmatprep.subr.bf16.mxu0 %v7011_v12  ;;  %v8883_v28 = vsub.f32 %v3360_v46, %v8871_v0  ;;  %v3569_v21 = vsub.f32 %v8861_v27, %v9782_v9  ;;  %v6839_v50 = vpack.c.bf16 %v7717_v25, %v7714_v24  ;;  %v9986_v46 = vld [vmem:[#allocation81_spill] sm:$0xff] }
 0x1a9   :  { %6438 = vmatprep.mubr.f32.mxu0 %v3550_v6  ;;  %v9779_v13 = vand.u32 4294901760, %v8877_v57  ;;  %v3580_v20 = vand.u32 4294901760, %v3579_v31  ;;  %v7015_v6 = vpack.c.bf16 %v8235_v18, %v9986_v46  ;;  %v6843_v24 = vpack.c.bf16 %v7743_v38, %v7739_v35  ;;  %v10000_v46 = vld [vmem:[#allocation108_spill] sm:$0xff]  ;;  %v10038_v9 = vld [vmem:[#allocation101_spill] sm:$0xff] }
 0x1aa   :  { %6439 = vmatmul.mubr.f32.gmra.mrb[42].mxu0 %v3560_v49  ;;  %v3570_v41 = vand.u32 4294901760, %v3569_v21  ;;  %v9780_v26 = vand.u32 4294901760, %v8883_v28  ;;  %v7019_v25 = vpack.c.bf16 %v8256_v43, %v8246_v19  ;;  %v6847_v18 = vpack.c.bf16 %v9893_v3, %v9890_v15  ;;  %v9989_v15 = vld [vmem:[#allocation51_spill] sm:$0xff] }
 0x1ab   :  { %v3599_v51 = vsub.f32 %v8877_v57, %v9779_v13  ;;  %v7023_v35 = vpack.c.bf16 %v8271_v62, %v8264_v17  ;;  %v6851_v38 = vpack.c.bf16 %v9895_v39, %v9894_v29  ;;  %v7027_v19 = vpack.c.bf16 %v8281_v11, %v8276_v59  ;;  %v9987_v59 = vld [vmem:[#allocation24_spill] sm:$0xff]  ;;  %v9988_v62 = vld [vmem:[#allocation26_spill] sm:$0xff]  ;;  %v9990_v3 = vld [vmem:[#allocation55_spill] sm:$0xff] }
 0x1ac   :  { %6441 = vmatprep.mubr.f32.mxu0 %v3570_v41  ;;  %v3589_v49 = vsub.f32 %v8883_v28, %v9780_v26  ;;  %v6855_v17 = vpack.c.bf16 %v9898_v22, %v9896_v48  ;;  %v7031_v43 = vpack.c.bf16 %v9908_v33, %v9906_v23  ;;  %v6859_v11 = vpack.c.bf16 %v9988_v62, %v9987_v59  ;;  %v9991_v39 = vld [vmem:[#allocation103_spill] sm:$0xff]  ;;  %v9992_v33 = vld [vmem:[#allocation105_spill] sm:$0xff]  ;;  %v9993_v48 = vld [vmem:[#allocation104_spill] sm:$0xff] }
 0x1ad   :  { %v3600_v31 = vand.u32 4294901760, %v3599_v51  ;;  %v7035_v29 = vpack.c.bf16 %v9990_v3, %v9989_v15  ;;  %v9994_v22 = vld [vmem:[#allocation32_spill] sm:$0xff]  ;;  %v9997_v41 = vld [vmem:[#allocation58_spill] sm:$0xff]  ;;  %v9998_v51 = vld [vmem:[#allocation37_spill] sm:$0xff] }
 0x1ae   :  { %6442 = vmatmul.mubr.f32.gmra.mrb[44].mxu0 %v3580_v20  ;;  %6838 = vmatpush3.bf16.xpose.msra.mxu1 %v6835_v7  ;;  %v3590_v21 = vand.u32 4294901760, %v3589_v49  ;;  %v9995_v23 = vld [vmem:[#allocation36_spill] sm:$0xff]  ;;  %v10002_v49 = vld [vmem:[#allocation38_spill] sm:$0xff]  ;;  %v10014_v3 = vld [vmem:[#allocation75_spill] sm:$0xff] }
 0x1af   :  { %7014 = vmatpush3.bf16.xpose.msra.mxu0 %v7011_v12  ;;  %6840 = vmatprep.subr.bf16.mxu1 %v6839_v50  ;;  %v6863_v7 = vpack.c.bf16 %v9995_v23, %v9994_v22  ;;  %v9996_v12 = vld [vmem:[#allocation56_spill] sm:$0xff]  ;;  %v10033_v13 = vld [vmem:[#allocation30_spill] sm:$0xff]  ;;  %v10034_v26 = vld [vmem:[#allocation27_spill] sm:$0xff] }
 0x1b0   :  { %7016 = vmatprep.subr.bf16.mxu0 %v7015_v6  ;;  %6444 = vmatprep.mubr.f32.mxu0 %v3590_v21  ;;  %v7039_v20 = vpack.c.bf16 %v9997_v41, %v9996_v12  ;;  %v10003_v21 = vld [vmem:[#allocation42_spill] sm:$0xff]  ;;  %v10011_v62 = vld [vmem:[#allocation88_spill] sm:$0xff]  ;;  %v10018_v12 = vld [vmem:[#allocation95_spill] sm:$0xff] }
 0x1b1   :  { %v10013_v15 = vld [vmem:[#allocation72_spill] sm:$0xff]  ;;  %v10019_v41 = vld [vmem:[#allocation14_spill] sm:$0xff] }
 0x1b2   :  { %6445 = vmatmul.mubr.f32.gmra.mrb[46].mxu0 %v3600_v31  ;;  %v6867_v31 = vpack.c.bf16 %v10003_v21, %v10002_v49  ;;  %v10015_v22 = vld [vmem:[#allocation60_spill] sm:$0xff] }
 0x1b3   :  { %6479 = vmatprep.mubr.f32.mxu0 %v8700_v60  ;;  %v10016_v23 = vld [vmem:[#allocation96_spill] sm:$0xff] }
 0x1b4   :  { %v10021_v49 = vld [vmem:[#allocation80_spill] sm:$0xff] }
 0x1b5   :  { %6144 = vmatmul.mubr.f32.vlgmr.msra.gmra.mrb[32].mxu1 %v8522_v58 }
 0x1b6   :  { %6146 = vmatprep.mubr.f32.mxu1 %v8538_v1  ;;  %6842 = vmatpush3.bf16.xpose.msra.mxu1 %v6839_v50  ;;  %v9999_v50 = vld [vmem:[#allocation109_spill] sm:$0xff] }
 0x1b7   :  { %7018 = vmatpush3.bf16.xpose.msra.mxu0 %v7015_v6  ;;  %6844 = vmatprep.subr.bf16.mxu1 %v6843_v24  ;;  %v10001_v6 = vld [vmem:[#allocation47_spill] sm:$0xff] }
 0x1b8   :  { %7020 = vmatprep.subr.bf16.mxu0 %v7019_v25 }
 0x1b9   :  { %6147 = vmatmul.mubr.f32.gmra.mrb[34].mxu1 %v8535_v61 }
 0x1ba   :  { %6149 = vmatprep.mubr.f32.mxu1 %v8562_v32 }
 0x1bd   :  { %6150 = vmatmul.mubr.f32.gmra.mrb[36].mxu1 %v8554_v55 }
 0x1be   :  { %6152 = vmatprep.mubr.f32.mxu1 %v8582_v4  ;;  %6846 = vmatpush3.bf16.xpose.msra.mxu1 %v6843_v24  ;;  %v10004_v24 = vld [vmem:[#allocation62_spill] sm:$0xff] }
 0x1bf   :  { %7022 = vmatpush3.bf16.xpose.msra.mxu0 %v7019_v25  ;;  %6848 = vmatprep.subr.bf16.mxu1 %v6847_v18  ;;  %v10005_v25 = vld [vmem:[#allocation63_spill] sm:$0xff] }
 0x1c0   :  { %7024 = vmatprep.subr.bf16.mxu0 %v7023_v35 }
 0x1c1   :  { %6153 = vmatmul.mubr.f32.gmra.mrb[38].mxu1 %v8578_v34 }
 0x1c2   :  { %6155 = vmatprep.mubr.f32.mxu1 %v8608_v16 }
 0x1c5   :  { %6156 = vmatmul.mubr.f32.gmra.mrb[40].mxu1 %v8600_v42 }
 0x1c6   :  { %6158 = vmatprep.mubr.f32.mxu1 %v8628_v52  ;;  %6850 = vmatpush3.bf16.xpose.msra.mxu1 %v6847_v18  ;;  %v7043_v18 = vpack.c.bf16 %v10005_v25, %v10004_v24  ;;  %v10023_v24 = vld [vmem:[#allocation98_spill] sm:$0xff]  ;;  %v10024_v25 = vld [vmem:[#allocation9_spill] sm:$0xff] }
 0x1c7   :  { %7026 = vmatpush3.bf16.xpose.msra.mxu0 %v7023_v35  ;;  %6852 = vmatprep.subr.bf16.mxu1 %v6851_v38  ;;  %v10006_v35 = vld [vmem:[#allocation45_spill] sm:$0xff] }
 0x1c8   :  { %7028 = vmatprep.subr.bf16.mxu0 %v7027_v19 }
 0x1c9   :  { %6159 = vmatmul.mubr.f32.gmra.mrb[42].mxu1 %v8624_v14 }
 0x1ca   :  { %6161 = vmatprep.mubr.f32.mxu1 %v8654_v47 }
 0x1cd   :  { %6162 = vmatmul.mubr.f32.gmra.mrb[44].mxu1 %v8646_v44 }
 0x1ce   :  { %6164 = vmatprep.mubr.f32.mxu1 %v8674_v54  ;;  %6854 = vmatpush3.bf16.xpose.msra.mxu1 %v6851_v38  ;;  %v10007_v38 = vld [vmem:[#allocation114_spill] sm:$0xff] }
 0x1cf   :  { %7030 = vmatpush3.bf16.xpose.msra.mxu0 %v7027_v19  ;;  %6856 = vmatprep.subr.bf16.mxu1 %v6855_v17  ;;  %v10008_v19 = vld [vmem:[#allocation113_spill] sm:$0xff] }
 0x1d0   :  { %7032 = vmatprep.subr.bf16.mxu0 %v7031_v43 }
 0x1d1   :  { %6165 = vmatmul.mubr.f32.gmra.mrb[46].mxu1 %v8670_v53 }
 0x1d2   :  { %6199 = vmatprep.mubr.f32.mxu1 %v8531_v45 }
 0x1d6   :  { %6480 = vmatmul.mubr.f32.vlgmr.msra.gmra.mrb[32].mxu0 %v9991_v39  ;;  %6858 = vmatpush3.bf16.xpose.msra.mxu1 %v6855_v17  ;;  %v10009_v17 = vld [vmem:[#allocation66_spill] sm:$0xff] }
 0x1d7   :  { %6482 = vmatprep.mubr.f32.mxu0 %v9992_v33  ;;  %7034 = vmatpush3.bf16.xpose.msra.mxu0 %v7031_v43  ;;  %v10010_v43 = vld [vmem:[#allocation68_spill] sm:$0xff] }
 0x1d8   :  { %6860 = vmatprep.subr.bf16.mxu1 %v6859_v11  ;;  %7036 = vmatprep.subr.bf16.mxu0 %v7035_v29  ;;  %v7047_v59 = vpack.c.bf16 %v10010_v43, %v10009_v17  ;;  %v10026_v17 = vld [vmem:[#allocation20_spill] sm:$0xff]  ;;  %v10027_v43 = vld [vmem:[#allocation83_spill] sm:$0xff] }
 0x1da   :  { %6483 = vmatmul.mubr.f32.gmra.mrb[34].mxu0 %v9993_v48 }
 0x1db   :  { %6485 = vmatprep.mubr.f32.mxu0 %v8750_v8  ;;  %v10056_v8 = vld [vmem:[#allocation6_spill] sm:$0xff] }
 0x1de   :  { %6486 = vmatmul.mubr.f32.gmra.mrb[36].mxu0 %v9998_v51  ;;  %6862 = vmatpush3.bf16.xpose.msra.mxu1 %v6859_v11  ;;  %v10012_v11 = vld [vmem:[#allocation35_spill] sm:$0xff]  ;;  %v10055_v51 = vld [vmem:[#allocation5_spill] sm:$0xff] }
 0x1df   :  { %6488 = vmatprep.mubr.f32.mxu0 %v9999_v50  ;;  %7038 = vmatpush3.bf16.xpose.msra.mxu0 %v7035_v29  ;;  %v7051_v29 = vpack.c.bf16 %v10014_v3, %v10013_v15  ;;  %v10029_v3 = vld [vmem:[#allocation17_spill] sm:$0xff]  ;;  %v10054_v50 = vld [vmem:[#allocation44_spill] sm:$0xff]  ;;  %v6903_v48 = vpack.c.bf16 %v10056_v8, %v10055_v51  ;;  %v10061_v8 = vand.u32 4294901760, %v10015_v22  ;;  %v10062_v51 = vand.u32 4294901760, %v10016_v23 }
 0x1e0   :  { %6864 = vmatprep.subr.bf16.mxu1 %v6863_v7  ;;  %7040 = vmatprep.subr.bf16.mxu0 %v7039_v20 }
 0x1e2   :  { %6489 = vmatmul.mubr.f32.gmra.mrb[38].mxu0 %v10000_v46  ;;  %v10053_v46 = vld [vmem:[#allocation23_spill] sm:$0xff] }
 0x1e3   :  { %6491 = vmatprep.mubr.f32.mxu0 %v10001_v6  ;;  %v10052_v6 = vld [vmem:[#allocation71_spill] sm:$0xff] }
 0x1e6   :  { %6492 = vmatmul.mubr.f32.gmra.mrb[40].mxu0 %v10006_v35  ;;  %6866 = vmatpush3.bf16.xpose.msra.mxu1 %v6863_v7  ;;  %v10017_v7 = vld [vmem:[#allocation90_spill] sm:$0xff]  ;;  %v10051_v35 = vld [vmem:[#allocation112_spill] sm:$0xff] }
 0x1e7   :  { %6494 = vmatprep.mubr.f32.mxu0 %v10007_v38  ;;  %7042 = vmatpush3.bf16.xpose.msra.mxu0 %v7039_v20  ;;  %v10020_v20 = vld [vmem:[#allocation77_spill] sm:$0xff]  ;;  %v10050_v38 = vld [vmem:[#allocation110_spill] sm:$0xff] }
 0x1e8   :  { %6868 = vmatprep.subr.bf16.mxu1 %v6867_v31  ;;  %7044 = vmatprep.subr.bf16.mxu0 %v7043_v18  ;;  %v7055_v21 = vpack.c.bf16 %v10021_v49, %v10020_v20  ;;  %v10030_v20 = vld [vmem:[#allocation100_spill] sm:$0xff]  ;;  %v10031_v49 = vld [vmem:[#allocation11_spill] sm:$0xff] }
 0x1ea   :  { %6495 = vmatmul.mubr.f32.gmra.mrb[42].mxu0 %v10008_v19  ;;  %v10049_v19 = vld [vmem:[#allocation92_spill] sm:$0xff] }
 0x1eb   :  { %6497 = vmatprep.mubr.f32.mxu0 %v8851_v56  ;;  %v10046_v56 = vld [vmem:[#allocation64_spill] sm:$0xff] }
 0x1ee   :  { %6498 = vmatmul.mubr.f32.gmra.mrb[44].mxu0 %v8845_v5  ;;  %6870 = vmatpush3.bf16.xpose.msra.mxu1 %v6867_v31  ;;  %v10022_v31 = vld [vmem:[#allocation13_spill] sm:$0xff] }
 0x1ef   :  { %6500 = vmatprep.mubr.f32.mxu0 %v8871_v0  ;;  %7046 = vmatpush3.bf16.xpose.msra.mxu0 %v7043_v18  ;;  %v10025_v18 = vld [vmem:[#allocation97_spill] sm:$0xff]  ;;  %v10044_v0 = vld [vmem:[#allocation106_spill] sm:$0xff] }
 0x1f0   :  { %6872 = vmatprep.subr.bf16.mxu1 %v10011_v62  ;;  %7048 = vmatprep.subr.bf16.mxu0 %v7047_v59  ;;  %v10045_v5 = vld [vmem:[#allocation69_spill] sm:$0xff] }
 0x1f2   :  { %6501 = vmatmul.mubr.f32.gmra.mrb[46].mxu0 %v8867_v40  ;;  %v10042_v40 = vld [vmem:[#allocation18_spill] sm:$0xff] }
 0x1f3   :  { %6535 = vmatprep.mubr.f32.mxu0 %v10012_v11 }
 0x1f5   :  { %6200 = vmatmul.mubr.f32.vlgmr.msra.gmra.mrb[32].mxu1 %v10015_v22  ;;  %v10068_v22 = vand.u32 4294901760, %v10022_v31 }
 0x1f6   :  { %6202 = vmatprep.mubr.f32.mxu1 %v10016_v23  ;;  %6874 = vmatpush3.bf16.xpose.msra.mxu1 %v10011_v62  ;;  %v10069_v23 = vand.u32 4294901760, %v10023_v24 }
 0x1f7   :  { %7050 = vmatpush3.bf16.xpose.msra.mxu0 %v7047_v59  ;;  %6876 = vmatprep.subr.bf16.mxu1 %v10017_v7  ;;  %v10028_v59 = vld [vmem:[#allocation85_spill] sm:$0xff] }
 0x1f8   :  { %7052 = vmatprep.subr.bf16.mxu0 %v7051_v29  ;;  %v7059_v15 = vpack.c.bf16 %v10028_v59, %v10027_v43  ;;  %v10036_v43 = vld [vmem:[#allocation16_spill] sm:$0xff]  ;;  %v10037_v59 = vld [vmem:[#allocation89_spill] sm:$0xff] }
 0x1f9   :  { %6203 = vmatmul.mubr.f32.gmra.mrb[34].mxu1 %v10018_v12 }
 0x1fa   :  { %6205 = vmatprep.mubr.f32.mxu1 %v10019_v41 }
 0x1fd   :  { %6206 = vmatmul.mubr.f32.gmra.mrb[36].mxu1 %v10022_v31  ;;  %v10075_v31 = vand.u32 4294901760, %v10029_v3 }
 0x1fe   :  { %6208 = vmatprep.mubr.f32.mxu1 %v10023_v24  ;;  %6878 = vmatpush3.bf16.xpose.msra.mxu1 %v10017_v7  ;;  %v10076_v24 = vand.u32 4294901760, %v10030_v20 }
 0x1ff   :  { %7054 = vmatpush3.bf16.xpose.msra.mxu0 %v7051_v29  ;;  %6880 = vmatprep.subr.bf16.mxu1 %v10024_v25  ;;  %v10032_v29 = vld [vmem:[#allocation99_spill] sm:$0xff] }
 0x200   :  { %7056 = vmatprep.subr.bf16.mxu0 %v7055_v21 }
 0x201   :  { %6209 = vmatmul.mubr.f32.gmra.mrb[38].mxu1 %v10025_v18 }
 0x202   :  { %6211 = vmatprep.mubr.f32.mxu1 %v10026_v17 }
 0x205   :  { %6212 = vmatmul.mubr.f32.gmra.mrb[40].mxu1 %v10029_v3  ;;  %v10082_v3 = vld [vmem:[#allocation48_spill] sm:$0xff] }
 0x206   :  { %6214 = vmatprep.mubr.f32.mxu1 %v10030_v20  ;;  %6882 = vmatpush3.bf16.xpose.msra.mxu1 %v10024_v25  ;;  %v10084_v20 = vand.u32 4294901760, %v10034_v26 }
 0x207   :  { %7058 = vmatpush3.bf16.xpose.msra.mxu0 %v7055_v21  ;;  %6884 = vmatprep.subr.bf16.mxu1 %v10031_v49  ;;  %v10039_v21 = vand.u32 4294901760, %v8531_v45  ;;  %v10047_v45 = vld [vmem:[#allocation111_spill] sm:$0xff] }
 0x208   :  { %7060 = vmatprep.subr.bf16.mxu0 %v7059_v15 }
 0x209   :  { %6215 = vmatmul.mubr.f32.gmra.mrb[42].mxu1 %v10032_v29 }
 0x20a   :  { %6217 = vmatprep.mubr.f32.mxu1 %v10033_v13 }
 0x20d   :  { %6218 = vmatmul.mubr.f32.gmra.mrb[44].mxu1 %v10034_v26 }
 0x20e   :  { %6220 = vmatprep.mubr.f32.mxu1 %v10035_v63  ;;  %6886 = vmatpush3.bf16.xpose.msra.mxu1 %v10031_v49 }
 0x20f   :  { %7062 = vmatpush3.bf16.xpose.msra.mxu0 %v7059_v15  ;;  %6888 = vmatprep.subr.bf16.mxu1 %v10036_v43  ;;  %v10043_v15 = vld [vmem:[#allocation91_spill] sm:$0xff] }
 0x210   :  { %7064 = vmatprep.subr.bf16.mxu0 %v10037_v59 }
 0x211   :  { %6221 = vmatmul.mubr.f32.gmra.mrb[46].mxu1 %v10038_v9 }
 0x212   :  { %6255 = vmatprep.mubr.f32.mxu1 %v10039_v21  ;;  %v10048_v21 = vld [vmem:[#allocation22_spill] sm:$0xff] }
 0x216   :  { %6536 = vmatmul.mubr.f32.vlgmr.msra.gmra.mrb[32].mxu0 %v10040_v37  ;;  %6890 = vmatpush3.bf16.xpose.msra.mxu1 %v10036_v43 }
 0x217   :  { %6538 = vmatprep.mubr.f32.mxu0 %v10041_v2  ;;  %7066 = vmatpush3.bf16.xpose.msra.mxu0 %v10037_v59 }
 0x218   :  { %6892 = vmatprep.subr.bf16.mxu1 %v10042_v40  ;;  %7068 = vmatprep.subr.bf16.mxu0 %v10043_v15 }
 0x21a   :  { %6539 = vmatmul.mubr.f32.gmra.mrb[34].mxu0 %v10044_v0 }
 0x21b   :  { %6541 = vmatprep.mubr.f32.mxu0 %v10045_v5 }
 0x21e   :  { %6542 = vmatmul.mubr.f32.gmra.mrb[36].mxu0 %v10046_v56  ;;  %6894 = vmatpush3.bf16.xpose.msra.mxu1 %v10042_v40  ;;  %v10060_v40 = vld [vmem:[#allocation8_spill] sm:$0xff] }
 0x21f   :  { %6544 = vmatprep.mubr.f32.mxu0 %v10047_v45  ;;  %7070 = vmatpush3.bf16.xpose.msra.mxu0 %v10043_v15  ;;  %v10059_v15 = vld [vmem:[#allocation7_spill] sm:$0xff] }
 0x220   :  { %6896 = vmatprep.subr.bf16.mxu1 %v10048_v21  ;;  %7072 = vmatprep.subr.bf16.mxu0 %v10049_v19  ;;  %v6907_v33 = vpack.c.bf16 %v10060_v40, %v10059_v15  ;;  %v10067_v40 = vld [vmem:[#allocation15_spill] sm:$0xff] }
 0x222   :  { %6545 = vmatmul.mubr.f32.gmra.mrb[38].mxu0 %v10050_v38 }
 0x223   :  { %6547 = vmatprep.mubr.f32.mxu0 %v10051_v35 }
 0x226   :  { %6548 = vmatmul.mubr.f32.gmra.mrb[40].mxu0 %v10052_v6  ;;  %6898 = vmatpush3.bf16.xpose.msra.mxu1 %v10048_v21  ;;  %v10058_v21 = vand.u32 4294901760, %v10012_v11  ;;  %v10065_v11 = vand.u32 4294901760, %v10019_v41  ;;  %v10073_v41 = vld [vmem:[#allocation19_spill] sm:$0xff] }
 0x227   :  { %6550 = vmatprep.mubr.f32.mxu0 %v8837_v10  ;;  %7074 = vmatpush3.bf16.xpose.msra.mxu0 %v10049_v19  ;;  %v10057_v19 = vld [vmem:[#allocation46_spill] sm:$0xff] }
 0x228   :  { %6900 = vmatprep.subr.bf16.mxu1 %v10053_v46  ;;  %7076 = vmatprep.subr.bf16.mxu0 %v10054_v50 }
 0x22a   :  { %6551 = vmatmul.mubr.f32.gmra.mrb[42].mxu0 %v8829_v36 }
 0x22b   :  { %6553 = vmatprep.mubr.f32.mxu0 %v8861_v27 }
 0x22e   :  { %6554 = vmatmul.mubr.f32.gmra.mrb[44].mxu0 %v8855_v30  ;;  %6902 = vmatpush3.bf16.xpose.msra.mxu1 %v10053_v46  ;;  %v10064_v46 = vand.u32 4294901760, %v10018_v12  ;;  %v10072_v12 = vand.u32 4294901760, %v10026_v17  ;;  %v10079_v17 = vand.u32 4294901760, %v10033_v13  ;;  %v10086_v13 = vand.u32 4294901760, %v10038_v9 }
 0x22f   :  { %6556 = vmatprep.mubr.f32.mxu0 %v8883_v28  ;;  %7078 = vmatpush3.bf16.xpose.msra.mxu0 %v10054_v50  ;;  %v10063_v50 = vld [vmem:[#allocation12_spill] sm:$0xff]  ;;  %v10094_v9 = vand.u32 4294901760, %v10044_v0  ;;  %v10102_v0 = vand.u32 4294901760, %v10050_v38  ;;  %v10110_v38 = vand.u32 4294901760, %v8829_v36  ;;  %v10116_v36 = vand.u32 4294901760, %v8877_v57 }
 0x230   :  { %6904 = vmatprep.subr.bf16.mxu1 %v6903_v48  ;;  %7080 = vmatprep.subr.bf16.mxu0 %v10057_v19 }
 0x232   :  { %6557 = vmatmul.mubr.f32.gmra.mrb[46].mxu0 %v8877_v57  ;;  %v10120_v57 = vld [vmem:[#allocation84_spill] sm:$0xff] }
 0x233   :  { %6591 = vmatprep.mubr.f32.mxu0 %v10058_v21  ;;  %v10066_v21 = vld [vmem:[#allocation10_spill] sm:$0xff] }
 0x234   :  { %v6911_v15 = vpack.c.bf16 %v10067_v40, %v10066_v21  ;;  %v10081_v21 = vld [vmem:[#allocation28_spill] sm:$0xff] }
 0x235   :  { %6256 = vmatmul.mubr.f32.vlgmr.msra.gmra.mrb[32].mxu1 %v10061_v8  ;;  %v10074_v8 = vld [vmem:[#allocation21_spill] sm:$0xff] }
 0x236   :  { %6258 = vmatprep.mubr.f32.mxu1 %v10062_v51  ;;  %6906 = vmatpush3.bf16.xpose.msra.mxu1 %v6903_v48  ;;  %v10070_v48 = vld [vmem:[#allocation93_spill] sm:$0xff]  ;;  %v6915_v51 = vpack.c.bf16 %v10074_v8, %v10073_v41 }
 0x237   :  { %7082 = vmatpush3.bf16.xpose.msra.mxu0 %v10057_v19  ;;  %6908 = vmatprep.subr.bf16.mxu1 %v6907_v33  ;;  %v10090_v8 = vld [vmem:[#allocation53_spill] sm:$0xff] }
 0x238   :  { %7084 = vmatprep.subr.bf16.mxu0 %v10063_v50 }
 0x239   :  { %6259 = vmatmul.mubr.f32.gmra.mrb[34].mxu1 %v10064_v46  ;;  %v10071_v46 = vand.u32 4294901760, %v10025_v18  ;;  %v10078_v18 = vand.u32 4294901760, %v10032_v29  ;;  %v10087_v29 = vld [vmem:[#allocation54_spill] sm:$0xff] }
 0x23a   :  { %6261 = vmatprep.mubr.f32.mxu1 %v10065_v11  ;;  %v10080_v11 = vld [vmem:[#allocation25_spill] sm:$0xff] }
 0x23b   :  { %v6919_v40 = vpack.c.bf16 %v10081_v21, %v10080_v11  ;;  %v10098_v21 = vld [vmem:[#allocation59_spill] sm:$0xff] }
 0x23d   :  { %6262 = vmatmul.mubr.f32.gmra.mrb[36].mxu1 %v10068_v22  ;;  %v10083_v22 = vld [vmem:[#allocation49_spill] sm:$0xff] }
 0x23e   :  { %6264 = vmatprep.mubr.f32.mxu1 %v10069_v23  ;;  %6910 = vmatpush3.bf16.xpose.msra.mxu1 %v6907_v33  ;;  %v10077_v33 = vld [vmem:[#allocation94_spill] sm:$0xff]  ;;  %v7095_v23 = vpack.c.bf16 %v10083_v22, %v10082_v3  ;;  %v10099_v3 = vld [vmem:[#allocation61_spill] sm:$0xff] }
 0x23f   :  { %7086 = vmatpush3.bf16.xpose.msra.mxu0 %v10063_v50  ;;  %6912 = vmatprep.subr.bf16.mxu1 %v6911_v15  ;;  %v10104_v22 = vld [vmem:[#allocation41_spill] sm:$0xff] }
 0x240   :  { %7088 = vmatprep.subr.bf16.mxu0 %v10070_v48 }
 0x241   :  { %6265 = vmatmul.mubr.f32.gmra.mrb[38].mxu1 %v10071_v46  ;;  %v10088_v46 = vld [vmem:[#allocation29_spill] sm:$0xff] }
 0x242   :  { %6267 = vmatprep.mubr.f32.mxu1 %v10072_v12  ;;  %v10089_v12 = vld [vmem:[#allocation31_spill] sm:$0xff] }
 0x243   :  { %v6923_v41 = vpack.c.bf16 %v10089_v12, %v10088_v46  ;;  %v10108_v46 = vand.u32 4294901760, %v10052_v6  ;;  %v10112_v12 = vld [vmem:[#allocation70_spill] sm:$0xff]  ;;  %v10115_v6 = vand.u32 4294901760, %v8883_v28 }
 0x245   :  { %6268 = vmatmul.mubr.f32.gmra.mrb[40].mxu1 %v10075_v31  ;;  %v10091_v31 = vld [vmem:[#allocation57_spill] sm:$0xff] }
 0x246   :  { %6270 = vmatprep.mubr.f32.mxu1 %v10076_v24  ;;  %6914 = vmatpush3.bf16.xpose.msra.mxu1 %v6911_v15  ;;  %v10085_v15 = vand.u32 4294901760, %v10035_v63  ;;  %v7099_v26 = vpack.c.bf16 %v10091_v31, %v10090_v8  ;;  %v10092_v24 = vand.u32 4294901760, %v10040_v37  ;;  %v10093_v63 = vand.u32 4294901760, %v10041_v2 }
 0x247   :  { %7090 = vmatpush3.bf16.xpose.msra.mxu0 %v10070_v48  ;;  %6916 = vmatprep.subr.bf16.mxu1 %v6915_v51  ;;  %v7103_v37 = vpack.c.bf16 %v10099_v3, %v10098_v21  ;;  %v10101_v2 = vand.u32 4294901760, %v10047_v45  ;;  %v10109_v45 = vand.u32 4294901760, %v8837_v10  ;;  %v10114_v31 = vand.u32 4294901760, %v8855_v30  ;;  %v10118_v10 = vld [vmem:[#allocation79_spill] sm:$0xff]  ;;  %v10119_v30 = vld [vmem:[#allocation82_spill] sm:$0xff]  ;;  %v10134_v21 = vld [vmem:[#allocation45_spill] sm:$0xff] }
 0x248   :  { %7092 = vmatprep.subr.bf16.mxu0 %v10077_v33  ;;  %v7119_v28 = vpack.c.bf16 %v10120_v57, %v10119_v30  ;;  %v10135_v3 = vld [vmem:[#allocation114_spill] sm:$0xff] }
 0x249   :  { %6271 = vmatmul.mubr.f32.gmra.mrb[42].mxu1 %v10078_v18  ;;  %v10096_v18 = vld [vmem:[#allocation34_spill] sm:$0xff] }
 0x24a   :  { %6273 = vmatprep.mubr.f32.mxu1 %v10079_v17  ;;  %v10097_v17 = vld [vmem:[#allocation39_spill] sm:$0xff] }
 0x24b   :  { %v6927_v11 = vpack.c.bf16 %v10097_v17, %v10096_v18  ;;  %v10128_v18 = vld [vmem:[#allocation37_spill] sm:$0xff]  ;;  %v10131_v17 = vld [vmem:[#allocation92_spill] sm:$0xff] }
 0x24d   :  { %6274 = vmatmul.mubr.f32.gmra.mrb[44].mxu1 %v10084_v20 }
 0x24e   :  { %6276 = vmatprep.mubr.f32.mxu1 %v10085_v15  ;;  %6918 = vmatpush3.bf16.xpose.msra.mxu1 %v6915_v51  ;;  %v10095_v51 = vand.u32 4294901760, %v10045_v5  ;;  %v10103_v5 = vand.u32 4294901760, %v10051_v35  ;;  %v10106_v15 = vld [vmem:[#allocation65_spill] sm:$0xff]  ;;  %v10111_v35 = vand.u32 4294901760, %v8861_v27  ;;  %v10117_v27 = vld [vmem:[#allocation76_spill] sm:$0xff] }
 0x24f   :  { %7094 = vmatpush3.bf16.xpose.msra.mxu0 %v10077_v33  ;;  %6920 = vmatprep.subr.bf16.mxu1 %v6919_v40 }
 0x250   :  { %7096 = vmatprep.subr.bf16.mxu0 %v7095_v23 }
 0x251   :  { %6277 = vmatmul.mubr.f32.gmra.mrb[46].mxu1 %v10086_v13  ;;  %v10107_v13 = vld [vmem:[#allocation67_spill] sm:$0xff] }
 0x252   :  { %6311 = vmatprep.mubr.f32.mxu1 %v10087_v29 }
 0x256   :  { %6592 = vmatmul.mubr.f32.vlgmr.msra.gmra.mrb[32].mxu0 %v10092_v24  ;;  %6922 = vmatpush3.bf16.xpose.msra.mxu1 %v6919_v40  ;;  %v10100_v40 = vand.u32 4294901760, %v10046_v56  ;;  %v7107_v56 = vpack.c.bf16 %v10107_v13, %v10106_v15  ;;  %v10122_v24 = vld [vmem:[#allocation87_spill] sm:$0xff] }
 0x257   :  { %6594 = vmatprep.mubr.f32.mxu0 %v10093_v63  ;;  %7098 = vmatpush3.bf16.xpose.msra.mxu0 %v7095_v23  ;;  %v10105_v23 = vld [vmem:[#allocation43_spill] sm:$0xff] }
 0x258   :  { %6924 = vmatprep.subr.bf16.mxu1 %v6923_v41  ;;  %7100 = vmatprep.subr.bf16.mxu0 %v7099_v26  ;;  %v6931_v20 = vpack.c.bf16 %v10105_v23, %v10104_v22  ;;  %v10141_v22 = vld [vmem:[#allocation78_spill] sm:$0xff] }
 0x259   :  { %v10142_v23 = vld [vmem:[#allocation74_spill] sm:$0xff] }
 0x25a   :  { %6595 = vmatmul.mubr.f32.gmra.mrb[34].mxu0 %v10094_v9  ;;  %v10126_v9 = vld [vmem:[#allocation104_spill] sm:$0xff] }
 0x25b   :  { %6597 = vmatprep.mubr.f32.mxu0 %v10095_v51  ;;  %v10127_v51 = vld [vmem:[#allocation40_spill] sm:$0xff] }
 0x25e   :  { %6598 = vmatmul.mubr.f32.gmra.mrb[36].mxu0 %v10100_v40  ;;  %6926 = vmatpush3.bf16.xpose.msra.mxu1 %v6923_v41  ;;  %v10113_v41 = vld [vmem:[#allocation73_spill] sm:$0xff]  ;;  %v10137_v40 = vld [vmem:[#allocation44_spill] sm:$0xff] }
 0x25f   :  { %6600 = vmatprep.mubr.f32.mxu0 %v10101_v2  ;;  %7102 = vmatpush3.bf16.xpose.msra.mxu0 %v7099_v26  ;;  %v7111_v8 = vpack.c.bf16 %v10113_v41, %v10112_v12  ;;  %v7115_v26 = vpack.c.bf16 %v10118_v10, %v10117_v27  ;;  %v10138_v2 = vld [vmem:[#allocation113_spill] sm:$0xff] }
 0x260   :  { %6928 = vmatprep.subr.bf16.mxu1 %v6927_v11  ;;  %7104 = vmatprep.subr.bf16.mxu0 %v7103_v37 }
 0x262   :  { %6601 = vmatmul.mubr.f32.gmra.mrb[38].mxu0 %v10102_v0  ;;  %v10139_v0 = vld [vmem:[#allocation52_spill] sm:$0xff] }
 0x263   :  { %6603 = vmatprep.mubr.f32.mxu0 %v10103_v5  ;;  %v10140_v5 = vld [vmem:[#allocation50_spill] sm:$0xff] }
 0x266   :  { %6604 = vmatmul.mubr.f32.gmra.mrb[40].mxu0 %v10108_v46  ;;  %6930 = vmatpush3.bf16.xpose.msra.mxu1 %v6927_v11  ;;  %v10133_v11 = vld [vmem:[#allocation47_spill] sm:$0xff] }
 0x267   :  { %6606 = vmatprep.mubr.f32.mxu0 %v10109_v45  ;;  %7106 = vmatpush3.bf16.xpose.msra.mxu0 %v7103_v37  ;;  %v10136_v37 = vld [vmem:[#allocation23_spill] sm:$0xff] }
 0x268   :  { %6932 = vmatprep.subr.bf16.mxu1 %v6931_v20  ;;  %7108 = vmatprep.subr.bf16.mxu0 %v7107_v56 }
 0x26a   :  { %6607 = vmatmul.mubr.f32.gmra.mrb[42].mxu0 %v10110_v38 }
 0x26b   :  { %6609 = vmatprep.mubr.f32.mxu0 %v10111_v35 }
 0x26e   :  { %6610 = vmatmul.mubr.f32.gmra.mrb[44].mxu0 %v10114_v31  ;;  %6934 = vmatpush3.bf16.xpose.msra.mxu1 %v6931_v20 }
 0x26f   :  { %6612 = vmatprep.mubr.f32.mxu0 %v10115_v6  ;;  %7110 = vmatpush3.bf16.xpose.msra.mxu0 %v7107_v56 }
 0x270   :  { %6936 = vmatprep.subr.bf16.mxu1 %v10011_v62  ;;  %7112 = vmatprep.subr.bf16.mxu0 %v7111_v8 }
 0x272   :  { %6613 = vmatmul.mubr.f32.gmra.mrb[46].mxu0 %v10116_v36 }
 0x273   :  { %6647 = vmatprep.mubr.f32.mxu0 %v8700_v60 }
 0x275   :  { %6312 = vmatmul.mubr.f32.vlgmr.msra.gmra.mrb[32].mxu1 %v8522_v58 }
 0x276   :  { %6314 = vmatprep.mubr.f32.mxu1 %v8538_v1  ;;  %6938 = vmatpush3.bf16.xpose.msra.mxu1 %v10011_v62  ;;  %v10121_v62 = vld [vmem:[#allocation86_spill] sm:$0xff] }
 0x277   :  { %7114 = vmatpush3.bf16.xpose.msra.mxu0 %v7111_v8  ;;  %6940 = vmatprep.subr.bf16.mxu1 %v10017_v7  ;;  %v7123_v63 = vpack.c.bf16 %v10122_v24, %v10121_v62 }
 0x278   :  { %7116 = vmatprep.subr.bf16.mxu0 %v7115_v26 }
 0x279   :  { %6315 = vmatmul.mubr.f32.gmra.mrb[34].mxu1 %v8535_v61 }
 0x27a   :  { %6317 = vmatprep.mubr.f32.mxu1 %v8562_v32 }
 0x27d   :  { %6318 = vmatmul.mubr.f32.gmra.mrb[36].mxu1 %v8554_v55 }
 0x27e   :  { %6320 = vmatprep.mubr.f32.mxu1 %v8582_v4  ;;  %6942 = vmatpush3.bf16.xpose.msra.mxu1 %v10017_v7  ;;  %v10123_v7 = vld [vmem:[#allocation105_spill] sm:$0xff] }
 0x27f   :  { %7118 = vmatpush3.bf16.xpose.msra.mxu0 %v7115_v26  ;;  %6944 = vmatprep.subr.bf16.mxu1 %v10024_v25 }
 0x280   :  { %7120 = vmatprep.subr.bf16.mxu0 %v7119_v28 }
 0x281   :  { %6321 = vmatmul.mubr.f32.gmra.mrb[38].mxu1 %v8578_v34 }
 0x282   :  { %6323 = vmatprep.mubr.f32.mxu1 %v8608_v16 }
 0x285   :  { %6324 = vmatmul.mubr.f32.gmra.mrb[40].mxu1 %v8600_v42 }
 0x286   :  { %6326 = vmatprep.mubr.f32.mxu1 %v8628_v52  ;;  %6946 = vmatpush3.bf16.xpose.msra.mxu1 %v10024_v25  ;;  %v10124_v25 = vld [vmem:[#allocation18_spill] sm:$0xff] }
 0x287   :  { %7122 = vmatpush3.bf16.xpose.msra.mxu0 %v7119_v28  ;;  %6948 = vmatprep.subr.bf16.mxu1 %v10031_v49 }
 0x288   :  { %7124 = vmatprep.subr.bf16.mxu0 %v7123_v63 }
 0x289   :  { %6327 = vmatmul.mubr.f32.gmra.mrb[42].mxu1 %v8624_v14 }
 0x28a   :  { %6329 = vmatprep.mubr.f32.mxu1 %v8654_v47 }
 0x28d   :  { %6330 = vmatmul.mubr.f32.gmra.mrb[44].mxu1 %v8646_v44 }
 0x28e   :  { %6332 = vmatprep.mubr.f32.mxu1 %v8674_v54  ;;  %6950 = vmatpush3.bf16.xpose.msra.mxu1 %v10031_v49  ;;  %v10125_v49 = vld [vmem:[#allocation91_spill] sm:$0xff] }
 0x28f   :  { %7126 = vmatpush3.bf16.xpose.msra.mxu0 %v7123_v63  ;;  %6952 = vmatprep.subr.bf16.mxu1 %v10036_v43 }
 0x290   :  { %7128 = vmatprep.subr.bf16.mxu0 %v10037_v59 }
 0x291   :  { %6333 = vmatmul.mubr.f32.gmra.mrb[46].mxu1 %v8670_v53 }
 0x292   :  { %6367 = vmatprep.mubr.f32.mxu1 %v10087_v29  ;;  %v10129_v29 = vld [vmem:[#allocation109_spill] sm:$0xff] }
 0x296   :  { %6648 = vmatmul.mubr.f32.vlgmr.msra.gmra.mrb[32].mxu0 %v9991_v39  ;;  %6954 = vmatpush3.bf16.xpose.msra.mxu1 %v10036_v43  ;;  %v10130_v43 = vld [vmem:[#allocation22_spill] sm:$0xff] }
 0x297   :  { %6650 = vmatprep.mubr.f32.mxu0 %v10123_v7  ;;  %7130 = vmatpush3.bf16.xpose.msra.mxu0 %v10037_v59  ;;  %v10132_v59 = vld [vmem:[#allocation108_spill] sm:$0xff] }
 0x298   :  { %6956 = vmatprep.subr.bf16.mxu1 %v10124_v25  ;;  %7132 = vmatprep.subr.bf16.mxu0 %v10125_v49 }
 0x29a   :  { %6651 = vmatmul.mubr.f32.gmra.mrb[34].mxu0 %v10126_v9 }
 0x29b   :  { %6653 = vmatprep.mubr.f32.mxu0 %v10127_v51 }
 0x29e   :  { %6654 = vmatmul.mubr.f32.gmra.mrb[36].mxu0 %v10128_v18  ;;  %6958 = vmatpush3.bf16.xpose.msra.mxu1 %v10124_v25 }
 0x29f   :  { %6656 = vmatprep.mubr.f32.mxu0 %v10129_v29  ;;  %7134 = vmatpush3.bf16.xpose.msra.mxu0 %v10125_v49 }
 0x2a0   :  { %6960 = vmatprep.subr.bf16.mxu1 %v10130_v43  ;;  %7136 = vmatprep.subr.bf16.mxu0 %v10131_v17 }
 0x2a2   :  { %6657 = vmatmul.mubr.f32.gmra.mrb[38].mxu0 %v10132_v59 }
 0x2a3   :  { %6659 = vmatprep.mubr.f32.mxu0 %v10133_v11 }
 0x2a6   :  { %6660 = vmatmul.mubr.f32.gmra.mrb[40].mxu0 %v10134_v21  ;;  %6962 = vmatpush3.bf16.xpose.msra.mxu1 %v10130_v43 }
 0x2a7   :  { %6662 = vmatprep.mubr.f32.mxu0 %v10135_v3  ;;  %7138 = vmatpush3.bf16.xpose.msra.mxu0 %v10131_v17 }
 0x2a8   :  { %6964 = vmatprep.subr.bf16.mxu1 %v10136_v37  ;;  %7140 = vmatprep.subr.bf16.mxu0 %v10137_v40 }
 0x2aa   :  { %6663 = vmatmul.mubr.f32.gmra.mrb[42].mxu0 %v10138_v2 }
 0x2ab   :  { %6665 = vmatprep.mubr.f32.mxu0 %v10139_v0 }
 0x2ae   :  { %6666 = vmatmul.mubr.f32.gmra.mrb[44].mxu0 %v10140_v5  ;;  %6966 = vmatpush3.bf16.xpose.msra.mxu1 %v10136_v37 }
 0x2af   :  { %6668 = vmatprep.mubr.f32.mxu0 %v10141_v22  ;;  %7142 = vmatpush3.bf16.xpose.msra.mxu0 %v10137_v40 }
 0x2b0   :  { %7144 = vmatprep.subr.bf16.mxu0 %v10057_v19 }
 0x2b2   :  { %6669 = vmatmul.mubr.f32.gmra.mrb[46].mxu0 %v10142_v23 }
 0x2b3   :  { %6703 = vmatprep.mubr.f32.mxu0 %v8700_v60 }
 0x2b5   :  { %6368 = vmatmul.mubr.f32.vlgmr.msra.gmra.mrb[32].mxu1 %v8522_v58  ;;  %v4715_v58 = vlaneseq }
 0x2b6   :  { %6370 = vmatprep.mubr.f32.mxu1 %v8538_v1 }
 0x2b7   :  { %7146 = vmatpush3.bf16.xpose.msra.mxu0 %v10057_v19 }
 0x2b8   :  { %7148 = vmatprep.subr.bf16.mxu0 %v10063_v50 }
 0x2b9   :  { %6371 = vmatmul.mubr.f32.gmra.mrb[34].mxu1 %v8535_v61  ;;  %v4716_v61 = vand.u32 127, %v4715_v58 }
 0x2ba   :  { %6373 = vmatprep.mubr.f32.mxu1 %v8562_v32 }
 0x2bb   :  { %vm4717_vm1 = vcmp.lt.s32.totalorder %v4716_v61, 16 }
 0x2bd   :  { %6374 = vmatmul.mubr.f32.gmra.mrb[36].mxu1 %v8554_v55 }
 0x2be   :  { %6376 = vmatprep.mubr.f32.mxu1 %v8582_v4  ;;  %v7636_v4 = vmov -1e+30  }
 0x2bf   :  { %7150 = vmatpush3.bf16.xpose.msra.mxu0 %v10063_v50 }
 0x2c0   :  { %7152 = vmatprep.subr.bf16.mxu0 %v10070_v48 }
 0x2c1   :  { %6377 = vmatmul.mubr.f32.gmra.mrb[38].mxu1 %v8578_v34 }
 0x2c2   :  { %6379 = vmatprep.mubr.f32.mxu1 %v8608_v16 }
 0x2c5   :  { %6380 = vmatmul.mubr.f32.gmra.mrb[40].mxu1 %v8600_v42  ;;  %v9223_v42 = vsel %vm4717_vm1, 0.0, %v7636_v4 }
 0x2c6   :  { %6382 = vmatprep.mubr.f32.mxu1 %v8628_v52 }
 0x2c7   :  { %7154 = vmatpush3.bf16.xpose.msra.mxu0 %v10070_v48 }
 0x2c8   :  { %7156 = vmatprep.subr.bf16.mxu0 %v10077_v33 }
 0x2c9   :  { %6383 = vmatmul.mubr.f32.gmra.mrb[42].mxu1 %v8624_v14 }
 0x2ca   :  { %6385 = vmatprep.mubr.f32.mxu1 %v8654_v47 }
 0x2cd   :  { %6386 = vmatmul.mubr.f32.gmra.mrb[44].mxu1 %v8646_v44 }
 0x2ce   :  { %6388 = vmatprep.mubr.f32.mxu1 %v8674_v54 }
 0x2cf   :  { %7158 = vmatpush3.bf16.xpose.msra.mxu0 %v10077_v33 }
 0x2d1   :  { %6389 = vmatmul.mubr.f32.gmra.mrb[46].mxu1 %v8670_v53 }
 0x2d6   :  { %6704 = vmatmul.mubr.f32.vlgmr.msra.gmra.mrb[32].mxu0 %v9991_v39 }
 0x2d7   :  { %6706 = vmatprep.mubr.f32.mxu0 %v10123_v7 }
 0x2da   :  { %6707 = vmatmul.mubr.f32.gmra.mrb[34].mxu0 %v10126_v9 }
 0x2db   :  { %6709 = vmatprep.mubr.f32.mxu0 %v10127_v51 }
 0x2de   :  { %6710 = vmatmul.mubr.f32.gmra.mrb[36].mxu0 %v10128_v18 }
 0x2df   :  { %6712 = vmatprep.mubr.f32.mxu0 %v10129_v29 }
 0x2e2   :  { %6713 = vmatmul.mubr.f32.gmra.mrb[38].mxu0 %v10132_v59 }
 0x2e3   :  { %6715 = vmatprep.mubr.f32.mxu0 %v10133_v11 }
 0x2e6   :  { %6716 = vmatmul.mubr.f32.gmra.mrb[40].mxu0 %v10134_v21 }
 0x2e7   :  { %6718 = vmatprep.mubr.f32.mxu0 %v10135_v3 }
 0x2ea   :  { %6719 = vmatmul.mubr.f32.gmra.mrb[42].mxu0 %v10138_v2 }
 0x2eb   :  { %6721 = vmatprep.mubr.f32.mxu0 %v10139_v0 }
 0x2ee   :  { %6722 = vmatmul.mubr.f32.gmra.mrb[44].mxu0 %v10140_v5 }
 0x2ef   :  { %6724 = vmatprep.mubr.f32.mxu0 %v10141_v22 }
 0x2f2   :  { %6725 = vmatmul.mubr.f32.gmra.mrb[46].mxu0 %v10142_v23 }
 0x388   :  { %v6369_v1 = vpop.f32.mrb[32].mxu1 }
 0x389   :  { %v4652_v55 = vmul.f32 0.2, %v6369_v1  ;;  %v3223_v32 = vpop.f32.mrb[33].mxu1 }
 0x38a   :  { %v4651_v34 = vmul.f32 0.2, %v3223_v32 }
 0x38b   :  { %v4684_v16 = vmax.f32 %v6369_v1, %v4652_v55 }
 0x38c   :  { %v6372_v14 = vpop.f32.mrb[34].mxu1  ;;  %v4683_v52 = vmax.f32 %v3223_v32, %v4651_v34 }
 0x38d   :  { %v4654_v44 = vmul.f32 0.2, %v6372_v14  ;;  %v3235_v47 = vpop.f32.mrb[35].mxu1  ;;  %v9226_v53 = vadd.f32 %v9223_v42, %v4684_v16 }
 0x38e   :  { %v4653_v54 = vmul.f32 0.2, %v3235_v47  ;;  %v9230_v33 = vadd.f32 %v9223_v42, %v4683_v52 }
 0x38f   :  { %v4686_v60 = vmax.f32 %v6372_v14, %v4654_v44  ;;  %4753 = vmax.xlane.f32.xlu0 %v9226_v53 }
 0x390   :  { %v6375_v39 = vpop.f32.mrb[36].mxu1  ;;  %v4685_v50 = vmax.f32 %v3235_v47, %v4653_v54 }
 0x391   :  { %v4656_v19 = vmul.f32 0.2, %v6375_v39  ;;  %v3247_v48 = vpop.f32.mrb[37].mxu1  ;;  %v9233_v20 = vadd.f32 %v9223_v42, %v4686_v60 }
 0x392   :  { %v4655_v15 = vmul.f32 0.2, %v3247_v48  ;;  %v9238_v35 = vadd.f32 %v9223_v42, %v4685_v50 }
 0x393   :  { %4751 = vmax.xlane.f32.xlu0 %v9230_v33  ;;  %4757 = vmax.xlane.f32.xlu1 %v9233_v20  ;;  %v4688_v46 = vmax.f32 %v6375_v39, %v4656_v19 }
 0x394   :  { %v4687_v13 = vmax.f32 %v3247_v48, %v4655_v15  ;;  %v6378_v56 = vpop.f32.mrb[38].mxu1 }
 0x395   :  { %v4658_v45 = vmul.f32 0.2, %v6378_v56  ;;  %v3259_v38 = vpop.f32.mrb[39].mxu1  ;;  %v9246_v10 = vadd.f32 %v9223_v42, %v4688_v46 }
 0x396   :  { %v4657_v12 = vmul.f32 0.2, %v3259_v38  ;;  %v9241_v41 = vadd.f32 %v9223_v42, %v4687_v13 }
 0x397   :  { %4755 = vmax.xlane.f32.xlu1 %v9238_v35  ;;  %v4690_v6 = vmax.f32 %v6378_v56, %v4658_v45 }
 0x398   :  { %v4689_v8 = vmax.f32 %v3259_v38, %v4657_v12  ;;  %4759 = vmax.xlane.f32.xlu0 %v9241_v41  ;;  %v6381_v31 = vpop.f32.mrb[40].mxu1 }
 0x399   :  { %v4660_v36 = vmul.f32 0.2, %v6381_v31  ;;  %v3271_v27 = vpop.f32.mrb[41].mxu1  ;;  %v9254_v7 = vadd.f32 %v9223_v42, %v4690_v6 }
 0x39a   :  { %v4659_v26 = vmul.f32 0.2, %v3271_v27  ;;  %v9249_v30 = vadd.f32 %v9223_v42, %v4689_v8 }
 0x39b   :  { %4761 = vmax.xlane.f32.xlu1 %v9246_v10  ;;  %v4692_v62 = vmax.f32 %v6381_v31, %v4660_v36 }
 0x39c   :  { %v4691_v57 = vmax.f32 %v3271_v27, %v4659_v26  ;;  %4763 = vmax.xlane.f32.xlu0 %v9249_v30  ;;  %v6384_v28 = vpop.f32.mrb[42].mxu1 }
 0x39d   :  { %v4662_v24 = vmul.f32 0.2, %v6384_v28  ;;  %v3283_v63 = vpop.f32.mrb[43].mxu1  ;;  %v9262_v17 = vadd.f32 %v9223_v42, %v4692_v62 }
 0x39e   :  { %v4661_v25 = vmul.f32 0.2, %v3283_v63  ;;  %v9257_v49 = vadd.f32 %v9223_v42, %v4691_v57 }
 0x39f   :  { %4765 = vmax.xlane.f32.xlu1 %v9254_v7  ;;  %v4694_v18 = vmax.f32 %v6384_v28, %v4662_v24 }
 0x3a0   :  { %v4693_v9 = vmax.f32 %v3283_v63, %v4661_v25  ;;  %4767 = vmax.xlane.f32.xlu0 %v9257_v49  ;;  %v6387_v51 = vpop.f32.mrb[44].mxu1 }
 0x3a1   :  { %v4664_v29 = vmul.f32 0.2, %v6387_v51  ;;  %v3295_v43 = vpop.f32.mrb[45].mxu1  ;;  %v9270_v0 = vadd.f32 %v9223_v42, %v4694_v18 }
 0x3a2   :  { %v4663_v59 = vmul.f32 0.2, %v3295_v43  ;;  %v9265_v11 = vadd.f32 %v9223_v42, %v4693_v9 }
 0x3a3   :  { %4769 = vmax.xlane.f32.xlu1 %v9262_v17  ;;  %v4696_v37 = vmax.f32 %v6387_v51, %v4664_v29 }
 0x3a4   :  { %v4695_v21 = vmax.f32 %v3295_v43, %v4663_v59  ;;  %4771 = vmax.xlane.f32.xlu0 %v9265_v11  ;;  %v6390_v3 = vpop.f32.mrb[46].mxu1 }
 0x3a5   :  { %v4666_v40 = vmul.f32 0.2, %v6390_v3  ;;  %v3307_v2 = vpop.f32.mrb[47].mxu1  ;;  %v9278_v1 = vadd.f32 %v9223_v42, %v4696_v37 }
 0x3a6   :  { %v4665_v5 = vmul.f32 0.2, %v3307_v2  ;;  %v9273_v22 = vadd.f32 %v9223_v42, %v4695_v21 }
 0x3a7   :  { %4773 = vmax.xlane.f32.xlu1 %v9270_v0  ;;  %v4698_v58 = vmax.f32 %v6390_v3, %v4666_v40 }
 0x3a8   :  { %v4697_v23 = vmax.f32 %v3307_v2, %v4665_v5  ;;  %4775 = vmax.xlane.f32.xlu0 %v9273_v22 }
 0x3a9   :  { %v6705_v61 = vpop.f32.mrb[32].mxu0  ;;  %v9286_v44 = vadd.f32 %v9223_v42, %v4698_v58 }
 0x3aa   :  { %v4668_v55 = vmul.f32 0.2, %v6705_v61  ;;  %v4557_v32 = vpop.f32.mrb[33].mxu0  ;;  %v9281_v34 = vadd.f32 %v9223_v42, %v4697_v23 }
 0x3ab   :  { %v4667_v4 = vmul.f32 0.2, %v4557_v32  ;;  %4777 = vmax.xlane.f32.xlu1 %v9278_v1 }
 0x3ac   :  { %4779 = vmax.xlane.f32.xlu0 %v9281_v34  ;;  %v4700_v16 = vmax.f32 %v6705_v61, %v4668_v55 }
 0x3ad   :  { %v4699_v14 = vmax.f32 %v4557_v32, %v4667_v4  ;;  %v6708_v52 = vpop.f32.mrb[34].mxu0 }
 0x3ae   :  { %v4670_v47 = vmul.f32 0.2, %v6708_v52  ;;  %v4569_v54 = vpop.f32.mrb[35].mxu0  ;;  %v9294_v15 = vadd.f32 %v9223_v42, %v4700_v16 }
 0x3af   :  { %v4669_v60 = vmul.f32 0.2, %v4569_v54  ;;  %4781 = vmax.xlane.f32.xlu1 %v9286_v44  ;;  %v9290_v39 = vadd.f32 %v9223_v42, %v4699_v14 }
 0x3b0   :  { %v4702_v50 = vmax.f32 %v6708_v52, %v4670_v47 }
 0x3b1   :  { %v4701_v19 = vmax.f32 %v4569_v54, %v4669_v60  ;;  %4783 = vmax.xlane.f32.xlu0 %v9290_v39  ;;  %v6711_v48 = vpop.f32.mrb[36].mxu0 }
 0x3b2   :  { %v4672_v13 = vmul.f32 0.2, %v6711_v48  ;;  %v4581_v56 = vpop.f32.mrb[37].mxu0  ;;  %v9302_v31 = vadd.f32 %v9223_v42, %v4702_v50 }
 0x3b3   :  { %v4671_v46 = vmul.f32 0.2, %v4581_v56  ;;  %4785 = vmax.xlane.f32.xlu1 %v9294_v15  ;;  %v9298_v45 = vadd.f32 %v9223_v42, %v4701_v19 }
 0x3b4   :  { %v4704_v38 = vmax.f32 %v6711_v48, %v4672_v13 }
 0x3b5   :  { %v4703_v12 = vmax.f32 %v4581_v56, %v4671_v46  ;;  %4787 = vmax.xlane.f32.xlu0 %v9298_v45  ;;  %v6714_v8 = vpop.f32.mrb[38].mxu0 }
 0x3b6   :  { %v4674_v6 = vmul.f32 0.2, %v6714_v8  ;;  %v4593_v36 = vpop.f32.mrb[39].mxu0  ;;  %v9310_v24 = vadd.f32 %v9223_v42, %v4704_v38 }
 0x3b7   :  { %v4673_v27 = vmul.f32 0.2, %v4593_v36  ;;  %4789 = vmax.xlane.f32.xlu1 %v9302_v31  ;;  %v9306_v26 = vadd.f32 %v9223_v42, %v4703_v12 }
 0x3b8   :  { %v4706_v57 = vmax.f32 %v6714_v8, %v4674_v6 }
 0x3b9   :  { %v4705_v28 = vmax.f32 %v4593_v36, %v4673_v27  ;;  %4791 = vmax.xlane.f32.xlu0 %v9306_v26  ;;  %v6717_v62 = vpop.f32.mrb[40].mxu0 }
 0x3ba   :  { %v4676_v63 = vmul.f32 0.2, %v6717_v62  ;;  %v4605_v25 = vpop.f32.mrb[41].mxu0  ;;  %v9318_v59 = vadd.f32 %v9223_v42, %v4706_v57 }
 0x3bb   :  { %v4675_v9 = vmul.f32 0.2, %v4605_v25  ;;  %4793 = vmax.xlane.f32.xlu1 %v9310_v24  ;;  %v9314_v51 = vadd.f32 %v9223_v42, %v4705_v28 }
 0x3bc   :  { %v4708_v18 = vmax.f32 %v6717_v62, %v4676_v63 }
 0x3bd   :  { %v4707_v29 = vmax.f32 %v4605_v25, %v4675_v9  ;;  %4795 = vmax.xlane.f32.xlu0 %v9314_v51  ;;  %v6720_v43 = vpop.f32.mrb[42].mxu0 }
 0x3be   :  { %v4678_v21 = vmul.f32 0.2, %v6720_v43  ;;  %v4617_v3 = vpop.f32.mrb[43].mxu0  ;;  %v9326_v58 = vadd.f32 %v9223_v42, %v4708_v18 }
 0x3bf   :  { %v4677_v37 = vmul.f32 0.2, %v4617_v3  ;;  %4797 = vmax.xlane.f32.xlu1 %v9318_v59  ;;  %v9322_v40 = vadd.f32 %v9223_v42, %v4707_v29 }
 0x3c0   :  { %v4710_v2 = vmax.f32 %v6720_v43, %v4678_v21 }
 0x3c1   :  { %v4709_v5 = vmax.f32 %v4617_v3, %v4677_v37  ;;  %4799 = vmax.xlane.f32.xlu0 %v9322_v40  ;;  %v6723_v23 = vpop.f32.mrb[44].mxu0 }
 0x3c2   :  { %v4680_v61 = vmul.f32 0.2, %v6723_v23  ;;  %v4629_v55 = vpop.f32.mrb[45].mxu0  ;;  %v9334_v47 = vadd.f32 %v9223_v42, %v4710_v2 }
 0x3c3   :  { %v4679_v32 = vmul.f32 0.2, %v4629_v55  ;;  %4801 = vmax.xlane.f32.xlu1 %v9326_v58  ;;  %v9330_v4 = vadd.f32 %v9223_v42, %v4709_v5 }
 0x3c4   :  { %v4712_v16 = vmax.f32 %v6723_v23, %v4680_v61 }
 0x3c5   :  { %v4711_v14 = vmax.f32 %v4629_v55, %v4679_v32  ;;  %4803 = vmax.xlane.f32.xlu0 %v9330_v4  ;;  %v6726_v52 = vpop.f32.mrb[46].mxu0 }
 0x3c6   :  { %v4682_v54 = vmul.f32 0.2, %v6726_v52  ;;  %v4641_v60 = vpop.f32.mrb[47].mxu0  ;;  %v9342_v56 = vadd.f32 %v9223_v42, %v4712_v16 }
 0x3c7   :  { %v4681_v50 = vmul.f32 0.2, %v4641_v60  ;;  %4805 = vmax.xlane.f32.xlu1 %v9334_v47  ;;  %v9338_v19 = vadd.f32 %v9223_v42, %v4711_v14 }
 0x3c8   :  { %v4714_v48 = vmax.f32 %v6726_v52, %v4682_v54 }
 0x3c9   :  { %v4713_v13 = vmax.f32 %v4641_v60, %v4681_v50  ;;  %4807 = vmax.xlane.f32.xlu0 %v9338_v19 }
 0x3ca   :  { %v9345_v46 = vadd.f32 %v9223_v42, %v4714_v48 }
 0x3cb   :  { %4809 = vmax.xlane.f32.xlu1 %v9342_v56  ;;  %v9349_v38 = vadd.f32 %v9223_v42, %v4713_v13 }
 0x3cd   :  { %4811 = vmax.xlane.f32.xlu0 %v9349_v38 }
 0x3cf   :  { %4813 = vmax.xlane.f32.xlu1 %v9345_v46 }
 0x41c   :  { %v4754_v12 = vpop.xlane.xlu0 %4753 }
 0x41d   :  { %v4816_v8 = vsub.f32 %v9226_v53, %v4754_v12 }
 0x41f   :  { %v4849_v6 = vmul.f32 1.442695, %v4816_v8 }
 0x420   :  { %v4752_v36 = vpop.xlane.xlu0 %4751  ;;  %v4758_v27 = vpop.xlane.xlu1 %4757 }
 0x421   :  { %7484 = vpow2.f32 %v4849_v6  ;;  %v4815_v57 = vsub.f32 %v9230_v33, %v4752_v36  ;;  %v4818_v28 = vsub.f32 %v9233_v20, %v4758_v27 }
 0x423   :  { %v4847_v62 = vmul.f32 1.442695, %v4815_v57  ;;  %v4853_v63 = vmul.f32 1.442695, %v4818_v28 }
 0x424   :  { %v4756_v25 = vpop.xlane.xlu1 %4755 }
 0x425   :  { %7486 = vpow2.f32 %v4847_v62  ;;  %v4817_v42 = vsub.f32 %v9238_v35, %v4756_v25  ;;  %v4760_v9 = vpop.xlane.xlu0 %4759 }
 0x426   :  { %7488 = vpow2.f32 %v4853_v63  ;;  %v4819_v18 = vsub.f32 %v9241_v41, %v4760_v9 }
 0x427   :  { %v4851_v29 = vmul.f32 1.442695, %v4817_v42 }
 0x428   :  { %v4855_v53 = vmul.f32 1.442695, %v4819_v18  ;;  %v4762_v43 = vpop.xlane.xlu1 %4761 }
 0x429   :  { %7490 = vpow2.f32 %v4851_v29  ;;  %v4820_v21 = vsub.f32 %v9246_v10, %v4762_v43  ;;  %v4764_v3 = vpop.xlane.xlu0 %4763 }
 0x42a   :  { %v4821_v33 = vsub.f32 %v9249_v30, %v4764_v3  ;;  %7492 = vpow2.f32 %v4855_v53 }
 0x42b   :  { %v9360_v20 = vpop.eup %7484  ;;  %v4857_v37 = vmul.f32 1.442695, %v4820_v21 }
 0x42c   :  { %v4859_v2 = vmul.f32 1.442695, %v4821_v33  ;;  %v4766_v5 = vpop.xlane.xlu1 %4765  ;;  %4913 = vadd.xlane.f32.xlu1 %v9360_v20 }
 0x42d   :  { %7494 = vpow2.f32 %v4857_v37  ;;  %v4822_v35 = vsub.f32 %v9254_v7, %v4766_v5  ;;  %v4768_v41 = vpop.xlane.xlu0 %4767 }
 0x42e   :  { %v4823_v23 = vsub.f32 %v9257_v49, %v4768_v41  ;;  %7496 = vpow2.f32 %v4859_v2 }
 0x42f   :  { %v9365_v61 = vpop.eup %7486  ;;  %v4861_v10 = vmul.f32 1.442695, %v4822_v35 }
 0x430   :  { %v9367_v55 = vpop.eup %7488  ;;  %v4863_v30 = vmul.f32 1.442695, %v4823_v23  ;;  %v4770_v32 = vpop.xlane.xlu1 %4769  ;;  %4911 = vadd.xlane.f32.xlu0 %v9365_v61 }
 0x431   :  { %7498 = vpow2.f32 %v4861_v10  ;;  %v4824_v16 = vsub.f32 %v9262_v17, %v4770_v32  ;;  %4917 = vadd.xlane.f32.xlu1 %v9367_v55  ;;  %v4772_v14 = vpop.xlane.xlu0 %4771 }
 0x432   :  { %v4825_v7 = vsub.f32 %v9265_v11, %v4772_v14  ;;  %7500 = vpow2.f32 %v4863_v30 }
 0x433   :  { %v9373_v52 = vpop.eup %7490  ;;  %v4865_v49 = vmul.f32 1.442695, %v4824_v16 }
 0x434   :  { %v4867_v54 = vmul.f32 1.442695, %v4825_v7  ;;  %v4774_v60 = vpop.xlane.xlu1 %4773  ;;  %4915 = vadd.xlane.f32.xlu0 %v9373_v52  ;;  %v9377_v13 = vpop.eup %7492 }
 0x435   :  { %7502 = vpow2.f32 %v4865_v49  ;;  %v4826_v50 = vsub.f32 %v9270_v0, %v4774_v60  ;;  %v4776_v48 = vpop.xlane.xlu0 %4775 }
 0x436   :  { %v4827_v17 = vsub.f32 %v9273_v22, %v4776_v48  ;;  %7504 = vpow2.f32 %v4867_v54 }
 0x437   :  { %v9380_v12 = vpop.eup %7494  ;;  %v4869_v8 = vmul.f32 1.442695, %v4826_v50 }
 0x438   :  { %v4871_v11 = vmul.f32 1.442695, %v4827_v17  ;;  %v4778_v6 = vpop.xlane.xlu1 %4777  ;;  %4921 = vadd.xlane.f32.xlu1 %v9380_v12  ;;  %4919 = vadd.xlane.f32.xlu0 %v9377_v13  ;;  %v9385_v0 = vpop.eup %7496 }
 0x439   :  { %7506 = vpow2.f32 %v4869_v8  ;;  %v4828_v36 = vsub.f32 %v9278_v1, %v4778_v6  ;;  %v4780_v27 = vpop.xlane.xlu0 %4779 }
 0x43a   :  { %v4829_v57 = vsub.f32 %v9281_v34, %v4780_v27  ;;  %7508 = vpow2.f32 %v4871_v11 }
 0x43b   :  { %v9388_v28 = vpop.eup %7498  ;;  %v4873_v22 = vmul.f32 1.442695, %v4828_v36 }
 0x43c   :  { %v4875_v62 = vmul.f32 1.442695, %v4829_v57  ;;  %v4782_v63 = vpop.xlane.xlu1 %4781  ;;  %4925 = vadd.xlane.f32.xlu1 %v9388_v28  ;;  %4923 = vadd.xlane.f32.xlu0 %v9385_v0  ;;  %v9393_v42 = vpop.eup %7500 }
 0x43d   :  { %7510 = vpow2.f32 %v4873_v22  ;;  %v4830_v25 = vsub.f32 %v9286_v44, %v4782_v63 }
 0x43e   :  { %v4784_v1 = vpop.xlane.xlu0 %4783  ;;  %7512 = vpow2.f32 %v4875_v62 }
 0x43f   :  { %v9395_v9 = vpop.eup %7502  ;;  %v4877_v18 = vmul.f32 1.442695, %v4830_v25  ;;  %v4831_v34 = vsub.f32 %v9290_v39, %v4784_v1 }
 0x440   :  { %v4786_v29 = vpop.xlane.xlu1 %4785  ;;  %4929 = vadd.xlane.f32.xlu1 %v9395_v9  ;;  %4927 = vadd.xlane.f32.xlu0 %v9393_v42  ;;  %v9401_v21 = vpop.eup %7504 }
 0x441   :  { %7514 = vpow2.f32 %v4877_v18  ;;  %v4879_v53 = vmul.f32 1.442695, %v4831_v34  ;;  %v4832_v43 = vsub.f32 %v9294_v15, %v4786_v29 }
 0x442   :  { %v4788_v44 = vpop.xlane.xlu0 %4787 }
 0x443   :  { %v9403_v3 = vpop.eup %7506  ;;  %v4881_v33 = vmul.f32 1.442695, %v4832_v43  ;;  %v4833_v37 = vsub.f32 %v9298_v45, %v4788_v44  ;;  %7516 = vpow2.f32 %v4879_v53 }
 0x444   :  { %v4790_v39 = vpop.xlane.xlu1 %4789  ;;  %4933 = vadd.xlane.f32.xlu1 %v9403_v3  ;;  %4931 = vadd.xlane.f32.xlu0 %v9401_v21  ;;  %v9409_v35 = vpop.eup %7508 }
 0x445   :  { %7518 = vpow2.f32 %v4881_v33  ;;  %v4883_v2 = vmul.f32 1.442695, %v4833_v37  ;;  %v4834_v5 = vsub.f32 %v9302_v31, %v4790_v39 }
 0x446   :  { %v4792_v15 = vpop.xlane.xlu0 %4791 }
 0x447   :  { %v9411_v41 = vpop.eup %7510  ;;  %v4885_v23 = vmul.f32 1.442695, %v4834_v5  ;;  %v4835_v10 = vsub.f32 %v9306_v26, %v4792_v15  ;;  %7520 = vpow2.f32 %v4883_v2 }
 0x448   :  { %v4794_v45 = vpop.xlane.xlu1 %4793  ;;  %4937 = vadd.xlane.f32.xlu1 %v9411_v41  ;;  %4935 = vadd.xlane.f32.xlu0 %v9409_v35  ;;  %v9417_v16 = vpop.eup %7512 }
 0x449   :  { %7522 = vpow2.f32 %v4885_v23  ;;  %v4887_v30 = vmul.f32 1.442695, %v4835_v10  ;;  %v4836_v32 = vsub.f32 %v9310_v24, %v4794_v45 }
 0x44a   :  { %v4796_v31 = vpop.xlane.xlu0 %4795 }
 0x44b   :  { %v9419_v14 = vpop.eup %7514  ;;  %v4889_v7 = vmul.f32 1.442695, %v4836_v32  ;;  %v4837_v49 = vsub.f32 %v9314_v51, %v4796_v31  ;;  %7524 = vpow2.f32 %v4887_v30 }
 0x44c   :  { %v4798_v26 = vpop.xlane.xlu1 %4797  ;;  %4941 = vadd.xlane.f32.xlu1 %v9419_v14  ;;  %4939 = vadd.xlane.f32.xlu0 %v9417_v16 }
 0x44d   :  { %7526 = vpow2.f32 %v4889_v7  ;;  %v4891_v54 = vmul.f32 1.442695, %v4837_v49  ;;  %v4838_v60 = vsub.f32 %v9318_v59, %v4798_v26  ;;  %v9425_v50 = vpop.eup %7516 }
 0x44e   :  { %v4800_v24 = vpop.xlane.xlu0 %4799 }
 0x44f   :  { %v9427_v48 = vpop.eup %7518  ;;  %v4893_v17 = vmul.f32 1.442695, %v4838_v60  ;;  %v4839_v8 = vsub.f32 %v9322_v40, %v4800_v24  ;;  %7528 = vpow2.f32 %v4891_v54 }
 0x450   :  { %v4802_v51 = vpop.xlane.xlu1 %4801  ;;  %4945 = vadd.xlane.f32.xlu1 %v9427_v48  ;;  %4943 = vadd.xlane.f32.xlu0 %v9425_v50 }
 0x451   :  { %7530 = vpow2.f32 %v4893_v17  ;;  %v4895_v11 = vmul.f32 1.442695, %v4839_v8  ;;  %v4840_v6 = vsub.f32 %v9326_v58, %v4802_v51  ;;  %v9433_v36 = vpop.eup %7520 }
 0x452   :  { %v4804_v59 = vpop.xlane.xlu0 %4803 }
 0x453   :  { %v9435_v27 = vpop.eup %7522  ;;  %v4897_v57 = vmul.f32 1.442695, %v4840_v6  ;;  %v4841_v22 = vsub.f32 %v9330_v4, %v4804_v59  ;;  %7532 = vpow2.f32 %v4895_v11 }
 0x454   :  { %v4806_v40 = vpop.xlane.xlu1 %4805  ;;  %4949 = vadd.xlane.f32.xlu1 %v9435_v27  ;;  %4947 = vadd.xlane.f32.xlu0 %v9433_v36 }
 0x455   :  { %7534 = vpow2.f32 %v4897_v57  ;;  %v4899_v62 = vmul.f32 1.442695, %v4841_v22  ;;  %v4842_v63 = vsub.f32 %v9334_v47, %v4806_v40  ;;  %v9441_v25 = vpop.eup %7524 }
 0x456   :  { %v4808_v58 = vpop.xlane.xlu0 %4807 }
 0x457   :  { %v9443_v1 = vpop.eup %7526  ;;  %v4901_v18 = vmul.f32 1.442695, %v4842_v63  ;;  %v4843_v34 = vsub.f32 %v9338_v19, %v4808_v58  ;;  %7536 = vpow2.f32 %v4899_v62 }
 0x458   :  { %v4810_v4 = vpop.xlane.xlu1 %4809  ;;  %4953 = vadd.xlane.f32.xlu1 %v9443_v1  ;;  %4951 = vadd.xlane.f32.xlu0 %v9441_v25 }
 0x459   :  { %7538 = vpow2.f32 %v4901_v18  ;;  %v4903_v29 = vmul.f32 1.442695, %v4843_v34  ;;  %v4844_v53 = vsub.f32 %v9342_v56, %v4810_v4  ;;  %v9449_v43 = vpop.eup %7528 }
 0x45a   :  { %v4812_v47 = vpop.xlane.xlu0 %4811 }
 0x45b   :  { %v9451_v44 = vpop.eup %7530  ;;  %v4905_v33 = vmul.f32 1.442695, %v4844_v53  ;;  %v4845_v37 = vsub.f32 %v9349_v38, %v4812_v47  ;;  %7540 = vpow2.f32 %v4903_v29 }
 0x45c   :  { %4957 = vadd.xlane.f32.xlu1 %v9451_v44  ;;  %v4814_v19 = vpop.xlane.xlu1 %4813  ;;  %4955 = vadd.xlane.f32.xlu0 %v9449_v43 }
 0x45d   :  { %7542 = vpow2.f32 %v4905_v33  ;;  %v4907_v39 = vmul.f32 1.442695, %v4845_v37  ;;  %v4846_v2 = vsub.f32 %v9345_v46, %v4814_v19  ;;  %v9457_v5 = vpop.eup %7532 }
 0x45f   :  { %v9459_v56 = vpop.eup %7534  ;;  %v4909_v15 = vmul.f32 1.442695, %v4846_v2  ;;  %7544 = vpow2.f32 %v4907_v39 }
 0x460   :  { %4961 = vadd.xlane.f32.xlu1 %v9459_v56  ;;  %4959 = vadd.xlane.f32.xlu0 %v9457_v5 }
 0x461   :  { %7546 = vpow2.f32 %v4909_v15  ;;  %v9463_v38 = vpop.eup %7536 }
 0x463   :  { %v9465_v23 = vpop.eup %7538 }
 0x464   :  { %4965 = vadd.xlane.f32.xlu1 %v9465_v23  ;;  %4963 = vadd.xlane.f32.xlu0 %v9463_v38 }
 0x465   :  { %v9469_v46 = vpop.eup %7540 }
 0x467   :  { %v9471_v10 = vpop.eup %7542 }
 0x468   :  { %4969 = vadd.xlane.f32.xlu1 %v9471_v10  ;;  %4967 = vadd.xlane.f32.xlu0 %v9469_v46 }
 0x469   :  { %v9475_v45 = vpop.eup %7544 }
 0x46b   :  { %v9477_v30 = vpop.eup %7546 }
 0x46c   :  { %4973 = vadd.xlane.f32.xlu1 %v9477_v30  ;;  %4971 = vadd.xlane.f32.xlu0 %v9475_v45 }
 0x4b9   :  { %v4914_v32 = vpop.xlane.xlu1 %4913 }
 0x4ba   :  { %7548 = vrcp.f32 %v4914_v32 }
 0x4bd   :  { %v4912_v31 = vpop.xlane.xlu0 %4911 }
 0x4be   :  { %v4918_v7 = vpop.xlane.xlu1 %4917  ;;  %7550 = vrcp.f32 %v4912_v31 }
 0x4c1   :  { %v4916_v49 = vpop.xlane.xlu0 %4915 }
 0x4c4   :  { %v7549_v4 = vpop.eup %7548 }
 0x4c5   :  { %v4922_v26 = vpop.xlane.xlu1 %4921  ;;  %v4920_v54 = vpop.xlane.xlu0 %4919  ;;  %v5008_v33 = vmul.f32 %v7549_v4, %v9360_v20 }
 0x4c8   :  { %v7551_v29 = vpop.eup %7550 }
 0x4c9   :  { %v4926_v60 = vpop.xlane.xlu1 %4925  ;;  %v4924_v24 = vpop.xlane.xlu0 %4923  ;;  %v5007_v15 = vmul.f32 %v7551_v29, %v9365_v61 }
 0x4cd   :  { %v4930_v17 = vpop.xlane.xlu1 %4929  ;;  %v4928_v8 = vpop.xlane.xlu0 %4927 }
 0x4d1   :  { %v4934_v51 = vpop.xlane.xlu1 %4933  ;;  %v9481_v11 = vpop.xlane.xlu0 %4931 }
 0x4d5   :  { %v9483_v6 = vpop.xlane.xlu1 %4937  ;;  %v9485_v59 = vpop.xlane.xlu0 %4935 }
 0x4d9   :  { %v9487_v57 = vpop.xlane.xlu1 %4941  ;;  %v9489_v22 = vpop.xlane.xlu0 %4939 }
 0x4dd   :  { %v4946_v40 = vpop.xlane.xlu1 %4945  ;;  %v4944_v62 = vpop.xlane.xlu0 %4943 }
 0x4de   :  { %7552 = vrcp.f32 %v4946_v40 }
 0x4df   :  { %7554 = vrcp.f32 %v4944_v62 }
 0x4e0   :  { %7556 = vrcp.f32 %v4918_v7 }
 0x4e1   :  { %7558 = vrcp.f32 %v4916_v49  ;;  %v4950_v63 = vpop.xlane.xlu1 %4949  ;;  %v4948_v58 = vpop.xlane.xlu0 %4947 }
 0x4e2   :  { %7560 = vrcp.f32 %v4950_v63 }
 0x4e3   :  { %7562 = vrcp.f32 %v4948_v58 }
 0x4e4   :  { %7564 = vrcp.f32 %v4922_v26 }
 0x4e5   :  { %7566 = vrcp.f32 %v4920_v54  ;;  %v4954_v18 = vpop.xlane.xlu1 %4953  ;;  %v4952_v34 = vpop.xlane.xlu0 %4951 }
 0x4e6   :  { %7568 = vrcp.f32 %v4954_v18 }
 0x4e7   :  { %7570 = vrcp.f32 %v4952_v34 }
 0x4e8   :  { %v7553_v53 = vpop.eup %7552  ;;  %7572 = vrcp.f32 %v4926_v60 }
 0x4e9   :  { %v7555_v47 = vpop.eup %7554  ;;  %7574 = vrcp.f32 %v4924_v24  ;;  %v5024_v37 = vmul.f32 %v7553_v53, %v9427_v48  ;;  %v4958_v19 = vpop.xlane.xlu1 %4957 }
 0x4ea   :  { %v4956_v39 = vpop.xlane.xlu0 %4955  ;;  %v7557_v2 = vpop.eup %7556  ;;  %v5023_v32 = vmul.f32 %v7555_v47, %v9425_v50  ;;  %7576 = vrcp.f32 %v4958_v19 }
 0x4eb   :  { %v7559_v31 = vpop.eup %7558  ;;  %v5056_v7 = vadd.f32 %v5024_v37, %v5008_v33  ;;  %7578 = vrcp.f32 %v4956_v39  ;;  %v5010_v20 = vmul.f32 %v7557_v2, %v9367_v55 }
 0x4ec   :  { %v7561_v49 = vpop.eup %7560  ;;  %7580 = vrcp.f32 %v4930_v17  ;;  %v5055_v26 = vadd.f32 %v5023_v32, %v5007_v15  ;;  %v5009_v61 = vmul.f32 %v7559_v31, %v9373_v52 }
 0x4ed   :  { %v7563_v54 = vpop.eup %7562  ;;  %7582 = vrcp.f32 %v4928_v8  ;;  %v5026_v48 = vmul.f32 %v7561_v49, %v9435_v27  ;;  %v4962_v60 = vpop.xlane.xlu1 %4961  ;;  %5088 = vst [vmem:[#allocation2 + $0x8] sm:$0xff] %v5056_v7 }
 0x4ee   :  { %v4960_v24 = vpop.xlane.xlu0 %4959  ;;  %v7565_v40 = vpop.eup %7564  ;;  %v5025_v50 = vmul.f32 %v7563_v54, %v9433_v36  ;;  %7584 = vrcp.f32 %v4962_v60  ;;  %5087 = vst [vmem:[#allocation2] sm:$0xff] %v5055_v26 }
 0x4ef   :  { %v7567_v62 = vpop.eup %7566  ;;  %v5058_v63 = vadd.f32 %v5026_v48, %v5010_v20  ;;  %7586 = vrcp.f32 %v4960_v24  ;;  %v5012_v8 = vmul.f32 %v7565_v40, %v9380_v12 }
 0x4f0   :  { %v7569_v17 = vpop.eup %7568  ;;  %7588 = vrcp.f32 %v4934_v51  ;;  %v5057_v58 = vadd.f32 %v5025_v50, %v5009_v61  ;;  %v5011_v36 = vmul.f32 %v7567_v62, %v9377_v13 }
 0x4f1   :  { %v7571_v55 = vpop.eup %7570  ;;  %7590 = vrcp.f32 %v9481_v11  ;;  %v5028_v27 = vmul.f32 %v7569_v17, %v9443_v1  ;;  %v4966_v18 = vpop.xlane.xlu1 %4965  ;;  %5090 = vst [vmem:[#allocation2 + $0x18] sm:$0xff] %v5058_v63 }
 0x4f2   :  { %v4964_v52 = vpop.xlane.xlu0 %4963  ;;  %v7573_v34 = vpop.eup %7572  ;;  %v5027_v4 = vmul.f32 %v7571_v55, %v9441_v25  ;;  %7592 = vrcp.f32 %v4966_v18  ;;  %5089 = vst [vmem:[#allocation2 + $0x10] sm:$0xff] %v5057_v58 }
 0x4f3   :  { %v7575_v29 = vpop.eup %7574  ;;  %v5060_v51 = vadd.f32 %v5028_v27, %v5012_v8  ;;  %7594 = vrcp.f32 %v4964_v52  ;;  %v5014_v1 = vmul.f32 %v7573_v34, %v9388_v28 }
 0x4f4   :  { %v7577_v53 = vpop.eup %7576  ;;  %7596 = vrcp.f32 %v9483_v6  ;;  %v5059_v12 = vadd.f32 %v5027_v4, %v5011_v36  ;;  %v5013_v37 = vmul.f32 %v7575_v29, %v9385_v0 }
 0x4f5   :  { %v7579_v11 = vpop.eup %7578  ;;  %7598 = vrcp.f32 %v9485_v59  ;;  %v5030_v47 = vmul.f32 %v7577_v53, %v9451_v44  ;;  %v4970_v13 = vpop.xlane.xlu1 %4969  ;;  %5092 = vst [vmem:[#allocation2 + $0x28] sm:$0xff] %v5060_v51 }
 0x4f6   :  { %v4968_v33 = vpop.xlane.xlu0 %4967  ;;  %v7581_v25 = vpop.eup %7580  ;;  %v5029_v19 = vmul.f32 %v7579_v11, %v9449_v43  ;;  %7600 = vrcp.f32 %v4970_v13  ;;  %5091 = vst [vmem:[#allocation2 + $0x20] sm:$0xff] %v5059_v12 }
 0x4f7   :  { %v7583_v39 = vpop.eup %7582  ;;  %v5062_v6 = vadd.f32 %v5030_v47, %v5014_v1  ;;  %7602 = vrcp.f32 %v4968_v33  ;;  %v5016_v44 = vmul.f32 %v7581_v25, %v9395_v9 }
 0x4f8   :  { %v7585_v2 = vpop.eup %7584  ;;  %7604 = vrcp.f32 %v9487_v57  ;;  %v5061_v28 = vadd.f32 %v5029_v19, %v5013_v37  ;;  %v5015_v31 = vmul.f32 %v7583_v39, %v9393_v42 }
 0x4f9   :  { %v7587_v59 = vpop.eup %7586  ;;  %7606 = vrcp.f32 %v9489_v22  ;;  %v5032_v15 = vmul.f32 %v7585_v2, %v9459_v56  ;;  %v4974_v0 = vpop.xlane.xlu1 %4973  ;;  %5094 = vst [vmem:[#allocation2 + $0x38] sm:$0xff] %v5062_v6 }
 0x4fa   :  { %v4972_v32 = vpop.xlane.xlu0 %4971  ;;  %v7589_v43 = vpop.eup %7588  ;;  %v5031_v7 = vmul.f32 %v7587_v59, %v9457_v5  ;;  %7608 = vrcp.f32 %v4974_v0  ;;  %5093 = vst [vmem:[#allocation2 + $0x30] sm:$0xff] %v5061_v28 }
 0x4fb   :  { %v7591_v49 = vpop.eup %7590  ;;  %v5064_v57 = vadd.f32 %v5032_v15, %v5016_v44  ;;  %7610 = vrcp.f32 %v4972_v32  ;;  %v5018_v22 = vmul.f32 %v7589_v43, %v9403_v3 }
 0x4fc   :  { %v7593_v26 = vpop.eup %7592  ;;  %v5063_v54 = vadd.f32 %v5031_v7, %v5015_v31  ;;  %v5017_v48 = vmul.f32 %v7591_v49, %v9401_v21 }
 0x4fd   :  { %v7595_v9 = vpop.eup %7594  ;;  %v5034_v56 = vmul.f32 %v7593_v26, %v9465_v23  ;;  %5096 = vst [vmem:[#allocation2 + $0x48] sm:$0xff] %v5064_v57 }
 0x4fe   :  { %v7597_v20 = vpop.eup %7596  ;;  %v5033_v42 = vmul.f32 %v7595_v9, %v9463_v38  ;;  %5095 = vst [vmem:[#allocation2 + $0x40] sm:$0xff] %v5063_v54 }
 0x4ff   :  { %v7599_v60 = vpop.eup %7598  ;;  %v5066_v5 = vadd.f32 %v5034_v56, %v5018_v22  ;;  %v5020_v50 = vmul.f32 %v7597_v20, %v9411_v41 }
 0x500   :  { %v7601_v24 = vpop.eup %7600  ;;  %v5065_v40 = vadd.f32 %v5033_v42, %v5017_v48  ;;  %v5019_v3 = vmul.f32 %v7599_v60, %v9409_v35 }
 0x501   :  { %v7603_v61 = vpop.eup %7602  ;;  %v5036_v62 = vmul.f32 %v7601_v24, %v9471_v10  ;;  %5098 = vst [vmem:[#allocation2 + $0x58] sm:$0xff] %v5066_v5 }
 0x502   :  { %v7605_v63 = vpop.eup %7604  ;;  %v5035_v23 = vmul.f32 %v7603_v61, %v9469_v46  ;;  %5097 = vst [vmem:[#allocation2 + $0x50] sm:$0xff] %v5065_v40 }
 0x503   :  { %v7607_v17 = vpop.eup %7606  ;;  %v5068_v21 = vadd.f32 %v5036_v62, %v5020_v50  ;;  %v5022_v8 = vmul.f32 %v7605_v63, %v9419_v14 }
 0x504   :  { %v7609_v38 = vpop.eup %7608  ;;  %v5067_v58 = vadd.f32 %v5035_v23, %v5019_v3  ;;  %v5021_v41 = vmul.f32 %v7607_v17, %v9417_v16 }
 0x505   :  { %v7611_v55 = vpop.eup %7610  ;;  %v5038_v27 = vmul.f32 %v7609_v38, %v9477_v30  ;;  %5100 = vst [vmem:[#allocation2 + $0x68] sm:$0xff] %v5068_v21 }
 0x506   :  { %v5037_v10 = vmul.f32 %v7611_v55, %v9475_v45  ;;  %5099 = vst [vmem:[#allocation2 + $0x60] sm:$0xff] %v5067_v58 }
 0x507   :  { %v5070_v35 = vadd.f32 %v5038_v27, %v5022_v8 }
 0x508   :  { %v5069_v46 = vadd.f32 %v5037_v10, %v5021_v41 }
 0x509   :  { %5102 = vst [vmem:[#allocation2 + $0x78] sm:$0xff] %v5070_v35 }
 0x50a   :  { %5101 = vst [vmem:[#allocation2 + $0x70] sm:$0xff] %v5069_v46 }
 0x50b   :  { %7623 = shalt.err (!%p7620_p4)
}
 0x50c   :  { %s7624_s26 = scalar_lea.hbm %s9542_s2, 2048 }
 0x50d   :  { %p7625_p5 = scmp.ne.s32.totalorder %s9542_s2, %s7624_s26  ;;  %p7628_p6 = scmp.lt.u32.totalorder %s7624_s26, %s9542_s2 }
 0x50f   :  { %p7630_p7 = pnand %p7628_p6, %p7625_p5 }
 0x511   :  { %7633 = shalt.err (!%p7630_p7)
}
 0x512   :  { %s7638_s3 = smov 128   ;;  %s7639_s4 = smov 8  }
 0x513   :  { %5114 = dma.vmem_to_hbm [thread:$0]  %s5109_s1, 2048, %s9542_s2, [#allocation3], %s7638_s3, %s7638_s3, %s7639_s4  }
 0x514   :  { %7634 = dma.done.wait [#allocation3], 2048  }
 0x515   :  { %7635 = vsyncadd [#allocation3], 4294965248 }
 0x516   :  { %5118 = vsyncpa [#allocation3], 1 }

</bundles_post_ra>
